<compile_context>
chip_gen: v6e
topology: v6e:2x2x1
jax: 0.10.0
libtpu: 0.0.40
codegen_flags: <defaults>
</compile_context>

<pallas_src>
import jax
import jax.numpy as jnp
from jax.experimental import pallas as pl
from jax.experimental.pallas import tpu as pltpu

EPS = 1e-6
_VMEM_LIMIT_BYTES = 48 * 1024 * 1024   # explicit scoped-VMEM limit (safe on v5e/v6e/v7x)
_VMEM_TILE_BUDGET = 40 * 1024 * 1024   # what the pipelined tiles may consume


def _round_up(n, m):
    return ((n + m - 1) // m) * m


def _pick_row_tile(rows, d):
    """Largest MXU/pipeline-friendly row tile that fits the VMEM budget."""
    # Grid-invariant operands (conservatively assume double buffering):
    #   weight (bf16): 2 * d*d*2 bytes; packed params (f32): 2 * 3*d*4 bytes.
    fixed = 2 * d * d * 2 + 2 * 3 * d * 4
    # Per-row cost: x tile (f32, 2 bufs) + out tile (f32, 2 bufs)
    # + ~3 f32 row-sized temporaries inside the kernel body.
    per_row = (2 * 4 + 2 * 4 + 3 * 4) * d
    avail = max(_VMEM_TILE_BUDGET - fixed, 0)
    tm = avail // per_row if per_row else 8
    if tm >= 512:
        tm = 512          # measured sweet spot; multiple of 256 for v6e/v7x MXU
    elif tm >= 256:
        tm = 256
    else:
        tm = max(8, (tm // 8) * 8)
    # Never exceed what the problem needs; keep the sublane multiple of 8.
    return max(8, min(tm, _round_up(rows, 8)))


def _sublayer_connection_kernel(x_ref, params_ref, w_ref, o_ref):
    # x_ref      : (tm, D) f32 tile of the flattened (rows, D) input
    # params_ref : (3, D)  f32 = [gamma ; beta ; linear bias]
    # w_ref      : (D, D)  bf16 = Linear.weight.T (grid-invariant)
    x = x_ref[...].astype(jnp.float32)
    d = x.shape[-1]

    gamma = params_ref[0:1, :]
    beta = params_ref[1:2, :]
    bias = params_ref[2:3, :]

    # --- LayerNorm (torch semantics: unbiased /(D-1) variance, eps on std) ---
    mean = jnp.mean(x, axis=-1, keepdims=True)
    diff = x - mean
    var_unbiased = jnp.sum(diff * diff, axis=-1, keepdims=True) * (1.0 / (d - 1))
    inv_std = pl.reciprocal(jnp.sqrt(var_unbiased) + EPS, approx=True)  # EUP slot
    normed = diff * inv_std * gamma + beta

    # --- sublayer: Linear(D, D).  bf16 MXU matmul, f32 accumulation. ---
    y = jnp.dot(normed.astype(jnp.bfloat16), w_ref[...],
                preferred_element_type=jnp.float32)
    y = y + bias

    # --- dropout (inference mode = identity) + residual ---
    o_ref[...] = (x + y).astype(o_ref.dtype)


def sublayer_connection(x, a_2, b_2, w_t, bias, *, tm=None):
    """out = x + Linear(LayerNorm(x)).  x: (B, S, D) f32; w_t = Linear.weight.T (D, D)."""
    B, S, D = x.shape
    R = B * S
    x2d = x.reshape(R, D)
    # Pack the three (D,) parameter vectors into a single grid-invariant (3, D) operand.
    params = jnp.stack(
        [a_2.astype(jnp.float32), b_2.astype(jnp.float32), bias.astype(jnp.float32)],
        axis=0)
    w_bf16 = w_t.astype(jnp.bfloat16)

    if tm is None:
        tm = _pick_row_tile(R, D)
    grid = (pl.cdiv(R, tm),)

    out2d = pl.pallas_call(
        _sublayer_connection_kernel,
        out_shape=jax.ShapeDtypeStruct((R, D), x.dtype),
        grid_spec=pltpu.PrefetchScalarGridSpec(
            num_scalar_prefetch=0,
            grid=grid,
            in_specs=[
                pl.BlockSpec((tm, D), lambda i: (i, 0)),   # x row tile
                pl.BlockSpec((3, D), lambda i: (0, 0)),    # packed gamma/beta/bias
                pl.BlockSpec((D, D), lambda i: (0, 0)),    # weight^T (bf16), grid-invariant
            ],
            out_specs=pl.BlockSpec((tm, D), lambda i: (i, 0)),
        ),
        compiler_params=pltpu.CompilerParams(
            dimension_semantics=("parallel",),
            vmem_limit_bytes=_VMEM_LIMIT_BYTES),
    )(x2d, params, w_bf16)

    return out2d.reshape(B, S, D)


def reference(x, a_2, b_2, w_t, bias):
    """Pure-JAX f32 reference mirroring the PyTorch forward (eval mode)."""
    d = x.shape[-1]
    mean = jnp.mean(x, axis=-1, keepdims=True)
    diff = x - mean
    std = jnp.sqrt(jnp.sum(diff * diff, axis=-1, keepdims=True) / (d - 1))
    normed = a_2 * diff / (std + EPS) + b_2
    y = normed @ w_t + bias
    return x + y  # dropout is identity in eval mode


if __name__ == "__main__":
    # Small but lane-dense shapes: D is a multiple of 128, and B*S=640 gives a
    # 2-step grid at tm=512 (exercises the pipeline and a padded tail tile).
    B, S, D = 4, 160, 128
    key = jax.random.PRNGKey(0)
    kx, kw, kb = jax.random.split(key, 3)

    x = jax.random.normal(kx, (B, S, D), dtype=jnp.float32)

    # LayerNorm params as in __init__: ones / zeros
    a_2 = jnp.ones((D,), dtype=jnp.float32)
    b_2 = jnp.zeros((D,), dtype=jnp.float32)

    # Deterministic synthetic Linear(size, size) standing in for `sublayer`
    w_t = (jax.random.normal(kw, (D, D), dtype=jnp.float32) / jnp.sqrt(D)).astype(jnp.float32)
    bias = (jax.random.normal(kb, (D,), dtype=jnp.float32) * 0.01).astype(jnp.float32)

    out = sublayer_connection(x, a_2, b_2, w_t, bias)
    out = jax.block_until_ready(out)

    ref = reference(x, a_2, b_2, w_t, bias)
    assert out.shape == (B, S, D)
    # Tolerance accounts for the bf16 MXU matmul + approximate (EUP) reciprocal
    # relative to the pure-f32 torch-semantics reference.
    assert jnp.allclose(out, ref, atol=5e-2, rtol=5e-2), "mismatch vs reference"

    print("KERNEL_OK")
</pallas_src>

<mosaic_0001>
module attributes {stable_mosaic.version = 11 : i64} {
  func.func @_sublayer_connection_kernel(%arg0: i32, %arg1: memref<512x128xf32, #tpu.memory_space<vmem>>, %arg2: memref<3x128xf32, #tpu.memory_space<vmem>>, %arg3: memref<128x128xbf16, #tpu.memory_space<vmem>>, %arg4: memref<512x128xf32, #tpu.memory_space<vmem>>) attributes {dimension_semantics = [#tpu.dimension_semantics<parallel>], iteration_bounds = array<i64: 2>, scalar_prefetch = 0 : i64, scratch_operands = 0 : i64, tpu.core_type = #tpu.core_type<tc>, window_params = [{transform_indices = @transform_0, window_bounds = array<i64: 512, 128>}, {pipeline_mode = #tpu.pipeline_mode<synchronous>, transform_indices = @transform_1, window_bounds = array<i64: 3, 128>}, {pipeline_mode = #tpu.pipeline_mode<synchronous>, transform_indices = @transform_2, window_bounds = array<i64: 128, 128>}, {transform_indices = @transform_3, window_bounds = array<i64: 512, 128>}]} {
    %c0 = arith.constant 0 : index
    %c0_0 = arith.constant 0 : index
    %0 = vector.load %arg1[%c0, %c0_0] : memref<512x128xf32, #tpu.memory_space<vmem>>, vector<512x128xf32>
    %c0_1 = arith.constant 0 : index
    %c0_2 = arith.constant 0 : index
    %1 = vector.load %arg2[%c0_1, %c0_2] : memref<3x128xf32, #tpu.memory_space<vmem>>, vector<1x128xf32>
    %c1 = arith.constant 1 : index
    %c0_3 = arith.constant 0 : index
    %2 = vector.load %arg2[%c1, %c0_3] : memref<3x128xf32, #tpu.memory_space<vmem>>, vector<1x128xf32>
    %c2 = arith.constant 2 : index
    %c0_4 = arith.constant 0 : index
    %3 = vector.load %arg2[%c2, %c0_4] : memref<3x128xf32, #tpu.memory_space<vmem>>, vector<1x128xf32>
    %cst = arith.constant dense<0.000000e+00> : vector<512xf32>
    %4 = vector.multi_reduction <add>, %0, %cst [1] : vector<512x128xf32> to vector<512xf32>
    %5 = vector.shape_cast %4 : vector<512xf32> to vector<512x1xf32>
    %cst_5 = arith.constant 1.280000e+02 : f32
    %6 = vector.broadcast %cst_5 : f32 to vector<512x1xf32>
    %7 = arith.divf %5, %6 : vector<512x1xf32>
    %8 = vector.broadcast %7 : vector<512x1xf32> to vector<512x128xf32>
    %9 = arith.subf %0, %8 : vector<512x128xf32>
    %10 = arith.mulf %9, %9 : vector<512x128xf32>
    %cst_6 = arith.constant dense<0.000000e+00> : vector<512xf32>
    %11 = vector.multi_reduction <add>, %10, %cst_6 [1] : vector<512x128xf32> to vector<512xf32>
    %12 = vector.shape_cast %11 : vector<512xf32> to vector<512x1xf32>
    %cst_7 = arith.constant 0.00787401571 : f32
    %13 = vector.broadcast %cst_7 : f32 to vector<512x1xf32>
    %14 = arith.mulf %12, %13 : vector<512x1xf32>
    %15 = math.sqrt %14 : vector<512x1xf32>
    %cst_8 = arith.constant 9.99999997E-7 : f32
    %16 = vector.broadcast %cst_8 : f32 to vector<512x1xf32>
    %17 = arith.addf %15, %16 : vector<512x1xf32>
    %18 = tpu.reciprocal %17 {approx = true} : vector<512x1xf32> -> vector<512x1xf32>
    %19 = vector.broadcast %18 : vector<512x1xf32> to vector<512x128xf32>
    %20 = arith.mulf %9, %19 : vector<512x128xf32>
    %21 = vector.broadcast %1 : vector<1x128xf32> to vector<512x128xf32>
    %22 = arith.mulf %20, %21 : vector<512x128xf32>
    %23 = vector.broadcast %2 : vector<1x128xf32> to vector<512x128xf32>
    %24 = arith.addf %22, %23 : vector<512x128xf32>
    %25 = arith.truncf %24 : vector<512x128xf32> to vector<512x128xbf16>
    %c0_9 = arith.constant 0 : index
    %c0_10 = arith.constant 0 : index
    %26 = vector.load %arg3[%c0_9, %c0_10] : memref<128x128xbf16, #tpu.memory_space<vmem>>, vector<128x128xbf16>
    %cst_11 = arith.constant dense<0.000000e+00> : vector<512x128xf32>
    %27 = tpu.matmul %25, %26, %cst_11 {dimension_numbers = #tpu.dot_dimension_numbers<[1], [0], [0], [1], [0, 0, 1, 1], [], []>} : vector<512x128xbf16>, vector<128x128xbf16>, vector<512x128xf32> -> vector<512x128xf32>
    %28 = vector.broadcast %3 : vector<1x128xf32> to vector<512x128xf32>
    %29 = arith.addf %27, %28 : vector<512x128xf32>
    %30 = arith.addf %0, %29 : vector<512x128xf32>
    %c0_12 = arith.constant 0 : index
    %c0_13 = arith.constant 0 : index
    %31 = vector.load %arg4[%c0_12, %c0_13] : memref<512x128xf32, #tpu.memory_space<vmem>>, vector<512x128xf32>
    tpu.vector_store %arg4[%c0_12, %c0_13], %30 {strides = array<i32>} : memref<512x128xf32, #tpu.memory_space<vmem>>, vector<512x128xf32>,
    return
  }
  func.func @transform_0(%arg0: i32) -> (i32, i32) {
    %c0_i32 = arith.constant 0 : i32
    %c0_i32_0 = arith.constant 0 : i32
    return %arg0, %c0_i32 : i32, i32
  }
  func.func @transform_1(%arg0: i32) -> (i32, i32) {
    %c0_i32 = arith.constant 0 : i32
    %c0_i32_0 = arith.constant 0 : i32
    %c0_i32_1 = arith.constant 0 : i32
    return %c0_i32, %c0_i32_0 : i32, i32
  }
  func.func @transform_2(%arg0: i32) -> (i32, i32) {
    %c0_i32 = arith.constant 0 : i32
    %c0_i32_0 = arith.constant 0 : i32
    %c0_i32_1 = arith.constant 0 : i32
    return %c0_i32, %c0_i32_0 : i32, i32
  }
  func.func @transform_3(%arg0: i32) -> (i32, i32) {
    %c0_i32 = arith.constant 0 : i32
    %c0_i32_0 = arith.constant 0 : i32
    return %arg0, %c0_i32 : i32, i32
  }
}

</mosaic_0001>

<bundles_post_ra>
// kernel: tpu_custom_call.1
= control target key start
LH: loop header
LB: loop body
LE: loop exit
PB: predicated region body
PF: predicated region fallthrough
CT: control target
= control target key end

     0   :  { %8 = vsyncpa [#allocation3], 0  ;;  %s5103_s0 = inlined_call_operand.hbm [shape: f32[640,128], index: 0, kind: input, shape index: {}]   ;;  %s5104_s1 = inlined_call_operand.hbm [shape: f32[3,128], index: 1, kind: input, shape index: {}]   ;;  %s5105_s2 = inlined_call_operand.hbm [shape: bf16[128,128], index: 2, kind: input, shape index: {}]   ;;  %s5106_s3 = inlined_call_operand.hbm [shape: f32[640,128], index: 3, kind: output, shape index: {}]  }
   0x1   :  { %10 = vsyncpa [#allocation3 + $0x1], 0 }
   0x2   :  { %11 = vsyncpa [#allocation6], 0 }
   0x3   :  { %12 = vsyncpa [#allocation4], 0 }
   0x4   :  { %14 = vsyncpa [#allocation4 + $0x1], 0  ;;  %s2967_s12 = smov 0   ;;  %s2969_s13 = smov 0  }
   0x5   :  { %s2971_s14 = smov 0   ;;  %s2973_s15 = smov 0  }
   0x6 LB: > { %s2988_s16 = sadd.s32 4294967295, %s2935_s15   ;;  %s2218_s17 = sadd.s32 4294967294, %s2935_s15   ;;  %s2935_s15 = sphi %s2973_s15, %s5290_s15   ;;  %s2931_s14 = sphi %s2971_s14, %s5289_s14   ;;  %s2927_s13 = sphi %s2969_s13, %s5288_s13   ;;  %s2923_s12 = sphi %s2967_s12, %s5287_s12  }
   0x7   : > { %s2992_s18 = sadd.s32 1, %s2935_s15   ;;  %s27_s19 = sadd.s32 1, %s2931_s14 }
   0x8   : > { %s24_s20 = ssub.s32 %s2935_s15, %s2992_s18  ;;  %p34_p0 = scmp.ne.s32.totalorder %s2931_s14, %s2927_s13 }
   0x9   : > { %p25_p1 = scmp.eq.s32.totalorder %s24_s20, 0  ;;  %p35_p2 = scmp.eq.s32.totalorder %s2935_s15, 0 }
   0xa   : > { %p40_p3 = scmp.ne.s32.totalorder %s2927_s13, %s2923_s12  ;;  %p5107_p4 = scmp.eq.s32.totalorder %s2988_s16, 0 }
   0xb   : > { %s3004_s21 = scalar_select %p25_p1, %s2931_s14, %s27_s19  }
   0xc   : > { %p3006_p5 = por %p35_p2, %p34_p0  ;;  %p3012_p6 = por %p5107_p4, %p40_p3 }
   0xd   : > { %p106_p7 = scmp.eq.s32.totalorder %s2988_s16, 1  ;;  %p112_p8 = scmp.eq.s32.totalorder %s2218_s17, 1 }
   0xe   : > { %s5163_s22 = scalar_select %p3006_p5, 1, 0 }
   0xf   : > { %s5164_s23 = scalar_select %p3012_p6, 1, 0 }
  0x10   : > { %p2219_p9 = scmp.ge.s32.totalorder %s2935_s15, 1  ;;  %p119_p10 = scmp.lt.s32.totalorder %s2935_s15, 3 }
  0x11   : > { %p3019_p11 = por %p106_p7, %p34_p0  ;;  %p3023_p12 = por %p112_p8, %p40_p3 }
  0x12   : > { %p3027_p13 = pnand %p2219_p9, %p119_p10  ;;  %s2937_s27 = smov [#allocation5]  }
  0x13   : > { %s5165_s24 = scalar_select %p3019_p11, 1, 0 }
  0x14   : > { %s5166_s25 = scalar_select %p3023_p12, 1, 0 }
  0x15   : > { %s5167_s26 = scalar_select %p3027_p13, 1, 0 }
  0x16   : > { %p2403_p1 = pneg %p3027_p13  ;;  %s132_s28 = sshll.u32 %s2937_s27, 4  ;;  %s133_s28 = int_to_ptr.vmem [resolvable:$true] %s132_s28 }
  0x17   : > { %s2938_s29 = smov [#allocation7]   ;;  %s2800_s5 = scalar_lea.vmem %s133_s28, 64 }
  0x18   : > { %s142_s30 = sshll.u32 %s2938_s29, 4  ;;  %p3035_p0 = pnand %p2403_p1, %p5107_p4  ;;  %s143_s30 = int_to_ptr.vmem [resolvable:$true] %s142_s30 }
  0x19   : > { %p2801_p3 = scmp.ne.s32.totalorder %s133_s28, %s2800_s5  ;;  %p2808_p9 = scmp.lt.s32.totalorder %s133_s28, %s133_s28 }
  0x1a   : > { %p2791_p2 = pneg %p3035_p0  ;;  %p2809_p10 = scmp.lt.s32.totalorder %s2800_s5, %s2800_s5 }
  0x1c   : > { %p2803_p7 = pnand %p2801_p3, %p2791_p2  ;;  %p2810_p12 = por %p2809_p10, %p2808_p9 }
  0x1e   : > { %p2804_p8 = pneg %p2803_p7 }
  0x20   : > { %p2811_p11 = pnand %p2810_p12, %p2804_p8 }
  0x22   : > { %2814 = shalt.err (!%p2811_p11)
}
  0x23   : > { %2406 = dma.hbm_to_vmem [thread:$0]  (!%p3035_p0), %s5104_s1, 64, %s133_s28, [#allocation6]  }
  0x24   : > { %s2826_s8 = scalar_lea.vmem %s143_s30, 1024  ;;  %p2834_p3 = scmp.lt.s32.totalorder %s143_s30, %s143_s30 }
  0x25   : > { %p2827_p1 = scmp.ne.s32.totalorder %s143_s30, %s2826_s8  ;;  %p2835_p7 = scmp.lt.s32.totalorder %s2826_s8, %s2826_s8 }
  0x27   : > { %p2829_p4 = pnand %p2827_p1, %p2791_p2  ;;  %p2836_p13 = por %p2835_p7, %p2834_p3 }
  0x29   : > { %p2830_p6 = pneg %p2829_p4 }
  0x2b   : > { %p2837_p5 = pnand %p2836_p13, %p2830_p6 }
  0x2d   : > { %2840 = shalt.err (!%p2837_p5)
}
  0x2e   : > { %s2939_s9 = smov 64   ;;  %s2940_s10 = smov 4  }
  0x2f   : > { %2409 = dma.hbm_to_vmem [thread:$0]  (!%p3035_p0), %s5105_s2, 1024, %s143_s30, [#allocation6], %s2939_s9, %s2939_s9, %s2940_s10  }
  0x30   : > { %p2222_p11 = scmp.ge.s32.totalorder %s2935_s15, 2 }
  0x31   : > { %p5169_p4 = scmp.ne.s32.totalorder (!%p2222_p11), %s5163_s22, 0 }
  0x32   : > { %152 = sbr.rel (%p2222_p11) target bundleno = 87 (0x57), region = 24 }
  0x37   : > { %155 = sbr.rel (!%p5169_p4) target bundleno = 87 (0x57), region = 28  ;;  %s156_s19 = sand.u32 (%p5169_p4), 1, %s2931_s14  }
  0x38   : > { %s2224_s20 = sshll.u32 (%p5169_p4), %s2935_s15, 6  ;;  %s2223_s27 = sshll.u32 (%p5169_p4), %s156_s19, 9 }
  0x39   : > { %s162_s28 = ssub.s32 (%p5169_p4), 80, %s2224_s20  ;;  %s3067_s4 = scalar_lea.sflag (%p5169_p4), [#allocation3], %s156_s19 }
  0x3a   : > { %p163_p5 = scmp.lt.s32.totalorder (%p5169_p4), %s162_s28, 64  ;;  %s160_s5 = scalar_lea.vmem (%p5169_p4), [#allocation2], %s2223_s27 }
  0x3c   : > { %s5292_s28 = smov (!%p163_p5, %s162_s28), 64 }
  0x3d   : > { %s3064_s29 = sshll.u32 %s5292_s28, 7 }
  0x3e   : > { %s167_s30 = ssub.s32 8192, %s3064_s29 }
  0x3f   : > { %168 = vsyncadd %s3067_s4, %s167_s30  ;;  %p2226_p6 = scmp.ne.s32.totalorder %s3064_s29, 0  ;;  %s2255_s22 = sshll.u32 %s2935_s15, 13 }
  0x40   : > { %s3075_s8 = scalar_lea.hbm %s5103_s0, %s2255_s22  ;;  %s173_s9 = sshll.u32 %s160_s5, 4  ;;  %s3077_s9 = int_to_ptr.vmem [resolvable:$true] %s173_s9 }
  0x41   : > { %s2841_s10 = scalar_lea.hbm %s3075_s8, %s3064_s29  ;;  %s2845_s19 = scalar_lea.hbm %s5103_s0, 10240 }
  0x42   : > { %p2842_p12 = scmp.ne.s32.totalorder %s3075_s8, %s2841_s10  ;;  %p2846_p2 = scmp.lt.s32.totalorder %s3075_s8, %s5103_s0 }
  0x43   : > { %p2847_p8 = scmp.lt.s32.totalorder %s2845_s19, %s2841_s10 }
  0x44   : > { %p2843_p13 = pnand %p2842_p12, %p2226_p6 }
  0x45   : > { %p2848_p9 = por %p2847_p8, %p2846_p2 }
  0x46   : > { %p2844_p0 = pneg %p2843_p13 }
  0x48   : > { %p2849_p10 = pnand %p2848_p9, %p2844_p0 }
  0x4a   : > { %2852 = shalt.err (!%p2849_p10)
}
  0x4b   : > { %s2853_s28 = scalar_lea.vmem %s3077_s9, %s3064_s29  ;;  %s2941_s30 = smov [#allocation2]  }
  0x4c   : > { %p2854_p1 = scmp.ne.s32.totalorder %s3077_s9, %s2853_s28  ;;  %s2857_s5 = sshll.u32 %s2941_s30, 4  ;;  %s2858_s5 = int_to_ptr.vmem [resolvable:$false] %s2857_s5 }
  0x4d   : > { %s2859_s22 = scalar_lea.vmem %s2858_s5, 16384  ;;  %p2860_p4 = scmp.lt.s32.totalorder %s3077_s9, %s2858_s5 }
  0x4e   : > { %p2855_p3 = pnand %p2854_p1, %p2226_p6  ;;  %p2861_p5 = scmp.lt.s32.totalorder %s2859_s22, %s2853_s28 }
  0x50   : > { %p2856_p7 = pneg %p2855_p3  ;;  %p2862_p12 = por %p2861_p5, %p2860_p4 }
  0x52   : > { %p2863_p13 = pnand %p2862_p12, %p2856_p7 }
  0x54   : > { %2866 = shalt.err (!%p2863_p13)
}
  0x55   : > { %s2942_s6 = smov 128   ;;  %s2943_s7 = smov 8  }
  0x56   : > { %179 = dma.hbm_to_vmem [thread:$0]  (%p2226_p6), %s3075_s8, %s3064_s29, %s3077_s9, %s3067_s4, %s2942_s6, %s2942_s6, %s2943_s7  }
  0x57 PF: > { %p5170_p0 = scmp.ne.s32.totalorder %s5167_s26, 0 }
  0x59   : > { %185 = sbr.rel (%p5170_p0) target bundleno = 859 (0x35b), region = 32 }
  0x5e   : > { %s3106_s10 = sand.u32 1, %s2927_s13   ;;  %p5171_p2 = scmp.ne.s32.totalorder %s5164_s23, 0 }
  0x5f   : > { %s2231_s11 = sshll.u32 %s3106_s10, 9  ;;  %s188_s17 = scalar_lea.sflag [#allocation3], %s3106_s10 }
  0x60   : > { %s3112_s19 = scalar_lea.vmem [#allocation2], %s2231_s11 }
  0x61   : > { %2910 = dma.done.wait (%p5171_p2), %s188_s17, 8192  }
  0x62   : > { %2912 = vsyncadd (%p5171_p2), %s188_s17, 4294959104  ;;  %p5172_p6 = scmp.eq.s32.totalorder %s2988_s16, 0 }
  0x64   : > { %2914 = dma.done.wait (%p5172_p6), [#allocation6], 1088   ;;  %p5173_p8 = pmov %p5172_p6 }
  0x65   : > { %v3123_v0 = vld [vmem:[%s3112_s19] sm:$0xff]  ;;  %v3131_v2 = vld [vmem:[%s3112_s19 + $0x8] sm:$0xff]  ;;  %v3139_v4 = vld [vmem:[%s3112_s19 + $0x10] sm:$0xff]  ;;  %s4850_s23 = scalar_lea.vmem [#allocation8], %s2231_s11  ;;  %s2107_s26 = scalar_lea.sflag [#allocation4], %s3106_s10 }
  0x66   : > { %2916 = vsyncadd (%p5173_p8), [#allocation6], 4294966208  ;;  %v3126_v1 = vld [vmem:[%s3112_s19 + $0x100] sm:$0xff]  ;;  %300 = vadd.xlane.f32.xlu0 %v3123_v0  ;;  %v3134_v3 = vld [vmem:[%s3112_s19 + $0x108] sm:$0xff]  ;;  %p5285_p9 = scmp.ne.s32.totalorder %s5165_s24, 0 }
  0x67   : > { %364 = vadd.xlane.f32.xlu1 %v3126_v1  ;;  %v3142_v5 = vld [vmem:[%s3112_s19 + $0x18] sm:$0xff]  ;;  %v3147_v6 = vld [vmem:[%s3112_s19 + $0x110] sm:$0xff]  ;;  %v3155_v8 = vld [vmem:[%s3112_s19 + $0x20] sm:$0xff]  ;;  %s2247_s29 = sshll.u32 (%p5285_p9), %s2988_s16, 6 }
  0x68   : > { %v3150_v7 = vld [vmem:[%s3112_s19 + $0x118] sm:$0xff]  ;;  %v3158_v9 = vld [vmem:[%s3112_s19 + $0x28] sm:$0xff]  ;;  %v3163_v10 = vld [vmem:[%s3112_s19 + $0x120] sm:$0xff]  ;;  %s2115_s4 = ssub.s32 (%p5285_p9), 80, %s2247_s29 }
  0x69   : > { %v3166_v11 = vld [vmem:[%s3112_s19 + $0x128] sm:$0xff]  ;;  %v3169_v12 = vld [vmem:[%s3112_s19 + $0x30] sm:$0xff]  ;;  %v3174_v13 = vld [vmem:[%s3112_s19 + $0x38] sm:$0xff]  ;;  %p2116_p10 = scmp.lt.s32.totalorder (%p5285_p9), %s2115_s4, 64 }
  0x6a   : > { %302 = vadd.xlane.f32.xlu0 %v3131_v2  ;;  %v3177_v14 = vld [vmem:[%s3112_s19 + $0x130] sm:$0xff]  ;;  %v3182_v15 = vld [vmem:[%s3112_s19 + $0x138] sm:$0xff]  ;;  %v3187_v16 = vld [vmem:[%s3112_s19 + $0x40] sm:$0xff] }
  0x6b   : > { %366 = vadd.xlane.f32.xlu1 %v3134_v3  ;;  %v3190_v17 = vld [vmem:[%s3112_s19 + $0x48] sm:$0xff]  ;;  %v3195_v18 = vld [vmem:[%s3112_s19 + $0x140] sm:$0xff]  ;;  %v3203_v20 = vld [vmem:[%s3112_s19 + $0x50] sm:$0xff] }
  0x6c   : > { %v3198_v19 = vld [vmem:[%s3112_s19 + $0x148] sm:$0xff]  ;;  %v3206_v21 = vld [vmem:[%s3112_s19 + $0x58] sm:$0xff]  ;;  %v3211_v22 = vld [vmem:[%s3112_s19 + $0x150] sm:$0xff] }
  0x6d   : > { %v3214_v23 = vld [vmem:[%s3112_s19 + $0x158] sm:$0xff]  ;;  %v3219_v24 = vld [vmem:[%s3112_s19 + $0x60] sm:$0xff]  ;;  %v3222_v25 = vld [vmem:[%s3112_s19 + $0x68] sm:$0xff] }
  0x6e   : > { %304 = vadd.xlane.f32.xlu0 %v3139_v4  ;;  %v3227_v26 = vld [vmem:[%s3112_s19 + $0x160] sm:$0xff]  ;;  %v3230_v27 = vld [vmem:[%s3112_s19 + $0x168] sm:$0xff]  ;;  %v3235_v28 = vld [vmem:[%s3112_s19 + $0x70] sm:$0xff] }
  0x6f   : > { %306 = vadd.xlane.f32.xlu1 %v3142_v5  ;;  %v3238_v29 = vld [vmem:[%s3112_s19 + $0x78] sm:$0xff]  ;;  %v3243_v30 = vld [vmem:[%s3112_s19 + $0x170] sm:$0xff]  ;;  %v3251_v32 = vld [vmem:[%s3112_s19 + $0x80] sm:$0xff] }
  0x70   : > { %v3246_v31 = vld [vmem:[%s3112_s19 + $0x178] sm:$0xff]  ;;  %v3254_v33 = vld [vmem:[%s3112_s19 + $0x88] sm:$0xff]  ;;  %v3259_v34 = vld [vmem:[%s3112_s19 + $0x180] sm:$0xff] }
  0x71   : > { %v3262_v35 = vld [vmem:[%s3112_s19 + $0x188] sm:$0xff]  ;;  %v3267_v36 = vld [vmem:[%s3112_s19 + $0x90] sm:$0xff]  ;;  %v3270_v37 = vld [vmem:[%s3112_s19 + $0x98] sm:$0xff] }
  0x72   : > { %368 = vadd.xlane.f32.xlu0 %v3147_v6  ;;  %v3275_v38 = vld [vmem:[%s3112_s19 + $0x190] sm:$0xff]  ;;  %v3278_v39 = vld [vmem:[%s3112_s19 + $0x198] sm:$0xff]  ;;  %v3283_v40 = vld [vmem:[%s3112_s19 + $0xa0] sm:$0xff] }
  0x73   : > { %370 = vadd.xlane.f32.xlu1 %v3150_v7  ;;  %v3286_v41 = vld [vmem:[%s3112_s19 + $0xa8] sm:$0xff]  ;;  %v3291_v42 = vld [vmem:[%s3112_s19 + $0x1a0] sm:$0xff]  ;;  %v3299_v44 = vld [vmem:[%s3112_s19 + $0xb0] sm:$0xff] }
  0x74   : > { %v3294_v43 = vld [vmem:[%s3112_s19 + $0x1a8] sm:$0xff]  ;;  %v3302_v45 = vld [vmem:[%s3112_s19 + $0xb8] sm:$0xff]  ;;  %v3307_v46 = vld [vmem:[%s3112_s19 + $0x1b0] sm:$0xff] }
  0x75   : > { %v3310_v47 = vld [vmem:[%s3112_s19 + $0x1b8] sm:$0xff]  ;;  %v3315_v48 = vld [vmem:[%s3112_s19 + $0xc0] sm:$0xff]  ;;  %v3318_v49 = vld [vmem:[%s3112_s19 + $0xc8] sm:$0xff] }
  0x76   : > { %308 = vadd.xlane.f32.xlu0 %v3155_v8  ;;  %v3323_v50 = vld [vmem:[%s3112_s19 + $0x1c0] sm:$0xff]  ;;  %v3326_v51 = vld [vmem:[%s3112_s19 + $0x1c8] sm:$0xff]  ;;  %v3331_v52 = vld [vmem:[%s3112_s19 + $0xd0] sm:$0xff] }
  0x77   : > { %310 = vadd.xlane.f32.xlu1 %v3158_v9  ;;  %5174 = vst [vmem:[#allocation12_spill] sm:$0xff] %v3326_v51  ;;  %5175 = vst [vmem:[#allocation13_spill] sm:$0xff] %v3331_v52  ;;  %v3334_v53 = vld [vmem:[%s3112_s19 + $0xd8] sm:$0xff]  ;;  %v3339_v54 = vld [vmem:[%s3112_s19 + $0x1d0] sm:$0xff] }
  0x78   : > { %5176 = vst [vmem:[#allocation14_spill] sm:$0xff] %v3334_v53  ;;  %5177 = vst [vmem:[#allocation15_spill] sm:$0xff] %v3339_v54  ;;  %v3342_v55 = vld [vmem:[%s3112_s19 + $0x1d8] sm:$0xff]  ;;  %v3347_v56 = vld [vmem:[%s3112_s19 + $0xe0] sm:$0xff] }
  0x79   : > { %5178 = vst [vmem:[#allocation16_spill] sm:$0xff] %v3342_v55  ;;  %5179 = vst [vmem:[#allocation17_spill] sm:$0xff] %v3347_v56  ;;  %v3350_v57 = vld [vmem:[%s3112_s19 + $0xe8] sm:$0xff]  ;;  %v3355_v58 = vld [vmem:[%s3112_s19 + $0x1e0] sm:$0xff] }
  0x7a   : > { %372 = vadd.xlane.f32.xlu0 %v3163_v10  ;;  %5180 = vst [vmem:[#allocation18_spill] sm:$0xff] %v3350_v57  ;;  %5181 = vst [vmem:[#allocation19_spill] sm:$0xff] %v3355_v58  ;;  %v3358_v59 = vld [vmem:[%s3112_s19 + $0x1e8] sm:$0xff]  ;;  %v3363_v60 = vld [vmem:[%s3112_s19 + $0xf0] sm:$0xff] }
  0x7b   : > { %374 = vadd.xlane.f32.xlu1 %v3166_v11  ;;  %5182 = vst [vmem:[#allocation20_spill] sm:$0xff] %v3358_v59  ;;  %5183 = vst [vmem:[#allocation21_spill] sm:$0xff] %v3363_v60  ;;  %v3366_v61 = vld [vmem:[%s3112_s19 + $0xf8] sm:$0xff]  ;;  %v3371_v62 = vld [vmem:[%s3112_s19 + $0x1f0] sm:$0xff] }
  0x7c   : > { %5184 = vst [vmem:[#allocation22_spill] sm:$0xff] %v3366_v61  ;;  %v3374_v63 = vld [vmem:[%s3112_s19 + $0x1f8] sm:$0xff] }
  0x7d   : > { %5185 = vst [vmem:[#allocation23_spill] sm:$0xff] %v3374_v63 }
  0x7e   : > { %312 = vadd.xlane.f32.xlu0 %v3169_v12 }
  0x7f   : > { %314 = vadd.xlane.f32.xlu1 %v3174_v13 }
  0x82   : > { %376 = vadd.xlane.f32.xlu0 %v3177_v14 }
  0x83   : > { %378 = vadd.xlane.f32.xlu1 %v3182_v15 }
  0x86   : > { %316 = vadd.xlane.f32.xlu0 %v3187_v16 }
  0x87   : > { %318 = vadd.xlane.f32.xlu1 %v3190_v17 }
  0x8a   : > { %380 = vadd.xlane.f32.xlu0 %v3195_v18 }
  0x8b   : > { %382 = vadd.xlane.f32.xlu1 %v3198_v19 }
  0x8e   : > { %320 = vadd.xlane.f32.xlu0 %v3203_v20 }
  0x8f   : > { %322 = vadd.xlane.f32.xlu1 %v3206_v21 }
  0x92   : > { %384 = vadd.xlane.f32.xlu0 %v3211_v22 }
  0x93   : > { %386 = vadd.xlane.f32.xlu1 %v3214_v23 }
  0x96   : > { %324 = vadd.xlane.f32.xlu0 %v3219_v24 }
  0x97   : > { %326 = vadd.xlane.f32.xlu1 %v3222_v25 }
  0x9a   : > { %388 = vadd.xlane.f32.xlu0 %v3227_v26 }
  0x9b   : > { %390 = vadd.xlane.f32.xlu1 %v3230_v27 }
  0x9e   : > { %328 = vadd.xlane.f32.xlu0 %v3235_v28 }
  0x9f   : > { %330 = vadd.xlane.f32.xlu1 %v3238_v29 }
  0xa2   : > { %392 = vadd.xlane.f32.xlu0 %v3243_v30 }
  0xa3   : > { %394 = vadd.xlane.f32.xlu1 %v3246_v31 }
  0xa6   : > { %332 = vadd.xlane.f32.xlu0 %v3251_v32 }
  0xa7   : > { %334 = vadd.xlane.f32.xlu1 %v3254_v33 }
  0xaa   : > { %396 = vadd.xlane.f32.xlu0 %v3259_v34 }
  0xab   : > { %398 = vadd.xlane.f32.xlu1 %v3262_v35 }
  0xae   : > { %336 = vadd.xlane.f32.xlu0 %v3267_v36 }
  0xaf   : > { %338 = vadd.xlane.f32.xlu1 %v3270_v37 }
  0xb2   : > { %400 = vadd.xlane.f32.xlu0 %v3275_v38 }
  0xb3   : > { %402 = vadd.xlane.f32.xlu1 %v3278_v39 }
  0xb6   : > { %340 = vadd.xlane.f32.xlu0 %v3283_v40 }
  0xb7   : > { %342 = vadd.xlane.f32.xlu1 %v3286_v41 }
  0xba   : > { %404 = vadd.xlane.f32.xlu0 %v3291_v42 }
  0xbb   : > { %406 = vadd.xlane.f32.xlu1 %v3294_v43 }
  0xbe   : > { %344 = vadd.xlane.f32.xlu0 %v3299_v44 }
  0xbf   : > { %346 = vadd.xlane.f32.xlu1 %v3302_v45 }
  0xc2   : > { %408 = vadd.xlane.f32.xlu0 %v3307_v46 }
  0xc3   : > { %410 = vadd.xlane.f32.xlu1 %v3310_v47 }
  0xc6   : > { %348 = vadd.xlane.f32.xlu0 %v3315_v48 }
  0xc7   : > { %350 = vadd.xlane.f32.xlu1 %v3318_v49 }
  0xca   : > { %412 = vadd.xlane.f32.xlu0 %v3323_v50 }
  0xcb   : > { %414 = vadd.xlane.f32.xlu1 %v3326_v51 }
  0xce   : > { %352 = vadd.xlane.f32.xlu0 %v3331_v52 }
  0xcf   : > { %354 = vadd.xlane.f32.xlu1 %v3334_v53 }
  0xd2   : > { %416 = vadd.xlane.f32.xlu0 %v3339_v54 }
  0xd3   : > { %418 = vadd.xlane.f32.xlu1 %v3342_v55 }
  0xd6   : > { %356 = vadd.xlane.f32.xlu0 %v3347_v56 }
  0xd7   : > { %358 = vadd.xlane.f32.xlu1 %v3350_v57 }
  0xda   : > { %420 = vadd.xlane.f32.xlu0 %v3355_v58 }
  0xdb   : > { %422 = vadd.xlane.f32.xlu1 %v3358_v59 }
  0xde   : > { %360 = vadd.xlane.f32.xlu0 %v3363_v60 }
  0xdf   : > { %362 = vadd.xlane.f32.xlu1 %v3366_v61 }
  0xe2   : > { %424 = vadd.xlane.f32.xlu0 %v3371_v62 }
  0xe3   : > { %426 = vadd.xlane.f32.xlu1 %v3374_v63 }
  0xef   : > { %v301_v57 = vpop.xlane.xlu0 %300 }
  0xf0   : > { %v365_v58 = vpop.xlane.xlu1 %364  ;;  %v429_v56 = vmul.f32 0.0078125, %v301_v57 }
  0xf1   : > { %v461_v59 = vmul.f32 0.0078125, %v365_v58 }
  0xf2   : > { %v3379_v55 = vsub.f32 %v3123_v0, %v429_v56 }
  0xf3   : > { %v3382_v54 = vsub.f32 %v3126_v1, %v461_v59  ;;  %v303_v60 = vpop.xlane.xlu0 %302 }
  0xf4   : > { %v367_v61 = vpop.xlane.xlu1 %366  ;;  %v430_v53 = vmul.f32 0.0078125, %v303_v60  ;;  %v557_v52 = vmul.f32 %v3379_v55, %v3379_v55 }
  0xf5   : > { %5186 = vst [vmem:[#allocation24_spill] sm:$0xff] %v3382_v54  ;;  %v462_v51 = vmul.f32 0.0078125, %v367_v61  ;;  %v589_v63 = vmul.f32 %v3382_v54, %v3382_v54 }
  0xf6   : > { %621 = vadd.xlane.f32.xlu0 %v557_v52  ;;  %v3389_v57 = vsub.f32 %v3131_v2, %v430_v53 }
  0xf7   : > { %v3392_v0 = vsub.f32 %v3134_v3, %v462_v51  ;;  %v305_v56 = vpop.xlane.xlu0 %304 }
  0xf8   : > { %v307_v1 = vpop.xlane.xlu1 %306  ;;  %v431_v58 = vmul.f32 0.0078125, %v305_v56  ;;  %v558_v59 = vmul.f32 %v3389_v57, %v3389_v57 }
  0xf9   : > { %v432_v60 = vmul.f32 0.0078125, %v307_v1  ;;  %v590_v52 = vmul.f32 %v3392_v0, %v3392_v0 }
  0xfa   : > { %685 = vadd.xlane.f32.xlu0 %v589_v63  ;;  %623 = vadd.xlane.f32.xlu1 %v558_v59  ;;  %v3399_v61 = vsub.f32 %v3139_v4, %v431_v58 }
  0xfb   : > { %v3402_v2 = vsub.f32 %v3142_v5, %v432_v60  ;;  %v369_v3 = vpop.xlane.xlu0 %368 }
  0xfc   : > { %v371_v51 = vpop.xlane.xlu1 %370  ;;  %v463_v53 = vmul.f32 0.0078125, %v369_v3  ;;  %v559_v56 = vmul.f32 %v3399_v61, %v3399_v61 }
  0xfd   : > { %v464_v54 = vmul.f32 0.0078125, %v371_v51  ;;  %v560_v63 = vmul.f32 %v3402_v2, %v3402_v2 }
  0xfe   : > { %687 = vadd.xlane.f32.xlu1 %v590_v52  ;;  %625 = vadd.xlane.f32.xlu0 %v559_v56  ;;  %v3409_v1 = vsub.f32 %v3147_v6, %v463_v53 }
  0xff   : > { %v3412_v4 = vsub.f32 %v3150_v7, %v464_v54  ;;  %v309_v5 = vpop.xlane.xlu0 %308 }
 0x100   : > { %v311_v58 = vpop.xlane.xlu1 %310  ;;  %v433_v59 = vmul.f32 0.0078125, %v309_v5  ;;  %v591_v60 = vmul.f32 %v3409_v1, %v3409_v1 }
 0x101   : > { %v434_v3 = vmul.f32 0.0078125, %v311_v58  ;;  %v592_v52 = vmul.f32 %v3412_v4, %v3412_v4 }
 0x102   : > { %627 = vadd.xlane.f32.xlu1 %v560_v63  ;;  %689 = vadd.xlane.f32.xlu0 %v591_v60  ;;  %v3419_v51 = vsub.f32 %v3155_v8, %v433_v59 }
 0x103   : > { %v3422_v6 = vsub.f32 %v3158_v9, %v434_v3  ;;  %v373_v7 = vpop.xlane.xlu0 %372 }
 0x104   : > { %v375_v54 = vpop.xlane.xlu1 %374  ;;  %v465_v53 = vmul.f32 0.0078125, %v373_v7  ;;  %v561_v56 = vmul.f32 %v3419_v51, %v3419_v51 }
 0x105   : > { %v466_v5 = vmul.f32 0.0078125, %v375_v54  ;;  %v562_v63 = vmul.f32 %v3422_v6, %v3422_v6 }
 0x106   : > { %691 = vadd.xlane.f32.xlu1 %v592_v52  ;;  %629 = vadd.xlane.f32.xlu0 %v561_v56  ;;  %v3429_v58 = vsub.f32 %v3163_v10, %v465_v53 }
 0x107   : > { %v3432_v8 = vsub.f32 %v3166_v11, %v466_v5  ;;  %v313_v9 = vpop.xlane.xlu0 %312 }
 0x108   : > { %v315_v59 = vpop.xlane.xlu1 %314  ;;  %v435_v60 = vmul.f32 0.0078125, %v313_v9  ;;  %v593_v3 = vmul.f32 %v3429_v58, %v3429_v58 }
 0x109   : > { %v436_v7 = vmul.f32 0.0078125, %v315_v59  ;;  %v594_v52 = vmul.f32 %v3432_v8, %v3432_v8 }
 0x10a   : > { %631 = vadd.xlane.f32.xlu1 %v562_v63  ;;  %693 = vadd.xlane.f32.xlu0 %v593_v3  ;;  %v3439_v54 = vsub.f32 %v3169_v12, %v435_v60 }
 0x10b   : > { %v3442_v10 = vsub.f32 %v3174_v13, %v436_v7  ;;  %v377_v11 = vpop.xlane.xlu0 %376 }
 0x10c   : > { %v379_v53 = vpop.xlane.xlu1 %378  ;;  %v467_v56 = vmul.f32 0.0078125, %v377_v11  ;;  %v563_v5 = vmul.f32 %v3439_v54, %v3439_v54 }
 0x10d   : > { %v468_v9 = vmul.f32 0.0078125, %v379_v53  ;;  %v564_v63 = vmul.f32 %v3442_v10, %v3442_v10 }
 0x10e   : > { %695 = vadd.xlane.f32.xlu1 %v594_v52  ;;  %633 = vadd.xlane.f32.xlu0 %v563_v5  ;;  %v3449_v59 = vsub.f32 %v3177_v14, %v467_v56 }
 0x10f   : > { %v3452_v12 = vsub.f32 %v3182_v15, %v468_v9  ;;  %v317_v13 = vpop.xlane.xlu0 %316 }
 0x110   : > { %v319_v60 = vpop.xlane.xlu1 %318  ;;  %v437_v3 = vmul.f32 0.0078125, %v317_v13  ;;  %v595_v7 = vmul.f32 %v3449_v59, %v3449_v59 }
 0x111   : > { %v438_v11 = vmul.f32 0.0078125, %v319_v60  ;;  %v596_v52 = vmul.f32 %v3452_v12, %v3452_v12 }
 0x112   : > { %635 = vadd.xlane.f32.xlu1 %v564_v63  ;;  %697 = vadd.xlane.f32.xlu0 %v595_v7  ;;  %v3459_v53 = vsub.f32 %v3187_v16, %v437_v3  ;;  %v2459_v7 = vld [vmem:[#allocation7 + $0x38] sm:$0xff]  }
 0x113   : > { %v3462_v14 = vsub.f32 %v3190_v17, %v438_v11  ;;  %v381_v15 = vpop.xlane.xlu0 %380  ;;  %2297 = vmatprep.subr.bf16.mxu0 %v2459_v7  ;;  %2377 = vmatprep.subr.bf16.mxu1 %v2459_v7 }
 0x114   : > { %5187 = vst [vmem:[#allocation25_spill] sm:$0xff] %v3459_v53  ;;  %v383_v56 = vpop.xlane.xlu1 %382  ;;  %v469_v5 = vmul.f32 0.0078125, %v381_v15  ;;  %v565_v9 = vmul.f32 %v3459_v53, %v3459_v53  ;;  %2298 = vmatpush3.bf16.msra.mxu0 %v2459_v7  ;;  %2385 = vmatpush3.bf16.msra.mxu1 %v2459_v7 }
 0x115   : > { %v470_v13 = vmul.f32 0.0078125, %v383_v56  ;;  %v566_v63 = vmul.f32 %v3462_v14, %v3462_v14 }
 0x116   : > { %699 = vadd.xlane.f32.xlu1 %v596_v52  ;;  %637 = vadd.xlane.f32.xlu0 %v565_v9  ;;  %v3469_v60 = vsub.f32 %v3195_v18, %v469_v5 }
 0x117   : > { %v3472_v16 = vsub.f32 %v3198_v19, %v470_v13  ;;  %v321_v17 = vpop.xlane.xlu0 %320 }
 0x118   : > { %v323_v3 = vpop.xlane.xlu1 %322  ;;  %v439_v11 = vmul.f32 0.0078125, %v321_v17  ;;  %v597_v15 = vmul.f32 %v3469_v60, %v3469_v60 }
 0x119   : > { %v440_v53 = vmul.f32 0.0078125, %v323_v3  ;;  %v598_v52 = vmul.f32 %v3472_v16, %v3472_v16 }
 0x11a   : > { %639 = vadd.xlane.f32.xlu1 %v566_v63  ;;  %701 = vadd.xlane.f32.xlu0 %v597_v15  ;;  %v3479_v18 = vsub.f32 %v3203_v20, %v439_v11 }
 0x11b   : > { %v3482_v19 = vsub.f32 %v3206_v21, %v440_v53  ;;  %v385_v56 = vpop.xlane.xlu0 %384 }
 0x11c   : > { %v387_v5 = vpop.xlane.xlu1 %386  ;;  %v471_v9 = vmul.f32 0.0078125, %v385_v56  ;;  %v567_v13 = vmul.f32 %v3479_v18, %v3479_v18  ;;  %v2460_v56 = vld [vmem:[#allocation7 + $0x30] sm:$0xff]  }
 0x11d   : > { %v472_v17 = vmul.f32 0.0078125, %v387_v5  ;;  %v568_v63 = vmul.f32 %v3482_v19, %v3482_v19  ;;  %2299 = vmatprep.subr.bf16.mxu0 %v2460_v56  ;;  %2378 = vmatprep.subr.bf16.mxu1 %v2460_v56 }
 0x11e   : > { %703 = vadd.xlane.f32.xlu1 %v598_v52  ;;  %641 = vadd.xlane.f32.xlu0 %v567_v13  ;;  %v3489_v20 = vsub.f32 %v3211_v22, %v471_v9 }
 0x11f   : > { %v3492_v21 = vsub.f32 %v3214_v23, %v472_v17  ;;  %v325_v53 = vpop.xlane.xlu0 %324  ;;  %2300 = vmatpush3.bf16.msra.mxu0 %v2460_v56  ;;  %2386 = vmatpush3.bf16.msra.mxu1 %v2460_v56 }
 0x120   : > { %v327_v3 = vpop.xlane.xlu1 %326  ;;  %v441_v11 = vmul.f32 0.0078125, %v325_v53  ;;  %v599_v7 = vmul.f32 %v3489_v20, %v3489_v20 }
 0x121   : > { %v442_v15 = vmul.f32 0.0078125, %v327_v3  ;;  %v600_v52 = vmul.f32 %v3492_v21, %v3492_v21 }
 0x122   : > { %643 = vadd.xlane.f32.xlu1 %v568_v63  ;;  %705 = vadd.xlane.f32.xlu0 %v599_v7  ;;  %v3499_v5 = vsub.f32 %v3219_v24, %v441_v11 }
 0x123   : > { %v3502_v22 = vsub.f32 %v3222_v25, %v442_v15  ;;  %v389_v23 = vpop.xlane.xlu0 %388 }
 0x124   : > { %v391_v9 = vpop.xlane.xlu1 %390  ;;  %v473_v13 = vmul.f32 0.0078125, %v389_v23  ;;  %v569_v17 = vmul.f32 %v3499_v5, %v3499_v5 }
 0x125   : > { %5188 = vst [vmem:[#allocation26_spill] sm:$0xff] %v3502_v22  ;;  %v474_v53 = vmul.f32 0.0078125, %v391_v9  ;;  %v570_v24 = vmul.f32 %v3502_v22, %v3502_v22  ;;  %v2461_v9 = vld [vmem:[#allocation7 + $0x28] sm:$0xff]  }
 0x126   : > { %707 = vadd.xlane.f32.xlu1 %v600_v52  ;;  %645 = vadd.xlane.f32.xlu0 %v569_v17  ;;  %v3509_v63 = vsub.f32 %v3227_v26, %v473_v13 }
 0x127   : > { %v3512_v25 = vsub.f32 %v3230_v27, %v474_v53  ;;  %v329_v3 = vpop.xlane.xlu0 %328  ;;  %2301 = vmatprep.subr.bf16.mxu0 %v2461_v9  ;;  %2379 = vmatprep.subr.bf16.mxu1 %v2461_v9 }
 0x128   : > { %5189 = vst [vmem:[#allocation27_spill] sm:$0xff] %v3509_v63  ;;  %v331_v11 = vpop.xlane.xlu1 %330  ;;  %v443_v7 = vmul.f32 0.0078125, %v329_v3  ;;  %v601_v15 = vmul.f32 %v3509_v63, %v3509_v63  ;;  %2302 = vmatpush3.bf16.msra.mxu0 %v2461_v9  ;;  %2387 = vmatpush3.bf16.msra.mxu1 %v2461_v9 }
 0x129   : > { %5190 = vst [vmem:[#allocation28_spill] sm:$0xff] %v3512_v25  ;;  %v444_v23 = vmul.f32 0.0078125, %v331_v11  ;;  %v602_v56 = vmul.f32 %v3512_v25, %v3512_v25 }
 0x12a   : > { %647 = vadd.xlane.f32.xlu1 %v570_v24  ;;  %709 = vadd.xlane.f32.xlu0 %v601_v15  ;;  %v3519_v52 = vsub.f32 %v3235_v28, %v443_v7  ;;  %v2462_v24 = vld [vmem:[#allocation7 + $0x20] sm:$0xff]  }
 0x12b   : > { %v3522_v26 = vsub.f32 %v3238_v29, %v444_v23  ;;  %v393_v27 = vpop.xlane.xlu0 %392  ;;  %2303 = vmatprep.subr.bf16.mxu0 %v2462_v24  ;;  %2380 = vmatprep.subr.bf16.mxu1 %v2462_v24 }
 0x12c   : > { %5191 = vst [vmem:[#allocation29_spill] sm:$0xff] %v3519_v52  ;;  %v395_v13 = vpop.xlane.xlu1 %394  ;;  %v475_v17 = vmul.f32 0.0078125, %v393_v27  ;;  %v571_v53 = vmul.f32 %v3519_v52, %v3519_v52  ;;  %2304 = vmatpush3.bf16.msra.mxu0 %v2462_v24  ;;  %2388 = vmatpush3.bf16.msra.mxu1 %v2462_v24 }
 0x12d   : > { %5192 = vst [vmem:[#allocation30_spill] sm:$0xff] %v3522_v26  ;;  %v476_v3 = vmul.f32 0.0078125, %v395_v13  ;;  %v572_v29 = vmul.f32 %v3522_v26, %v3522_v26 }
 0x12e   : > { %v3527_v11 = vsub.f32 %v3243_v30, %v475_v17  ;;  %711 = vadd.xlane.f32.xlu1 %v602_v56  ;;  %649 = vadd.xlane.f32.xlu0 %v571_v53  ;;  %v2463_v30 = vld [vmem:[#allocation7 + $0x18] sm:$0xff]  }
 0x12f   : > { %v3530_v28 = vsub.f32 %v3246_v31, %v476_v3  ;;  %v333_v7 = vpop.xlane.xlu0 %332  ;;  %2305 = vmatprep.subr.bf16.mxu0 %v2463_v30  ;;  %2381 = vmatprep.subr.bf16.mxu1 %v2463_v30 }
 0x130   : > { %5193 = vst [vmem:[#allocation31_spill] sm:$0xff] %v3527_v11  ;;  %v335_v15 = vpop.xlane.xlu1 %334  ;;  %v445_v23 = vmul.f32 0.0078125, %v333_v7  ;;  %v603_v27 = vmul.f32 %v3527_v11, %v3527_v11  ;;  %2306 = vmatpush3.bf16.msra.mxu0 %v2463_v30  ;;  %2389 = vmatpush3.bf16.msra.mxu1 %v2463_v30 }
 0x131   : > { %5194 = vst [vmem:[#allocation32_spill] sm:$0xff] %v3530_v28  ;;  %v446_v9 = vmul.f32 0.0078125, %v335_v15  ;;  %v604_v13 = vmul.f32 %v3530_v28, %v3530_v28 }
 0x132   : > { %v3537_v56 = vsub.f32 %v3251_v32, %v445_v23  ;;  %651 = vadd.xlane.f32.xlu1 %v572_v29  ;;  %713 = vadd.xlane.f32.xlu0 %v603_v27  ;;  %v2464_v32 = vld [vmem:[#allocation7 + $0x10] sm:$0xff]  }
 0x133   : > { %v3540_v31 = vsub.f32 %v3254_v33, %v446_v9  ;;  %v397_v17 = vpop.xlane.xlu0 %396  ;;  %2307 = vmatprep.subr.bf16.mxu0 %v2464_v32  ;;  %2382 = vmatprep.subr.bf16.mxu1 %v2464_v32 }
 0x134   : > { %5195 = vst [vmem:[#allocation33_spill] sm:$0xff] %v3537_v56  ;;  %v399_v53 = vpop.xlane.xlu1 %398  ;;  %v477_v3 = vmul.f32 0.0078125, %v397_v17  ;;  %v573_v7 = vmul.f32 %v3537_v56, %v3537_v56  ;;  %2308 = vmatpush3.bf16.msra.mxu0 %v2464_v32  ;;  %2390 = vmatpush3.bf16.msra.mxu1 %v2464_v32 }
 0x135   : > { %5196 = vst [vmem:[#allocation34_spill] sm:$0xff] %v3540_v31  ;;  %v478_v24 = vmul.f32 0.0078125, %v399_v53  ;;  %v574_v15 = vmul.f32 %v3540_v31, %v3540_v31 }
 0x136   : > { %v3547_v29 = vsub.f32 %v3259_v34, %v477_v3  ;;  %715 = vadd.xlane.f32.xlu1 %v604_v13  ;;  %653 = vadd.xlane.f32.xlu0 %v573_v7  ;;  %v2465_v34 = vld [vmem:[#allocation7 + $0x8] sm:$0xff]  }
 0x137   : > { %v3550_v33 = vsub.f32 %v3262_v35, %v478_v24  ;;  %v337_v23 = vpop.xlane.xlu0 %336  ;;  %2309 = vmatprep.subr.bf16.mxu0 %v2465_v34  ;;  %2383 = vmatprep.subr.bf16.mxu1 %v2465_v34 }
 0x138   : > { %5197 = vst [vmem:[#allocation35_spill] sm:$0xff] %v3547_v29  ;;  %v339_v27 = vpop.xlane.xlu1 %338  ;;  %v447_v9 = vmul.f32 0.0078125, %v337_v23  ;;  %v605_v17 = vmul.f32 %v3547_v29, %v3547_v29  ;;  %2310 = vmatpush3.bf16.msra.mxu0 %v2465_v34  ;;  %2391 = vmatpush3.bf16.msra.mxu1 %v2465_v34 }
 0x139   : > { %5198 = vst [vmem:[#allocation36_spill] sm:$0xff] %v3550_v33  ;;  %v448_v30 = vmul.f32 0.0078125, %v339_v27  ;;  %v606_v53 = vmul.f32 %v3550_v33, %v3550_v33 }
 0x13a   : > { %v3557_v13 = vsub.f32 %v3267_v36, %v447_v9  ;;  %655 = vadd.xlane.f32.xlu1 %v574_v15  ;;  %717 = vadd.xlane.f32.xlu0 %v605_v17 }
 0x13b   : > { %v3560_v35 = vsub.f32 %v3270_v37, %v448_v30  ;;  %v401_v3 = vpop.xlane.xlu0 %400 }
 0x13c   : > { %5199 = vst [vmem:[#allocation37_spill] sm:$0xff] %v3557_v13  ;;  %v403_v7 = vpop.xlane.xlu1 %402  ;;  %v479_v24 = vmul.f32 0.0078125, %v401_v3  ;;  %v575_v23 = vmul.f32 %v3557_v13, %v3557_v13 }
 0x13d   : > { %5200 = vst [vmem:[#allocation38_spill] sm:$0xff] %v3560_v35  ;;  %v480_v32 = vmul.f32 0.0078125, %v403_v7  ;;  %v576_v15 = vmul.f32 %v3560_v35, %v3560_v35 }
 0x13e   : > { %v3567_v36 = vsub.f32 %v3275_v38, %v479_v24  ;;  %719 = vadd.xlane.f32.xlu1 %v606_v53  ;;  %657 = vadd.xlane.f32.xlu0 %v575_v23 }
 0x13f   : > { %v3570_v37 = vsub.f32 %v3278_v39, %v480_v32  ;;  %v341_v27 = vpop.xlane.xlu0 %340 }
 0x140   : > { %5201 = vst [vmem:[#allocation39_spill] sm:$0xff] %v3567_v36  ;;  %v343_v9 = vpop.xlane.xlu1 %342  ;;  %v449_v17 = vmul.f32 0.0078125, %v341_v27  ;;  %v607_v30 = vmul.f32 %v3567_v36, %v3567_v36 }
 0x141   : > { %5202 = vst [vmem:[#allocation40_spill] sm:$0xff] %v3570_v37  ;;  %v450_v3 = vmul.f32 0.0078125, %v343_v9  ;;  %v608_v39 = vmul.f32 %v3570_v37, %v3570_v37 }
 0x142   : > { %v3577_v34 = vsub.f32 %v3283_v40, %v449_v17  ;;  %659 = vadd.xlane.f32.xlu1 %v576_v15  ;;  %721 = vadd.xlane.f32.xlu0 %v607_v30 }
 0x143   : > { %v3580_v38 = vsub.f32 %v3286_v41, %v450_v3  ;;  %v405_v53 = vpop.xlane.xlu0 %404 }
 0x144   : > { %5203 = vst [vmem:[#allocation41_spill] sm:$0xff] %v3577_v34  ;;  %v407_v7 = vpop.xlane.xlu1 %406  ;;  %v481_v24 = vmul.f32 0.0078125, %v405_v53  ;;  %v577_v23 = vmul.f32 %v3577_v34, %v3577_v34 }
 0x145   : > { %5204 = vst [vmem:[#allocation42_spill] sm:$0xff] %v3580_v38  ;;  %v482_v32 = vmul.f32 0.0078125, %v407_v7  ;;  %v578_v41 = vmul.f32 %v3580_v38, %v3580_v38 }
 0x146   : > { %v3587_v27 = vsub.f32 %v3291_v42, %v481_v24  ;;  %723 = vadd.xlane.f32.xlu1 %v608_v39  ;;  %661 = vadd.xlane.f32.xlu0 %v577_v23 }
 0x147   : > { %v3590_v40 = vsub.f32 %v3294_v43, %v482_v32  ;;  %v345_v15 = vpop.xlane.xlu0 %344 }
 0x148   : > { %5205 = vst [vmem:[#allocation43_spill] sm:$0xff] %v3587_v27  ;;  %v347_v9 = vpop.xlane.xlu1 %346  ;;  %v451_v17 = vmul.f32 0.0078125, %v345_v15  ;;  %v609_v30 = vmul.f32 %v3587_v27, %v3587_v27 }
 0x149   : > { %5206 = vst [vmem:[#allocation44_spill] sm:$0xff] %v3590_v40  ;;  %v452_v3 = vmul.f32 0.0078125, %v347_v9  ;;  %v610_v43 = vmul.f32 %v3590_v40, %v3590_v40 }
 0x14a   : > { %v3597_v53 = vsub.f32 %v3299_v44, %v451_v17  ;;  %663 = vadd.xlane.f32.xlu1 %v578_v41  ;;  %725 = vadd.xlane.f32.xlu0 %v609_v30  ;;  %v2466_v17 = vld [vmem:[#allocation7] sm:$0xff]  }
 0x14b   : > { %v3600_v42 = vsub.f32 %v3302_v45, %v452_v3  ;;  %v409_v39 = vpop.xlane.xlu0 %408  ;;  %2311 = vmatprep.subr.bf16.mxu0 %v2466_v17  ;;  %2384 = vmatprep.subr.bf16.mxu1 %v2466_v17 }
 0x14c   : > { %5207 = vst [vmem:[#allocation45_spill] sm:$0xff] %v3597_v53  ;;  %v411_v7 = vpop.xlane.xlu1 %410  ;;  %v483_v24 = vmul.f32 0.0078125, %v409_v39  ;;  %v579_v23 = vmul.f32 %v3597_v53, %v3597_v53  ;;  %2312 = vmatpush3.bf16.msra.mxu0 %v2466_v17  ;;  %2392 = vmatpush3.bf16.msra.mxu1 %v2466_v17 }
 0x14d   : > { %5208 = vst [vmem:[#allocation46_spill] sm:$0xff] %v3600_v42  ;;  %v484_v32 = vmul.f32 0.0078125, %v411_v7  ;;  %v580_v45 = vmul.f32 %v3600_v42, %v3600_v42 }
 0x14e   : > { %v3607_v15 = vsub.f32 %v3307_v46, %v483_v24  ;;  %727 = vadd.xlane.f32.xlu1 %v610_v43  ;;  %665 = vadd.xlane.f32.xlu0 %v579_v23 }
 0x14f   : > { %v3610_v44 = vsub.f32 %v3310_v47, %v484_v32  ;;  %v349_v41 = vpop.xlane.xlu0 %348 }
 0x150   : > { %5209 = vst [vmem:[#allocation47_spill] sm:$0xff] %v3607_v15  ;;  %v351_v9 = vpop.xlane.xlu1 %350  ;;  %v453_v30 = vmul.f32 0.0078125, %v349_v41  ;;  %v611_v3 = vmul.f32 %v3607_v15, %v3607_v15 }
 0x151   : > { %5210 = vst [vmem:[#allocation48_spill] sm:$0xff] %v3610_v44  ;;  %v454_v39 = vmul.f32 0.0078125, %v351_v9  ;;  %v612_v43 = vmul.f32 %v3610_v44, %v3610_v44 }
 0x152   : > { %v3617_v46 = vsub.f32 %v3315_v48, %v453_v30  ;;  %667 = vadd.xlane.f32.xlu1 %v580_v45  ;;  %729 = vadd.xlane.f32.xlu0 %v611_v3  ;;  %v5214_v45 = vld [vmem:[#allocation12_spill] sm:$0xff] }
 0x153   : > { %v3620_v47 = vsub.f32 %v3318_v49, %v454_v39  ;;  %v413_v7 = vpop.xlane.xlu0 %412 }
 0x154   : > { %5211 = vst [vmem:[#allocation49_spill] sm:$0xff] %v3617_v46  ;;  %v415_v24 = vpop.xlane.xlu1 %414  ;;  %v485_v23 = vmul.f32 0.0078125, %v413_v7  ;;  %v581_v32 = vmul.f32 %v3617_v46, %v3617_v46  ;;  %v5216_v46 = vld [vmem:[#allocation13_spill] sm:$0xff] }
 0x155   : > { %5212 = vst [vmem:[#allocation50_spill] sm:$0xff] %v3620_v47  ;;  %v486_v41 = vmul.f32 0.0078125, %v415_v24  ;;  %v582_v9 = vmul.f32 %v3620_v47, %v3620_v47 }
 0x156   : > { %v3627_v48 = vsub.f32 %v3323_v50, %v485_v23  ;;  %731 = vadd.xlane.f32.xlu1 %v612_v43  ;;  %669 = vadd.xlane.f32.xlu0 %v581_v32  ;;  %v5218_v50 = vld [vmem:[#allocation14_spill] sm:$0xff] }
 0x157   : > { %v3630_v49 = vsub.f32 %v5214_v45, %v486_v41  ;;  %v353_v30 = vpop.xlane.xlu0 %352 }
 0x158   : > { %5213 = vst [vmem:[#allocation51_spill] sm:$0xff] %v3627_v48  ;;  %v355_v3 = vpop.xlane.xlu1 %354  ;;  %v455_v39 = vmul.f32 0.0078125, %v353_v30  ;;  %v613_v17 = vmul.f32 %v3627_v48, %v3627_v48  ;;  %v5220_v48 = vld [vmem:[#allocation15_spill] sm:$0xff] }
 0x159   : > { %5215 = vst [vmem:[#allocation12_spill] sm:$0xff] %v3630_v49  ;;  %v456_v7 = vmul.f32 0.0078125, %v355_v3  ;;  %v614_v23 = vmul.f32 %v3630_v49, %v3630_v49 }
 0x15a   : > { %v3637_v24 = vsub.f32 %v5216_v46, %v455_v39  ;;  %671 = vadd.xlane.f32.xlu1 %v582_v9  ;;  %733 = vadd.xlane.f32.xlu0 %v613_v17  ;;  %v5222_v46 = vld [vmem:[#allocation16_spill] sm:$0xff] }
 0x15b   : > { %v3640_v43 = vsub.f32 %v5218_v50, %v456_v7  ;;  %v417_v32 = vpop.xlane.xlu0 %416 }
 0x15c   : > { %5217 = vst [vmem:[#allocation13_spill] sm:$0xff] %v3637_v24  ;;  %v419_v41 = vpop.xlane.xlu1 %418  ;;  %v487_v45 = vmul.f32 0.0078125, %v417_v32  ;;  %v583_v30 = vmul.f32 %v3637_v24, %v3637_v24  ;;  %v5224_v24 = vld [vmem:[#allocation17_spill] sm:$0xff] }
 0x15d   : > { %5219 = vst [vmem:[#allocation14_spill] sm:$0xff] %v3640_v43  ;;  %v488_v47 = vmul.f32 0.0078125, %v419_v41  ;;  %v584_v39 = vmul.f32 %v3640_v43, %v3640_v43 }
 0x15e   : > { %v3647_v3 = vsub.f32 %v5220_v48, %v487_v45  ;;  %735 = vadd.xlane.f32.xlu1 %v614_v23  ;;  %673 = vadd.xlane.f32.xlu0 %v583_v30  ;;  %v5226_v48 = vld [vmem:[#allocation18_spill] sm:$0xff] }
 0x15f   : > { %v3650_v9 = vsub.f32 %v5222_v46, %v488_v47  ;;  %v357_v17 = vpop.xlane.xlu0 %356 }
 0x160   : > { %5221 = vst [vmem:[#allocation15_spill] sm:$0xff] %v3647_v3  ;;  %v359_v7 = vpop.xlane.xlu1 %358  ;;  %v457_v50 = vmul.f32 0.0078125, %v357_v17  ;;  %v615_v32 = vmul.f32 %v3647_v3, %v3647_v3  ;;  %v5228_v3 = vld [vmem:[#allocation19_spill] sm:$0xff] }
 0x161   : > { %5223 = vst [vmem:[#allocation16_spill] sm:$0xff] %v3650_v9  ;;  %v458_v49 = vmul.f32 0.0078125, %v359_v7  ;;  %v616_v47 = vmul.f32 %v3650_v9, %v3650_v9 }
 0x162   : > { %v3657_v41 = vsub.f32 %v5224_v24, %v457_v50  ;;  %675 = vadd.xlane.f32.xlu1 %v584_v39  ;;  %737 = vadd.xlane.f32.xlu0 %v615_v32  ;;  %v5230_v24 = vld [vmem:[#allocation20_spill] sm:$0xff] }
 0x163   : > { %v3660_v23 = vsub.f32 %v5226_v48, %v458_v49  ;;  %v421_v45 = vpop.xlane.xlu0 %420 }
 0x164   : > { %5225 = vst [vmem:[#allocation17_spill] sm:$0xff] %v3657_v41  ;;  %v423_v30 = vpop.xlane.xlu1 %422  ;;  %v489_v46 = vmul.f32 0.0078125, %v421_v45  ;;  %v585_v17 = vmul.f32 %v3657_v41, %v3657_v41  ;;  %v5232_v41 = vld [vmem:[#allocation21_spill] sm:$0xff] }
 0x165   : > { %5227 = vst [vmem:[#allocation18_spill] sm:$0xff] %v3660_v23  ;;  %v490_v43 = vmul.f32 0.0078125, %v423_v30  ;;  %v586_v49 = vmul.f32 %v3660_v23, %v3660_v23 }
 0x166   : > { %v3667_v7 = vsub.f32 %v5228_v3, %v489_v46  ;;  %739 = vadd.xlane.f32.xlu1 %v616_v47  ;;  %677 = vadd.xlane.f32.xlu0 %v585_v17  ;;  %v5234_v3 = vld [vmem:[#allocation22_spill] sm:$0xff] }
 0x167   : > { %v3670_v39 = vsub.f32 %v5230_v24, %v490_v43  ;;  %v361_v50 = vpop.xlane.xlu0 %360 }
 0x168   : > { %5229 = vst [vmem:[#allocation19_spill] sm:$0xff] %v3667_v7  ;;  %v363_v32 = vpop.xlane.xlu1 %362  ;;  %v459_v48 = vmul.f32 0.0078125, %v361_v50  ;;  %v617_v45 = vmul.f32 %v3667_v7, %v3667_v7 }
 0x169   : > { %5231 = vst [vmem:[#allocation20_spill] sm:$0xff] %v3670_v39  ;;  %v460_v9 = vmul.f32 0.0078125, %v363_v32  ;;  %v618_v43 = vmul.f32 %v3670_v39, %v3670_v39 }
 0x16a   : > { %v3677_v30 = vsub.f32 %v5232_v41, %v459_v48  ;;  %679 = vadd.xlane.f32.xlu1 %v586_v49  ;;  %741 = vadd.xlane.f32.xlu0 %v617_v45  ;;  %v5237_v41 = vld [vmem:[#allocation23_spill] sm:$0xff] }
 0x16b   : > { %v3680_v47 = vsub.f32 %v5234_v3, %v460_v9  ;;  %v425_v46 = vpop.xlane.xlu0 %424 }
 0x16c   : > { %5233 = vst [vmem:[#allocation21_spill] sm:$0xff] %v3677_v30  ;;  %v427_v17 = vpop.xlane.xlu1 %426  ;;  %v491_v24 = vmul.f32 0.0078125, %v425_v46  ;;  %v587_v50 = vmul.f32 %v3677_v30, %v3677_v30 }
 0x16d   : > { %5235 = vst [vmem:[#allocation22_spill] sm:$0xff] %v3680_v47  ;;  %v492_v23 = vmul.f32 0.0078125, %v427_v17  ;;  %v588_v9 = vmul.f32 %v3680_v47, %v3680_v47 }
 0x16e   : > { %v3687_v32 = vsub.f32 %v3371_v62, %v491_v24  ;;  %743 = vadd.xlane.f32.xlu1 %v618_v43  ;;  %681 = vadd.xlane.f32.xlu0 %v587_v50 }
 0x16f   : > { %v3690_v49 = vsub.f32 %v5237_v41, %v492_v23 }
 0x170   : > { %5236 = vst [vmem:[#allocation52_spill] sm:$0xff] %v3687_v32  ;;  %v619_v48 = vmul.f32 %v3687_v32, %v3687_v32 }
 0x171   : > { %5238 = vst [vmem:[#allocation23_spill] sm:$0xff] %v3690_v49  ;;  %v620_v45 = vmul.f32 %v3690_v49, %v3690_v49 }
 0x172   : > { %683 = vadd.xlane.f32.xlu1 %v588_v9  ;;  %745 = vadd.xlane.f32.xlu0 %v619_v48 }
 0x176   : > { %747 = vadd.xlane.f32.xlu1 %v620_v45 }
 0x17f   : > { %v622_v3 = vpop.xlane.xlu0 %621 }
 0x180   : > { %v3698_v43 = vmul.f32 0.007874016, %v622_v3 }
 0x182   : > { %2467 = vrsqrt.f32 %v3698_v43  ;;  %vm815_vm0 = vcmp.eq.f32.partialorder %v3698_v43, inf  ;;  %vm817_vm1 = vcmp.eq.f32.partialorder %v3698_v43, 0.0  ;;  %v818_v44 = vand.u32 2147483648, %v3698_v43 }
 0x183   : > { %v624_v62 = vpop.xlane.xlu1 %623  ;;  %v686_v46 = vpop.xlane.xlu0 %685 }
 0x184   : > { %v3702_v50 = vmul.f32 0.007874016, %v624_v62  ;;  %v3705_v41 = vmul.f32 0.007874016, %v686_v46 }
 0x186   : > { %vm822_vm2 = vcmp.eq.f32.partialorder %v3702_v50, inf  ;;  %vm1039_vm3 = vcmp.eq.f32.partialorder %v3705_v41, inf  ;;  %vm824_vm8 = vcmp.eq.f32.partialorder %v3702_v50, 0.0 }
 0x187   : > { %v688_v17 = vpop.xlane.xlu1 %687  ;;  %v626_v23 = vpop.xlane.xlu0 %625 }
 0x188   : > { %v3700_v24 = vmul.f32 0.007874016, %v626_v23  ;;  %v3715_v3 = vmul.f32 0.007874016, %v688_v17 }
 0x18a   : > { %2469 = vrsqrt.f32 %v3700_v24  ;;  %vm829_vm4 = vcmp.eq.f32.partialorder %v3700_v24, inf  ;;  %vm831_vm5 = vcmp.eq.f32.partialorder %v3700_v24, 0.0  ;;  %v832_v27 = vand.u32 2147483648, %v3700_v24 }
 0x18b   : > { %v628_v9 = vpop.xlane.xlu1 %627  ;;  %v690_v48 = vpop.xlane.xlu0 %689  ;;  %2471 = vrsqrt.f32 %v3702_v50  ;;  %vm1046_vm9 = vcmp.eq.f32.partialorder %v3715_v3, inf }
 0x18c   : > { %v3708_v45 = vmul.f32 0.007874016, %v628_v9  ;;  %v3710_v49 = vmul.f32 0.007874016, %v690_v48 }
 0x18e   : > { %2473 = vrsqrt.f32 %v3708_v45  ;;  %vm836_vm6 = vcmp.eq.f32.partialorder %v3708_v45, inf  ;;  %vm838_vm7 = vcmp.eq.f32.partialorder %v3708_v45, 0.0  ;;  %v839_v42 = vand.u32 2147483648, %v3708_v45 }
 0x18f   : > { %2475 = vrsqrt.f32 %v3705_v41  ;;  %v692_v62 = vpop.xlane.xlu1 %691  ;;  %v630_v23 = vpop.xlane.xlu0 %629  ;;  %vm1053_vm10 = vcmp.eq.f32.partialorder %v3710_v49, inf  ;;  %vm1055_vm11 = vcmp.eq.f32.partialorder %v3710_v49, 0.0 }
 0x190   : > { %2477 = vrsqrt.f32 %v3710_v49  ;;  %v3718_v46 = vmul.f32 0.007874016, %v692_v62  ;;  %v3720_v32 = vmul.f32 0.007874016, %v630_v23  ;;  %v2468_v62 = vpop.eup %2467 }
 0x191   : > { %v814_v40 = vmul.f32 %v2468_v62, %v3698_v43 }
 0x192   : > { %2479 = vrsqrt.f32 %v3718_v46  ;;  %vm1060_vm12 = vcmp.eq.f32.partialorder %v3718_v46, inf  ;;  %vm1062_vm13 = vcmp.eq.f32.partialorder %v3718_v46, 0.0  ;;  %v1063_v28 = vand.u32 2147483648, %v3718_v46 }
 0x193   : > { %2481 = vrsqrt.f32 %v3715_v3  ;;  %v632_v9 = vpop.xlane.xlu1 %631  ;;  %v694_v48 = vpop.xlane.xlu0 %693  ;;  %vm843_vm14 = vcmp.eq.f32.partialorder %v3720_v32, inf  ;;  %v846_v11 = vand.u32 2147483648, %v3720_v32  ;;  %vm845_vm15 = vcmp.eq.f32.partialorder %v3720_v32, 0.0 }
 0x194   : > { %2483 = vrsqrt.f32 %v3720_v32  ;;  %v3725_v47 = vmul.f32 0.007874016, %v632_v9  ;;  %v3727_v17 = vmul.f32 0.007874016, %v694_v48 }
 0x196   : > { %2485 = vrsqrt.f32 %v3725_v47 }
 0x197   : > { %v696_v30 = vpop.xlane.xlu1 %695  ;;  %v634_v39 = vpop.xlane.xlu0 %633  ;;  %2487 = vrsqrt.f32 %v3727_v17 }
 0x198   : > { %v3732_v23 = vmul.f32 0.007874016, %v696_v30  ;;  %v2470_v7 = vpop.eup %2469  ;;  %v3737_v9 = vmul.f32 0.007874016, %v634_v39 }
 0x199   : > { %v2472_v48 = vpop.eup %2471  ;;  %v828_v15 = vmul.f32 %v2470_v7, %v3700_v24  ;;  %v1056_v7 = vand.u32 2147483648, %v3710_v49 }
 0x19a   : > { %2489 = vrsqrt.f32 %v3732_v23  ;;  %v821_v36 = vmul.f32 %v2472_v48, %v3702_v50 }
 0x19b   : > { %v2474_v30 = vpop.eup %2473  ;;  %v636_v39 = vpop.xlane.xlu1 %635  ;;  %2491 = vrsqrt.f32 %v3737_v9  ;;  %v830_v29 = vsel %vm829_vm4, %v3700_v24, %v828_v15  ;;  %vm1069_vm4 = vcmp.eq.f32.partialorder %v3727_v17, 0.0 }
 0x19c   : > { %v698_v38 = vpop.xlane.xlu0 %697  ;;  %v2476_v34 = vpop.eup %2475  ;;  %v835_v62 = vmul.f32 %v2474_v30, %v3708_v45  ;;  %v3755_v37 = vmul.f32 0.007874016, %v636_v39  ;;  %v816_v30 = vsel %vm815_vm0, %v3698_v43, %v814_v40  ;;  %v823_v15 = vsel %vm822_vm2, %v3702_v50, %v821_v36 }
 0x19d   : > { %v2478_v53 = vpop.eup %2477  ;;  %v1038_v13 = vmul.f32 %v2476_v34, %v3705_v41  ;;  %vm850_vm0 = vcmp.eq.f32.partialorder %v3725_v47, inf  ;;  %v833_v25 = vsel %vm831_vm5, %v832_v27, %v830_v29  ;;  %v853_v36 = vand.u32 2147483648, %v3725_v47 }
 0x19e   : > { %v1052_v31 = vmul.f32 %v2478_v53, %v3710_v49  ;;  %v837_v34 = vsel %vm836_vm6, %v3708_v45, %v835_v62  ;;  %2493 = vrsqrt.f32 %v3755_v37  ;;  %v819_v53 = vsel %vm817_vm1, %v818_v44, %v816_v30 }
 0x19f   : > { %v2480_v35 = vpop.eup %2479  ;;  %v700_v48 = vpop.xlane.xlu1 %699  ;;  %v1040_v26 = vsel %vm1039_vm3, %v3705_v41, %v1038_v13  ;;  %vm852_vm1 = vcmp.eq.f32.partialorder %v3725_v47, 0.0  ;;  %vm1041_vm2 = vcmp.eq.f32.partialorder %v3705_v41, 0.0  ;;  %vm1067_vm3 = vcmp.eq.f32.partialorder %v3727_v17, inf }
 0x1a0   : > { %v638_v39 = vpop.xlane.xlu0 %637  ;;  %v2482_v33 = vpop.eup %2481  ;;  %v1059_v56 = vmul.f32 %v2480_v35, %v3718_v46  ;;  %v3785_v35 = vmul.f32 0.007874016, %v698_v38  ;;  %v840_v38 = vsel %vm838_vm7, %v839_v42, %v837_v34  ;;  %v1054_v44 = vsel %vm1053_vm10, %v3710_v49, %v1052_v31 }
 0x1a1   : > { %v2484_v40 = vpop.eup %2483  ;;  %v1045_v52 = vmul.f32 %v2482_v33, %v3715_v3  ;;  %v1070_v27 = vand.u32 2147483648, %v3727_v17  ;;  %v3809_v42 = vmul.f32 0.007874016, %v700_v48  ;;  %v1261_v43 = vadd.f32 1e-06, %v819_v53 }
 0x1a2   : > { %v1061_v13 = vsel %vm1060_vm12, %v3718_v46, %v1059_v56  ;;  %v842_v33 = vmul.f32 %v2484_v40, %v3720_v32  ;;  %v1263_v24 = vadd.f32 1e-06, %v833_v25  ;;  %2495 = vrsqrt.f32 %v3785_v35 }
 0x1a3   : > { %v2486_v62 = vpop.eup %2485  ;;  %v640_v63 = vpop.xlane.xlu1 %639  ;;  %v5239_v56 = vand.u32 2147483648, %v3702_v50  ;;  %v3821_v30 = vsel %vm1046_vm9, %v3715_v3, %v1045_v52  ;;  %v1264_v48 = vadd.f32 1e-06, %v840_v38  ;;  %v1057_v25 = vsel %vm1055_vm11, %v1056_v7, %v1054_v44 }
 0x1a4   : > { %v702_v22 = vpop.xlane.xlu0 %701  ;;  %v2488_v29 = vpop.eup %2487  ;;  %v849_v31 = vmul.f32 %v2486_v62, %v3725_v47  ;;  %v1064_v40 = vsel %vm1062_vm13, %v1063_v28, %v1061_v13  ;;  %v844_v34 = vsel %vm843_vm14, %v3720_v32, %v842_v33  ;;  %2497 = vrsqrt.f32 %v3809_v42 }
 0x1a5   : > { %v826_v45 = vsel %vm824_vm8, %v5239_v56, %v823_v15  ;;  %v1066_v53 = vmul.f32 %v2488_v29, %v3727_v17  ;;  %v3832_v50 = vmul.f32 0.007874016, %v638_v39  ;;  %vm1074_vm5 = vcmp.eq.f32.partialorder %v3732_v23, inf }
 0x1a6   : > { %v1077_v49 = vand.u32 2147483648, %v3732_v23  ;;  %v3836_v7 = vmul.f32 0.007874016, %v640_v63  ;;  %2499 = vrcp.f32 %v1261_v43  ;;  %v1295_v62 = vadd.f32 1e-06, %v1057_v25 }
 0x1a7   : > { %v704_v15 = vpop.xlane.xlu1 %703  ;;  %v2490_v52 = vpop.eup %2489  ;;  %2501 = vrcp.f32 %v1263_v24  ;;  %v851_v38 = vsel %vm850_vm0, %v3725_v47, %v849_v31  ;;  %vm1076_vm6 = vcmp.eq.f32.partialorder %v3732_v23, 0.0  ;;  %vm857_vm7 = vcmp.eq.f32.partialorder %v3737_v9, inf }
 0x1a8   : > { %v642_v46 = vpop.xlane.xlu0 %641  ;;  %v2492_v28 = vpop.eup %2491  ;;  %2503 = vrcp.f32 %v1264_v48  ;;  %v1296_v39 = vadd.f32 1e-06, %v1064_v40  ;;  %v847_v44 = vsel %vm845_vm15, %v846_v11, %v844_v34  ;;  %vm859_vm8 = vcmp.eq.f32.partialorder %v3737_v9, 0.0 }
 0x1a9   : > { %v1068_v63 = vsel %vm1067_vm3, %v3727_v17, %v1066_v53  ;;  %v1073_v13 = vmul.f32 %v2490_v52, %v3732_v23  ;;  %2505 = vrsqrt.f32 %v3832_v50  ;;  %v3851_v33 = vmul.f32 0.007874016, %v702_v22 }
 0x1aa   : > { %v854_v29 = vsel %vm852_vm1, %v853_v36, %v851_v38  ;;  %v856_v43 = vmul.f32 %v2492_v28, %v3737_v9  ;;  %v860_v32 = vand.u32 2147483648, %v3737_v9  ;;  %2507 = vrsqrt.f32 %v3836_v7 }
 0x1ab   : > { %v2494_v11 = vpop.eup %2493  ;;  %2509 = vrcp.f32 %v1295_v62  ;;  %v1265_v24 = vadd.f32 1e-06, %v847_v44  ;;  %v644_v31 = vpop.xlane.xlu1 %643  ;;  %v1262_v56 = vadd.f32 1e-06, %v826_v45  ;;  %v5240_v48 = vand.u32 2147483648, %v3705_v41 }
 0x1ac   : > { %2511 = vrcp.f32 %v1296_v39  ;;  %v1071_v47 = vsel %vm1069_vm4, %v1070_v27, %v1068_v63  ;;  %v3866_v36 = vmul.f32 0.007874016, %v704_v15  ;;  %v3868_v25 = vmul.f32 0.007874016, %v642_v46  ;;  %v706_v40 = vpop.xlane.xlu0 %705 }
 0x1ad   : > { %v3862_v22 = vsel %vm1041_vm2, %v5240_v48, %v1040_v26  ;;  %v1266_v34 = vadd.f32 1e-06, %v854_v29  ;;  %v1075_v45 = vsel %vm1074_vm5, %v3732_v23, %v1073_v13  ;;  %vm864_vm9 = vcmp.eq.f32.partialorder %v3755_v37, inf }
 0x1ae   : > { %2513 = vrsqrt.f32 %v3851_v33  ;;  %v858_v26 = vsel %vm857_vm7, %v3737_v9, %v856_v43  ;;  %v863_v41 = vmul.f32 %v2494_v11, %v3755_v37  ;;  %v3880_v17 = vmul.f32 0.007874016, %v644_v31 }
 0x1af   : > { %2515 = vrsqrt.f32 %v3866_v36  ;;  %v1297_v27 = vadd.f32 1e-06, %v1071_v47  ;;  %vm866_vm10 = vcmp.eq.f32.partialorder %v3755_v37, 0.0  ;;  %v867_v53 = vand.u32 2147483648, %v3755_v37  ;;  %v2496_v15 = vpop.eup %2495  ;;  %v708_v38 = vpop.xlane.xlu1 %707 }
 0x1b0   : > { %2517 = vrsqrt.f32 %v3868_v25  ;;  %v1078_v52 = vsel %vm1076_vm6, %v1077_v49, %v1075_v45  ;;  %vm1081_vm11 = vcmp.eq.f32.partialorder %v3785_v35, inf  ;;  %v1084_v46 = vand.u32 2147483648, %v3785_v35  ;;  %v646_v9 = vpop.xlane.xlu0 %645 }
 0x1b1   : > { %2519 = vrcp.f32 %v1265_v24  ;;  %v861_v28 = vsel %vm859_vm8, %v860_v32, %v858_v26  ;;  %vm1083_vm12 = vcmp.eq.f32.partialorder %v3785_v35, 0.0  ;;  %vm1088_vm13 = vcmp.eq.f32.partialorder %v3809_v42, inf  ;;  %v2498_v39 = vpop.eup %2497 }
 0x1b2   : > { %2521 = vrcp.f32 %v1266_v34  ;;  %v3893_v62 = vmul.f32 0.007874016, %v706_v40  ;;  %v865_v23 = vsel %vm864_vm9, %v3755_v37, %v863_v41  ;;  %vm1090_vm14 = vcmp.eq.f32.partialorder %v3809_v42, 0.0 }
 0x1b3   : > { %v1091_v49 = vand.u32 2147483648, %v3809_v42  ;;  %2523 = vrsqrt.f32 %v3880_v17  ;;  %v2500_v44 = vpop.eup %2499  ;;  %v1298_v63 = vadd.f32 1e-06, %v1078_v52  ;;  %v1080_v13 = vmul.f32 %v2496_v15, %v3785_v35  ;;  %v648_v26 = vpop.xlane.xlu1 %647 }
 0x1b4   : > { %2525 = vrcp.f32 %v1297_v27  ;;  %vm871_vm15 = vcmp.eq.f32.partialorder %v3832_v50, inf  ;;  %v3903_v29 = vpop.eup %2501  ;;  %v1267_v43 = vadd.f32 1e-06, %v861_v28  ;;  %v1087_v32 = vmul.f32 %v2498_v39, %v3809_v42  ;;  %v710_v15 = vpop.xlane.xlu0 %709 }
 0x1b5   : > { %v3906_v11 = vmul.f32 0.007874016, %v708_v38  ;;  %2527 = vrcp.f32 %v1262_v56  ;;  %v3908_v24 = vpop.eup %2503  ;;  %v868_v31 = vsel %vm866_vm10, %v867_v53, %v865_v23  ;;  %vm873_vm0 = vcmp.eq.f32.partialorder %v3832_v50, 0.0 }
 0x1b6   : > { %v874_v48 = vand.u32 2147483648, %v3832_v50  ;;  %2529 = vrsqrt.f32 %v3893_v62  ;;  %v2506_v47 = vpop.eup %2505  ;;  %vm878_vm1 = vcmp.eq.f32.partialorder %v3836_v7, inf  ;;  %v881_v40 = vand.u32 2147483648, %v3836_v7 }
 0x1b7   : > { %2531 = vrsqrt.f32 %v3906_v11  ;;  %v3918_v34 = vmul.f32 0.007874016, %v646_v9  ;;  %v2508_v56 = vpop.eup %2507  ;;  %v1082_v37 = vsel %vm1081_vm11, %v3785_v35, %v1080_v13  ;;  %v870_v45 = vmul.f32 %v2506_v47, %v3832_v50 }
 0x1b8   : > { %2533 = vrcp.f32 %v1298_v63  ;;  %vm880_vm2 = vcmp.eq.f32.partialorder %v3836_v7, 0.0  ;;  %vm1095_vm3 = vcmp.eq.f32.partialorder %v3851_v33, inf  ;;  %v3926_v41 = vpop.eup %2509  ;;  %v1268_v27 = vadd.f32 1e-06, %v868_v31 }
 0x1b9   : > { %2535 = vrcp.f32 %v1267_v43  ;;  %v1089_v53 = vsel %vm1088_vm13, %v3809_v42, %v1087_v32  ;;  %vm1097_vm4 = vcmp.eq.f32.partialorder %v3851_v33, 0.0  ;;  %v3932_v52 = vpop.eup %2511  ;;  %v877_v28 = vmul.f32 %v2508_v56, %v3836_v7 }
 0x1ba   : > { %v1098_v38 = vand.u32 2147483648, %v3851_v33  ;;  %vm1102_vm5 = vcmp.eq.f32.partialorder %v3866_v36, inf  ;;  %vm1048_vm6 = vcmp.eq.f32.partialorder %v3715_v3, 0.0  ;;  %v1085_v9 = vsel %vm1083_vm12, %v1084_v46, %v1082_v37  ;;  %v3957_v37 = vld [vmem:[#allocation5] ss:$0 sm:$0xff] }
 0x1bb   : > { %v2514_v23 = vpop.eup %2513  ;;  %v872_v63 = vsel %vm871_vm15, %v3832_v50, %v870_v45  ;;  %2537 = vrsqrt.f32 %v3918_v34  ;;  %v3945_v13 = vmul.f32 0.007874016, %v648_v26  ;;  %v1092_v32 = vsel %vm1090_vm14, %v1091_v49, %v1089_v53 }
 0x1bc   : > { %v2516_v43 = vpop.eup %2515  ;;  %v1094_v31 = vmul.f32 %v2514_v23, %v3851_v33  ;;  %vm1104_vm7 = vcmp.eq.f32.partialorder %v3866_v36, 0.0  ;;  %v1389_v47 = vmul.f32 %v2500_v44, %v3379_v55  ;;  %v3952_v35 = vmul.f32 0.007874016, %v710_v15 }
 0x1bd   : > { %v2518_v46 = vpop.eup %2517  ;;  %2539 = vrcp.f32 %v1268_v27  ;;  %vm885_vm8 = vcmp.eq.f32.partialorder %v3868_v25, inf  ;;  %vm887_vm9 = vcmp.eq.f32.partialorder %v3868_v25, 0.0  ;;  %v888_v56 = vand.u32 2147483648, %v3868_v25 }
 0x1be   : > { %v3959_v42 = vpop.eup %2519  ;;  %v1299_v49 = vadd.f32 1e-06, %v1085_v9  ;;  %v875_v45 = vsel %vm873_vm0, %v874_v48, %v872_v63  ;;  %v879_v55 = vsel %vm878_vm1, %v3836_v7, %v877_v28  ;;  %v1101_v44 = vmul.f32 %v2516_v43, %v3866_v36 }
 0x1bf   : > { %v3967_v26 = vpop.eup %2521  ;;  %v1300_v27 = vadd.f32 1e-06, %v1092_v32  ;;  %v1096_v53 = vsel %vm1095_vm3, %v3851_v33, %v1094_v31  ;;  %v884_v15 = vmul.f32 %v2518_v46, %v3868_v25  ;;  %2541 = vrsqrt.f32 %v3945_v13  ;;  %v3985_v32 = vld [vmem:[#allocation5 + $0x1] ss:$0 sm:$0xff] }
 0x1c0   : > { %v2524_v23 = vpop.eup %2523  ;;  %vm892_vm10 = vcmp.eq.f32.partialorder %v3880_v17, inf  ;;  %v895_v50 = vand.u32 2147483648, %v3880_v17  ;;  %v1457_v48 = vmul.f32 %v3957_v37, %v1389_v47  ;;  %2543 = vrsqrt.f32 %v3952_v35 }
 0x1c1   : > { %v3978_v28 = vpop.eup %2525  ;;  %v1269_v9 = vadd.f32 1e-06, %v875_v45  ;;  %v882_v63 = vsel %vm880_vm2, %v881_v40, %v879_v55  ;;  %vm894_vm11 = vcmp.eq.f32.partialorder %v3880_v17, 0.0  ;;  %vm1109_vm12 = vcmp.eq.f32.partialorder %v3893_v62, inf }
 0x1c2   : > { %v2528_v31 = vpop.eup %2527  ;;  %2545 = vrcp.f32 %v1299_v49  ;;  %v1099_v47 = vsel %vm1097_vm4, %v1098_v38, %v1096_v53  ;;  %v1103_v46 = vsel %vm1102_vm5, %v3866_v36, %v1101_v44  ;;  %vm1116_vm13 = vcmp.eq.f32.partialorder %v3906_v11, inf  ;;  %v712_v53 = vpop.xlane.xlu1 %711 }
 0x1c3   : > { %v2530_v7 = vpop.eup %2529  ;;  %2547 = vrcp.f32 %v1300_v27  ;;  %v886_v40 = vsel %vm885_vm8, %v3868_v25, %v884_v15  ;;  %v891_v45 = vmul.f32 %v2524_v23, %v3880_v17  ;;  %v1390_v55 = vmul.f32 %v2528_v31, %v3389_v57  ;;  %v650_v15 = vpop.xlane.xlu0 %649 }
 0x1c4   : > { %v2532_v49 = vpop.eup %2531  ;;  %v1270_v43 = vadd.f32 1e-06, %v882_v63  ;;  %vm1111_vm14 = vcmp.eq.f32.partialorder %v3893_v62, 0.0  ;;  %v1525_v33 = vadd.f32 %v3985_v32, %v1457_v48  ;;  %v5241_v38 = vand.u32 2147483648, %v3715_v3 }
 0x1c5   : > { %v1293_v27 = vadd.f32 1e-06, %v3862_v22  ;;  %v4006_v39 = vpop.eup %2533  ;;  %2549 = vrcp.f32 %v1269_v9  ;;  %v1301_v57 = vadd.f32 1e-06, %v1099_v47  ;;  %v5242_v23 = vand.u32 2147483648, %v3866_v36 }
 0x1c6   : > { %v1050_v44 = vsel %vm1048_vm6, %v5241_v38, %v3821_v30  ;;  %vm1118_vm15 = vcmp.eq.f32.partialorder %v3906_v11, 0.0  ;;  %v1458_v48 = vmul.f32 %v3957_v37, %v1390_v55  ;;  %v4014_v31 = vpop.eup %2535  ;;  %v889_v3 = vsel %vm887_vm9, %v888_v56, %v886_v40 }
 0x1c7   : > { %v1106_v63 = vsel %vm1104_vm7, %v5242_v23, %v1103_v46  ;;  %v1108_v30 = vmul.f32 %v2530_v7, %v3893_v62  ;;  %v1294_v22 = vadd.f32 1e-06, %v1050_v44  ;;  %2551 = vrcp.f32 %v1293_v27  ;;  %v652_v44 = vpop.xlane.xlu1 %651  ;;  %v714_v27 = vpop.xlane.xlu0 %713 }
 0x1c8   : > { %v893_v9 = vsel %vm892_vm10, %v3880_v17, %v891_v45  ;;  %v1115_v36 = vmul.f32 %v2532_v49, %v3906_v11  ;;  %v1526_v47 = vadd.f32 %v3985_v32, %v1458_v48  ;;  %v4024_v46 = vmul.f32 0.007874016, %v712_v53  ;;  %v2538_v55 = vpop.eup %2537 }
 0x1c9   : > { %v1302_v38 = vadd.f32 1e-06, %v1106_v63  ;;  %v1119_v23 = vand.u32 2147483648, %v3906_v11  ;;  %vm899_vm0 = vcmp.eq.f32.partialorder %v3918_v34, inf  ;;  %2553 = vrcp.f32 %v1294_v22 }
 0x1ca   : > { %2555 = vrcp.f32 %v1270_v43  ;;  %v1271_v25 = vadd.f32 1e-06, %v889_v3  ;;  %vm901_vm1 = vcmp.eq.f32.partialorder %v3918_v34, 0.0  ;;  %v1589_v56 = vpack.c.bf16 %v1526_v47, %v1525_v33  ;;  %v4029_v7 = vpop.eup %2539 }
 0x1cb   : > { %2557 = vrcp.f32 %v1301_v57  ;;  %v896_v40 = vsel %vm894_vm11, %v895_v50, %v893_v9  ;;  %v1110_v45 = vsel %vm1109_vm12, %v3893_v62, %v1108_v30  ;;  %v902_v49 = vand.u32 2147483648, %v3918_v34 }
 0x1cc   : > { %v1117_v43 = vsel %vm1116_vm13, %v3906_v11, %v1115_v36  ;;  %v898_v33 = vmul.f32 %v2538_v55, %v3918_v34  ;;  %2313 = vmatprep.mubr.bf16.mxu0 %v1589_v56  ;;  %2559 = vrsqrt.f32 %v4024_v46  ;;  %v4042_v53 = vmul.f32 0.007874016, %v650_v15  ;;  %v2542_v17 = vpop.eup %2541 }
 0x1cd   : > { %2561 = vrcp.f32 %v1302_v38  ;;  %vm906_vm2 = vcmp.eq.f32.partialorder %v3945_v13, inf  ;;  %v909_v50 = vand.u32 2147483648, %v3945_v13  ;;  %vm1123_vm3 = vcmp.eq.f32.partialorder %v3952_v35, inf  ;;  %v2544_v57 = vpop.eup %2543  ;;  %v716_v38 = vpop.xlane.xlu1 %715 }
 0x1ce   : > { %2563 = vrcp.f32 %v1271_v25  ;;  %v1272_v63 = vadd.f32 1e-06, %v896_v40  ;;  %v5243_v48 = vand.u32 2147483648, %v3893_v62  ;;  %v1391_v15 = vmul.f32 %v3903_v29, %v3399_v61 }
 0x1cf   : > { %v1120_v30 = vsel %vm1118_vm15, %v1119_v23, %v1117_v43  ;;  %vm908_vm4 = vcmp.eq.f32.partialorder %v3945_v13, 0.0  ;;  %v1392_v22 = vmul.f32 %v3908_v24, %v3402_v2  ;;  %v4058_v9 = vmul.f32 0.007874016, %v652_v44  ;;  %v4062_v47 = vpop.eup %2545  ;;  %v654_v23 = vpop.xlane.xlu0 %653 }
 0x1d0   : > { %v1113_v3 = vsel %vm1111_vm14, %v5243_v48, %v1110_v45  ;;  %v4060_v36 = vmul.f32 0.007874016, %v714_v27  ;;  %v900_v62 = vsel %vm899_vm0, %v3918_v34, %v898_v33  ;;  %v905_v61 = vmul.f32 %v2542_v17, %v3945_v13  ;;  %v4070_v11 = vpop.eup %2547 }
 0x1d1   : > { %2565 = vrsqrt.f32 %v4042_v53  ;;  %v1459_v29 = vmul.f32 %v3957_v37, %v1391_v15  ;;  %v1122_v2 = vmul.f32 %v2544_v57, %v3952_v35  ;;  %v1460_v24 = vmul.f32 %v3957_v37, %v1392_v22 }
 0x1d2   : > { %2567 = vrsqrt.f32 %v4058_v9  ;;  %v1423_v55 = vmul.f32 %v3926_v41, %v3409_v1  ;;  %v1303_v25 = vadd.f32 1e-06, %v1113_v3  ;;  %v1304_v56 = vadd.f32 1e-06, %v1120_v30  ;;  %v4078_v45 = vpop.eup %2549 }
 0x1d3   : > { %2569 = vrcp.f32 %v1272_v63  ;;  %v1126_v40 = vand.u32 2147483648, %v3952_v35  ;;  %v903_v44 = vsel %vm901_vm1, %v902_v49, %v900_v62  ;;  %v1527_v27 = vadd.f32 %v3985_v32, %v1459_v29  ;;  %v5244_v49 = vld [vmem:[#allocation24_spill] sm:$0xff]  ;;  %v656_v29 = vpop.xlane.xlu1 %655 }
 0x1d4   : > { %v1528_v43 = vadd.f32 %v3985_v32, %v1460_v24  ;;  %2571 = vrsqrt.f32 %v4060_v36  ;;  %v2552_v33 = vpop.eup %2551  ;;  %v907_v1 = vsel %vm906_vm2, %v3945_v13, %v905_v61  ;;  %v1424_v41 = vmul.f32 %v3932_v52, %v3412_v4 }
 0x1d5   : > { %v4090_v17 = vmul.f32 0.007874016, %v716_v38  ;;  %v4092_v57 = vmul.f32 0.007874016, %v654_v23  ;;  %v1124_v34 = vsel %vm1123_vm3, %v3952_v35, %v1122_v2  ;;  %v1421_v63 = vmul.f32 %v2552_v33, %v5244_v49 }
 0x1d6   : > { %v1590_v48 = vpack.c.bf16 %v1528_v43, %v1527_v27  ;;  %v1491_v3 = vmul.f32 %v3957_v37, %v1423_v55  ;;  %v2554_v15 = vpop.eup %2553  ;;  %v1492_v30 = vmul.f32 %v3957_v37, %v1424_v41  ;;  %v1393_v4 = vmul.f32 %v3959_v42, %v3419_v51 }
 0x1d7   : > { %2573 = vrsqrt.f32 %v4090_v17  ;;  %v1394_v52 = vmul.f32 %v3967_v26, %v3422_v6  ;;  %v4105_v22 = vpop.eup %2555  ;;  %vm1125_vm5 = vcmp.eq.f32.partialorder %v3952_v35, 0.0  ;;  %v1422_v62 = vmul.f32 %v2554_v15, %v3392_v0  ;;  %v718_v0 = vpop.xlane.xlu0 %717 }
 0x1d8   : > { %2575 = vrcp.f32 %v1303_v25  ;;  %v1489_v61 = vmul.f32 %v3957_v37, %v1421_v63  ;;  %2314 = vmatmul.mubr.bf16.vlgmr.msra.gmra.mxu0 %v1590_v48  ;;  %v4110_v2 = vpop.eup %2557  ;;  %v910_v24 = vsel %vm908_vm4, %v909_v50, %v907_v1  ;;  %v1127_v51 = vsel %vm1125_vm5, %v1126_v40, %v1124_v34 }
 0x1d9   : > { %v1560_v42 = vadd.f32 %v3985_v32, %v1492_v30  ;;  %2577 = vrsqrt.f32 %v4092_v57  ;;  %v2560_v6 = vpop.eup %2559  ;;  %v1273_v26 = vadd.f32 1e-06, %v903_v44  ;;  %v1490_v35 = vmul.f32 %v3957_v37, %v1422_v62  ;;  %v720_v62 = vpop.xlane.xlu1 %719 }
 0x1da   : > { %2579 = vrcp.f32 %v1304_v56  ;;  %vm1130_vm6 = vcmp.eq.f32.partialorder %v4024_v46, inf  ;;  %v4118_v55 = vpop.eup %2561  ;;  %vm1132_vm7 = vcmp.eq.f32.partialorder %v4024_v46, 0.0  ;;  %v1559_v13 = vadd.f32 %v3985_v32, %v1491_v3 }
 0x1db   : > { %v1461_v50 = vmul.f32 %v3957_v37, %v1393_v4  ;;  %v1462_v38 = vmul.f32 %v3957_v37, %v1394_v52  ;;  %v4124_v23 = vmul.f32 0.007874016, %v656_v29  ;;  %v4126_v25 = vpop.eup %2563  ;;  %v1274_v56 = vadd.f32 1e-06, %v910_v24 }
 0x1dc   : > { %v1305_v40 = vadd.f32 1e-06, %v1127_v51  ;;  %v1557_v44 = vadd.f32 %v3985_v32, %v1489_v61  ;;  %v1558_v27 = vadd.f32 %v3985_v32, %v1490_v35  ;;  %v1129_v43 = vmul.f32 %v2560_v6, %v4024_v46 }
 0x1dd   : > { %v1606_v33 = vpack.c.bf16 %v1560_v42, %v1559_v13  ;;  %v1529_v1 = vadd.f32 %v3985_v32, %v1461_v50  ;;  %v1530_v41 = vadd.f32 %v3985_v32, %v1462_v38  ;;  %2581 = vrcp.f32 %v1273_v26 }
 0x1de   : > { %v2566_v34 = vpop.eup %2565  ;;  %v1605_v49 = vpack.c.bf16 %v1558_v27, %v1557_v44  ;;  %v4133_v63 = vmul.f32 0.007874016, %v718_v0  ;;  %v1425_v48 = vmul.f32 %v3978_v28, %v3429_v58  ;;  %v1133_v15 = vand.u32 2147483648, %v4024_v46  ;;  %v658_v58 = vpop.xlane.xlu0 %657 }
 0x1df   : > { %v2568_v3 = vpop.eup %2567  ;;  %vm913_vm8 = vcmp.eq.f32.partialorder %v4042_v53, inf  ;;  %v1591_v30 = vpack.c.bf16 %v1530_v41, %v1529_v1  ;;  %2583 = vrsqrt.f32 %v4124_v23  ;;  %vm915_vm9 = vcmp.eq.f32.partialorder %v4042_v53, 0.0 }
 0x1e0   : > { %v4140_v4 = vpop.eup %2569  ;;  %2585 = vrcp.f32 %v1274_v56  ;;  %2345 = vmatprep.mubr.bf16.mxu1 %v1605_v49  ;;  %v916_v52 = vand.u32 2147483648, %v4042_v53  ;;  %vm920_vm10 = vcmp.eq.f32.partialorder %v4058_v9, inf  ;;  %v1131_v61 = vsel %vm1130_vm6, %v4024_v46, %v1129_v43 }
 0x1e1   : > { %v2572_v28 = vpop.eup %2571  ;;  %2587 = vrcp.f32 %v1305_v40  ;;  %v912_v29 = vmul.f32 %v2566_v34, %v4042_v53  ;;  %vm922_vm11 = vcmp.eq.f32.partialorder %v4058_v9, 0.0  ;;  %2346 = vmatmul.mubr.bf16.vlgmr.msra.gmra.mxu1 %v1606_v33  ;;  %2317 = vmatprep.mubr.bf16.mxu0 %v1591_v30  ;;  %v919_v24 = vmul.f32 %v2568_v3, %v4058_v9  ;;  %v660_v34 = vpop.xlane.xlu1 %659 }
 0x1e2   : > { %2589 = vrsqrt.f32 %v4133_v63  ;;  %v1426_v51 = vmul.f32 %v4006_v39, %v3432_v8  ;;  %v1493_v42 = vmul.f32 %v3957_v37, %v1425_v48  ;;  %v923_v6 = vand.u32 2147483648, %v4058_v9 }
 0x1e3   : > { %v1136_v26 = vmul.f32 %v2572_v28, %v4060_v36  ;;  %v4157_v35 = vmul.f32 0.007874016, %v720_v62  ;;  %v4159_v0 = vmul.f32 0.007874016, %v658_v58  ;;  %v1134_v50 = vsel %vm1132_vm7, %v1133_v15, %v1131_v61  ;;  %v722_v15 = vpop.xlane.xlu0 %721 }
 0x1e4   : > { %v2574_v13 = vpop.eup %2573  ;;  %vm1137_vm12 = vcmp.eq.f32.partialorder %v4060_v36, inf  ;;  %vm1139_vm13 = vcmp.eq.f32.partialorder %v4060_v36, 0.0  ;;  %v1494_v8 = vmul.f32 %v3957_v37, %v1426_v51  ;;  %v914_v38 = vsel %vm913_vm8, %v4042_v53, %v912_v29 }
 0x1e5   : > { %v4166_v39 = vpop.eup %2575  ;;  %v1140_v56 = vand.u32 2147483648, %v4060_v36  ;;  %vm1144_vm14 = vcmp.eq.f32.partialorder %v4090_v17, inf  ;;  %2591 = vrsqrt.f32 %v4157_v35  ;;  %v921_v40 = vsel %vm920_vm10, %v4058_v9, %v919_v24 }
 0x1e6   : > { %v2578_v46 = vpop.eup %2577  ;;  %vm1146_vm15 = vcmp.eq.f32.partialorder %v4090_v17, 0.0  ;;  %v1561_v44 = vadd.f32 %v3985_v32, %v1493_v42  ;;  %v1562_v27 = vadd.f32 %v3985_v32, %v1494_v8  ;;  %v1306_v33 = vadd.f32 1e-06, %v1134_v50 }
 0x1e7   : > { %v4180_v43 = vpop.eup %2579  ;;  %v1138_v1 = vsel %vm1137_vm12, %v4060_v36, %v1136_v26  ;;  %v1143_v41 = vmul.f32 %v2574_v13, %v4090_v17  ;;  %2593 = vrsqrt.f32 %v4159_v0  ;;  %v917_v49 = vsel %vm915_vm9, %v916_v52, %v914_v38 }
 0x1e8   : > { %v1147_v48 = vand.u32 2147483648, %v4090_v17  ;;  %vm927_vm0 = vcmp.eq.f32.partialorder %v4092_v57, inf  ;;  %v1607_v3 = vpack.c.bf16 %v1562_v27, %v1561_v44  ;;  %v924_v30 = vsel %vm922_vm11, %v923_v6, %v921_v40 }
 0x1e9   : > { %v926_v62 = vmul.f32 %v2578_v46, %v4092_v57  ;;  %vm929_vm1 = vcmp.eq.f32.partialorder %v4092_v57, 0.0  ;;  %v930_v58 = vand.u32 2147483648, %v4092_v57  ;;  %v1141_v28 = vsel %vm1139_vm13, %v1140_v56, %v1138_v1  ;;  %v724_v46 = vpop.xlane.xlu1 %723 }
 0x1ea   : > { %vm934_vm2 = vcmp.eq.f32.partialorder %v4124_v23, inf  ;;  %2349 = vmatprep.mubr.bf16.mxu1 %v1607_v3  ;;  %v1395_v53 = vmul.f32 %v4014_v31, %v3439_v54  ;;  %v1396_v52 = vmul.f32 %v4029_v7, %v3442_v10  ;;  %v4201_v9 = vmul.f32 0.007874016, %v660_v34  ;;  %v4203_v61 = vpop.eup %2581 }
 0x1eb   : > { %2595 = vrcp.f32 %v1306_v33  ;;  %v1275_v29 = vadd.f32 1e-06, %v917_v49  ;;  %v1145_v36 = vsel %vm1144_vm14, %v4090_v17, %v1143_v41  ;;  %v4208_v24 = vmul.f32 0.007874016, %v722_v15 }
 0x1ec   : > { %v2584_v51 = vpop.eup %2583  ;;  %v937_v42 = vand.u32 2147483648, %v4124_v23  ;;  %v1463_v54 = vmul.f32 %v3957_v37, %v1395_v53  ;;  %v1464_v31 = vmul.f32 %v3957_v37, %v1396_v52  ;;  %2597 = vrsqrt.f32 %v4201_v9 }
 0x1ed   : > { %v4214_v10 = vpop.eup %2585  ;;  %v1276_v7 = vadd.f32 1e-06, %v924_v30  ;;  %v1307_v6 = vadd.f32 1e-06, %v1141_v28  ;;  %v928_v26 = vsel %vm927_vm0, %v4092_v57, %v926_v62  ;;  %v1427_v13 = vmul.f32 %v4062_v47, %v3449_v59  ;;  %v662_v47 = vpop.xlane.xlu0 %661  ;;  %v5245_v28 = vld [vmem:[#allocation25_spill] sm:$0xff] }
 0x1ee   : > { %v4221_v50 = vpop.eup %2587  ;;  %v1148_v8 = vsel %vm1146_vm15, %v1147_v48, %v1145_v36  ;;  %vm936_vm3 = vcmp.eq.f32.partialorder %v4124_v23, 0.0  ;;  %v1531_v38 = vadd.f32 %v3985_v32, %v1463_v54  ;;  %v1532_v56 = vadd.f32 %v3985_v32, %v1464_v31 }
 0x1ef   : > { %2599 = vrsqrt.f32 %v4208_v24  ;;  %v2590_v40 = vpop.eup %2589  ;;  %v933_v44 = vmul.f32 %v2584_v51, %v4124_v23  ;;  %vm1151_vm4 = vcmp.eq.f32.partialorder %v4133_v63, inf  ;;  %v1154_v59 = vand.u32 2147483648, %v4133_v63 }
 0x1f0   : > { %2601 = vrcp.f32 %v1275_v29  ;;  %v931_v17 = vsel %vm929_vm1, %v930_v58, %v928_v26  ;;  %vm1153_vm5 = vcmp.eq.f32.partialorder %v4133_v63, 0.0  ;;  %vm1158_vm6 = vcmp.eq.f32.partialorder %v4157_v35, inf  ;;  %v664_v29 = vpop.xlane.xlu1 %663 }
 0x1f1   : > { %v1592_v27 = vpack.c.bf16 %v1532_v56, %v1531_v38  ;;  %v1428_v33 = vmul.f32 %v4070_v11, %v3452_v12  ;;  %2603 = vrcp.f32 %v1276_v7  ;;  %v1308_v1 = vadd.f32 1e-06, %v1148_v8  ;;  %v726_v36 = vpop.xlane.xlu0 %725 }
 0x1f2   : > { %v1495_v41 = vmul.f32 %v3957_v37, %v1427_v13  ;;  %v4239_v34 = vmul.f32 0.007874016, %v724_v46  ;;  %v2592_v49 = vpop.eup %2591  ;;  %2605 = vrcp.f32 %v1307_v6  ;;  %v1150_v48 = vmul.f32 %v2590_v40, %v4133_v63 }
 0x1f3   : > { %2318 = vmatmul.mubr.bf16.gmra.mxu0 %v1592_v27  ;;  %v1496_v57 = vmul.f32 %v3957_v37, %v1428_v33  ;;  %v4243_v3 = vmul.f32 0.007874016, %v662_v47  ;;  %v1277_v15 = vadd.f32 1e-06, %v931_v17  ;;  %v935_v12 = vsel %vm934_vm2, %v4124_v23, %v933_v44 }
 0x1f4   : > { %vm1160_vm7 = vcmp.eq.f32.partialorder %v4157_v35, 0.0  ;;  %2607 = vrsqrt.f32 %v4239_v34  ;;  %v2594_v11 = vpop.eup %2593  ;;  %v1157_v30 = vmul.f32 %v2592_v49, %v4157_v35  ;;  %v1563_v62 = vadd.f32 %v3985_v32, %v1495_v41 }
 0x1f5   : > { %v1564_v58 = vadd.f32 %v3985_v32, %v1496_v57  ;;  %v1397_v53 = vmul.f32 %v4078_v45, %v5245_v28  ;;  %2609 = vrcp.f32 %v1308_v1  ;;  %v1161_v52 = vand.u32 2147483648, %v4157_v35 }
 0x1f6   : > { %vm941_vm8 = vcmp.eq.f32.partialorder %v4159_v0, inf  ;;  %vm943_vm9 = vcmp.eq.f32.partialorder %v4159_v0, 0.0  ;;  %v1152_v51 = vsel %vm1151_vm4, %v4133_v63, %v1150_v48  ;;  %v940_v54 = vmul.f32 %v2594_v11, %v4159_v0 }
 0x1f7   : > { %v1608_v31 = vpack.c.bf16 %v1564_v58, %v1563_v62  ;;  %2611 = vrsqrt.f32 %v4243_v3  ;;  %v938_v45 = vsel %vm936_vm3, %v937_v42, %v935_v12  ;;  %v944_v7 = vand.u32 2147483648, %v4159_v0 }
 0x1f8   : > { %2613 = vrcp.f32 %v1277_v15  ;;  %v1398_v6 = vmul.f32 %v4105_v22, %v3462_v14  ;;  %v4268_v26 = vpop.eup %2595  ;;  %v1159_v13 = vsel %vm1158_vm6, %v4157_v35, %v1157_v30  ;;  %v1465_v8 = vmul.f32 %v3957_v37, %v1397_v53 }
 0x1f9   : > { %2350 = vmatmul.mubr.bf16.gmra.mxu1 %v1608_v31  ;;  %v4274_v38 = vmul.f32 0.007874016, %v664_v29  ;;  %v4276_v56 = vmul.f32 0.007874016, %v726_v36  ;;  %v2598_v23 = vpop.eup %2597  ;;  %v1155_v42 = vsel %vm1153_vm5, %v1154_v59, %v1152_v51  ;;  %vm948_vm10 = vcmp.eq.f32.partialorder %v4201_v9, inf }
 0x1fa   : > { %v951_v14 = vand.u32 2147483648, %v4201_v9  ;;  %v1466_v22 = vmul.f32 %v3957_v37, %v1398_v6  ;;  %v1278_v46 = vadd.f32 1e-06, %v938_v45  ;;  %v942_v40 = vsel %vm941_vm8, %v4159_v0, %v940_v54 }
 0x1fb   : > { %vm950_vm11 = vcmp.eq.f32.partialorder %v4201_v9, 0.0  ;;  %2615 = vrsqrt.f32 %v4274_v38  ;;  %v1429_v44 = vmul.f32 %v4110_v2, %v3469_v60  ;;  %v1162_v59 = vsel %vm1160_vm7, %v1161_v52, %v1159_v13  ;;  %v728_v60 = vpop.xlane.xlu1 %727  ;;  %v666_v2 = vpop.xlane.xlu0 %665 }
 0x1fc   : > { %v2600_v63 = vpop.eup %2599  ;;  %vm1165_vm12 = vcmp.eq.f32.partialorder %v4208_v24, inf  ;;  %v1533_v47 = vadd.f32 %v3985_v32, %v1465_v8  ;;  %v1534_v17 = vadd.f32 %v3985_v32, %v1466_v22  ;;  %v1309_v33 = vadd.f32 1e-06, %v1155_v42 }
 0x1fd   : > { %v4295_v27 = vpop.eup %2601  ;;  %v947_v1 = vmul.f32 %v2598_v23, %v4201_v9  ;;  %vm1167_vm13 = vcmp.eq.f32.partialorder %v4208_v24, 0.0  ;;  %2617 = vrsqrt.f32 %v4276_v56  ;;  %v945_v35 = vsel %vm943_vm9, %v944_v7, %v942_v40 }
 0x1fe   : > { %v1164_v41 = vmul.f32 %v2600_v63, %v4208_v24  ;;  %v1168_v49 = vand.u32 2147483648, %v4208_v24  ;;  %v1593_v48 = vpack.c.bf16 %v1534_v17, %v1533_v47  ;;  %v4304_v57 = vpop.eup %2603  ;;  %2619 = vrcp.f32 %v1278_v46 }
 0x1ff   : > { %v1310_v15 = vadd.f32 1e-06, %v1162_v59  ;;  %v1430_v12 = vmul.f32 %v4118_v55, %v3472_v16  ;;  %v1497_v11 = vmul.f32 %v3957_v37, %v1429_v44  ;;  %v4309_v30 = vpop.eup %2605  ;;  %vm1172_vm14 = vcmp.eq.f32.partialorder %v4239_v34, inf  ;;  %v668_v45 = vpop.xlane.xlu1 %667 }
 0x200   : > { %v1175_v0 = vand.u32 2147483648, %v4239_v34  ;;  %2321 = vmatprep.mubr.bf16.mxu0 %v1593_v48  ;;  %v4313_v62 = vmul.f32 0.007874016, %v728_v60  ;;  %v4315_v58 = vmul.f32 0.007874016, %v666_v2  ;;  %2621 = vrcp.f32 %v1309_v33  ;;  %v730_v7 = vpop.xlane.xlu0 %729 }
 0x201   : > { %v2608_v28 = vpop.eup %2607  ;;  %v1279_v53 = vadd.f32 1e-06, %v945_v35  ;;  %v949_v16 = vsel %vm948_vm10, %v4201_v9, %v947_v1  ;;  %vm1174_vm15 = vcmp.eq.f32.partialorder %v4239_v34, 0.0  ;;  %v1498_v55 = vmul.f32 %v3957_v37, %v1430_v12 }
 0x202   : > { %v1166_v52 = vsel %vm1165_vm12, %v4208_v24, %v1164_v41  ;;  %vm955_vm0 = vcmp.eq.f32.partialorder %v4243_v3, inf  ;;  %2623 = vrsqrt.f32 %v4313_v62  ;;  %v1399_v29 = vmul.f32 %v4126_v25, %v3479_v18  ;;  %v4329_v36 = vpop.eup %2609 }
 0x203   : > { %2625 = vrcp.f32 %v1310_v15  ;;  %v1171_v51 = vmul.f32 %v2608_v28, %v4239_v34  ;;  %v1565_v54 = vadd.f32 %v3985_v32, %v1497_v11  ;;  %v1566_v31 = vadd.f32 %v3985_v32, %v1498_v55 }
 0x204   : > { %v2612_v6 = vpop.eup %2611  ;;  %v952_v13 = vsel %vm950_vm11, %v951_v14, %v949_v16  ;;  %vm957_vm1 = vcmp.eq.f32.partialorder %v4243_v3, 0.0  ;;  %v958_v8 = vand.u32 2147483648, %v4243_v3  ;;  %2627 = vrsqrt.f32 %v4315_v58 }
 0x205   : > { %v4339_v18 = vpop.eup %2613  ;;  %2629 = vrcp.f32 %v1279_v53  ;;  %v1169_v25 = vsel %vm1167_vm13, %v1168_v49, %v1166_v52  ;;  %vm962_vm2 = vcmp.eq.f32.partialorder %v4274_v38, inf  ;;  %v1609_v23 = vpack.c.bf16 %v1566_v31, %v1565_v54 }
 0x206   : > { %v1400_v42 = vmul.f32 %v4140_v4, %v3482_v19  ;;  %v954_v9 = vmul.f32 %v2612_v6, %v4243_v3  ;;  %v1467_v14 = vmul.f32 %v3957_v37, %v1399_v29  ;;  %v4348_v22 = vmul.f32 0.007874016, %v668_v45 }
 0x207   : > { %v4350_v46 = vmul.f32 0.007874016, %v730_v7  ;;  %v1280_v40 = vadd.f32 1e-06, %v952_v13  ;;  %v1173_v24 = vsel %vm1172_vm14, %v4239_v34, %v1171_v51  ;;  %v965_v44 = vand.u32 2147483648, %v4274_v38  ;;  %2353 = vmatprep.mubr.bf16.mxu1 %v1609_v23 }
 0x208   : > { %v1468_v63 = vmul.f32 %v3957_v37, %v1400_v42  ;;  %v2616_v59 = vpop.eup %2615  ;;  %v1311_v19 = vadd.f32 1e-06, %v1169_v25  ;;  %vm964_vm3 = vcmp.eq.f32.partialorder %v4274_v38, 0.0  ;;  %vm1179_vm4 = vcmp.eq.f32.partialorder %v4276_v56, inf }
 0x209   : > { %v1182_v4 = vand.u32 2147483648, %v4276_v56  ;;  %v1431_v47 = vmul.f32 %v4166_v39, %v3489_v20  ;;  %vm1181_vm5 = vcmp.eq.f32.partialorder %v4276_v56, 0.0  ;;  %v1535_v17 = vadd.f32 %v3985_v32, %v1467_v14  ;;  %v732_v39 = vpop.xlane.xlu1 %731  ;;  %v5246_v14 = vld [vmem:[#allocation26_spill] sm:$0xff] }
 0x20a   : > { %v1536_v33 = vadd.f32 %v3985_v32, %v1468_v63  ;;  %2631 = vrsqrt.f32 %v4348_v22  ;;  %v1432_v1 = vmul.f32 %v4180_v43, %v3492_v21  ;;  %v2618_v60 = vpop.eup %2617  ;;  %v1176_v2 = vsel %vm1174_vm15, %v1175_v0, %v1173_v24  ;;  %v670_v21 = vpop.xlane.xlu0 %669 }
 0x20b   : > { %v956_v35 = vsel %vm955_vm0, %v4243_v3, %v954_v9  ;;  %v961_v20 = vmul.f32 %v2616_v59, %v4274_v38  ;;  %2633 = vrsqrt.f32 %v4350_v46  ;;  %v1178_v41 = vmul.f32 %v2618_v60, %v4276_v56  ;;  %v4377_v43 = vpop.eup %2619 }
 0x20c   : > { %2635 = vrcp.f32 %v1280_v40  ;;  %vm1186_vm6 = vcmp.eq.f32.partialorder %v4313_v62, inf  ;;  %v1594_v49 = vpack.c.bf16 %v1536_v33, %v1535_v17  ;;  %vm1188_vm7 = vcmp.eq.f32.partialorder %v4313_v62, 0.0  ;;  %v5247_v33 = vld [vmem:[#allocation27_spill] sm:$0xff] }
 0x20d   : > { %2637 = vrcp.f32 %v1311_v19  ;;  %v1189_v34 = vand.u32 2147483648, %v4313_v62  ;;  %v1499_v48 = vmul.f32 %v3957_v37, %v1431_v47  ;;  %v1312_v15 = vadd.f32 1e-06, %v1176_v2  ;;  %v4387_v28 = vpop.eup %2621  ;;  %v672_v6 = vpop.xlane.xlu1 %671 }
 0x20e   : > { %v959_v12 = vsel %vm957_vm1, %v958_v8, %v956_v35  ;;  %2322 = vmatmul.mubr.bf16.gmra.mxu0 %v1594_v49  ;;  %v1500_v11 = vmul.f32 %v3957_v37, %v1432_v1  ;;  %v4385_v0 = vmul.f32 0.007874016, %v732_v39  ;;  %v963_v53 = vsel %vm962_vm2, %v4274_v38, %v961_v20  ;;  %v734_v23 = vpop.xlane.xlu0 %733 }
 0x20f   : > { %vm969_vm8 = vcmp.eq.f32.partialorder %v4315_v58, inf  ;;  %vm971_vm9 = vcmp.eq.f32.partialorder %v4315_v58, 0.0  ;;  %v4394_v16 = vmul.f32 0.007874016, %v670_v21  ;;  %v2624_v55 = vpop.eup %2623  ;;  %v1180_v3 = vsel %vm1179_vm4, %v4276_v56, %v1178_v41 }
 0x210   : > { %v1567_v52 = vadd.f32 %v3985_v32, %v1499_v48  ;;  %v1568_v29 = vadd.f32 %v3985_v32, %v1500_v11  ;;  %v1401_v51 = vmul.f32 %v4203_v61, %v3499_v5  ;;  %v4403_v54 = vpop.eup %2625  ;;  %v1281_v31 = vadd.f32 1e-06, %v959_v12 }
 0x211   : > { %v1185_v45 = vmul.f32 %v2624_v55, %v4313_v62  ;;  %v972_v7 = vand.u32 2147483648, %v4315_v58  ;;  %2639 = vrsqrt.f32 %v4385_v0  ;;  %v2628_v13 = vpop.eup %2627  ;;  %v966_v8 = vsel %vm964_vm3, %v965_v44, %v963_v53  ;;  %v736_v39 = vpop.xlane.xlu1 %735 }
 0x212   : > { %2641 = vrcp.f32 %v1312_v15  ;;  %vm976_vm10 = vcmp.eq.f32.partialorder %v4348_v22, inf  ;;  %v1610_v25 = vpack.c.bf16 %v1568_v29, %v1567_v52  ;;  %v4411_v5 = vpop.eup %2629  ;;  %v1183_v61 = vsel %vm1181_vm5, %v1182_v4, %v1180_v3  ;;  %v5248_v15 = vld [vmem:[#allocation28_spill] sm:$0xff] }
 0x213   : > { %v1187_v42 = vsel %vm1186_vm6, %v4313_v62, %v1185_v45  ;;  %v968_v9 = vmul.f32 %v2628_v13, %v4315_v58  ;;  %2643 = vrsqrt.f32 %v4394_v16  ;;  %vm978_vm11 = vcmp.eq.f32.partialorder %v4348_v22, 0.0 }
 0x214   : > { %v1190_v38 = vsel %vm1188_vm7, %v1189_v34, %v1187_v42  ;;  %2354 = vmatmul.mubr.bf16.gmra.mxu1 %v1610_v25  ;;  %v1402_v40 = vmul.f32 %v4214_v10, %v5246_v14  ;;  %v1469_v56 = vmul.f32 %v3957_v37, %v1401_v51  ;;  %v4426_v24 = vmul.f32 0.007874016, %v672_v6 }
 0x215   : > { %2645 = vrcp.f32 %v1281_v31  ;;  %v1282_v44 = vadd.f32 1e-06, %v966_v8  ;;  %v970_v63 = vsel %vm969_vm8, %v4315_v58, %v968_v9  ;;  %v4431_v59 = vmul.f32 0.007874016, %v734_v23  ;;  %v676_v6 = vpop.xlane.xlu1 %675 }
 0x216   : > { %v979_v62 = vand.u32 2147483648, %v4348_v22  ;;  %vm1193_vm12 = vcmp.eq.f32.partialorder %v4350_v46, inf  ;;  %v1470_v19 = vmul.f32 %v3957_v37, %v1402_v40  ;;  %2647 = vrsqrt.f32 %v4426_v24 }
 0x217   : > { %v2632_v10 = vpop.eup %2631  ;;  %v1313_v4 = vadd.f32 1e-06, %v1183_v61  ;;  %v1314_v47 = vadd.f32 1e-06, %v1190_v38  ;;  %v973_v17 = vsel %vm971_vm9, %v972_v7, %v970_v63  ;;  %v1433_v1 = vmul.f32 %v4221_v50, %v5247_v33  ;;  %v674_v50 = vpop.xlane.xlu0 %673  ;;  %v5249_v38 = vld [vmem:[#allocation29_spill] sm:$0xff] }
 0x218   : > { %v2634_v60 = vpop.eup %2633  ;;  %v975_v2 = vmul.f32 %v2632_v10, %v4348_v22  ;;  %v1537_v35 = vadd.f32 %v3985_v32, %v1469_v56  ;;  %v1538_v20 = vadd.f32 %v3985_v32, %v1470_v19  ;;  %2649 = vrsqrt.f32 %v4431_v59 }
 0x219   : > { %v4445_v41 = vpop.eup %2635  ;;  %2651 = vrcp.f32 %v1282_v44  ;;  %vm1195_vm13 = vcmp.eq.f32.partialorder %v4350_v46, 0.0  ;;  %v1196_v58 = vand.u32 2147483648, %v4350_v46  ;;  %vm1200_vm14 = vcmp.eq.f32.partialorder %v4385_v0, inf  ;;  %v5250_v44 = vld [vmem:[#allocation30_spill] sm:$0xff] }
 0x21a   : > { %v4450_v49 = vpop.eup %2637  ;;  %v977_v21 = vsel %vm976_vm10, %v4348_v22, %v975_v2  ;;  %v1192_v34 = vmul.f32 %v2634_v60, %v4350_v46  ;;  %v1595_v48 = vpack.c.bf16 %v1538_v20, %v1537_v35  ;;  %v1434_v12 = vmul.f32 %v4268_v26, %v5248_v15 }
 0x21b   : > { %2653 = vrcp.f32 %v1313_v4  ;;  %v1283_v11 = vadd.f32 1e-06, %v973_v17  ;;  %v1501_v53 = vmul.f32 %v3957_v37, %v1433_v1  ;;  %v4459_v55 = vmul.f32 0.007874016, %v736_v39  ;;  %v738_v23 = vpop.xlane.xlu0 %737  ;;  %v5251_v39 = vld [vmem:[#allocation31_spill] sm:$0xff] }
 0x21c   : > { %2655 = vrcp.f32 %v1314_v47  ;;  %vm1202_vm15 = vcmp.eq.f32.partialorder %v4385_v0, 0.0  ;;  %v1203_v3 = vand.u32 2147483648, %v4385_v0  ;;  %2325 = vmatprep.mubr.bf16.mxu0 %v1595_v48  ;;  %v1502_v52 = vmul.f32 %v3957_v37, %v1434_v12  ;;  %v4504_v47 = vld [vmem:[#allocation5] ss:$0 sm:$0xff] }
 0x21d   : > { %v4464_v29 = vmul.f32 0.007874016, %v674_v50  ;;  %v980_v51 = vsel %vm978_vm11, %v979_v62, %v977_v21  ;;  %vm983_vm0 = vcmp.eq.f32.partialorder %v4394_v16, inf  ;;  %v986_v26 = vand.u32 2147483648, %v4394_v16 }
 0x21e   : > { %2657 = vrsqrt.f32 %v4459_v55  ;;  %v2640_v31 = vpop.eup %2639  ;;  %v1194_v45 = vsel %vm1193_vm12, %v4350_v46, %v1192_v34  ;;  %vm985_vm1 = vcmp.eq.f32.partialorder %v4394_v16, 0.0  ;;  %vm990_vm2 = vcmp.eq.f32.partialorder %v4426_v24, inf }
 0x21f   : > { %v1569_v7 = vadd.f32 %v3985_v32, %v1501_v53  ;;  %v1570_v22 = vadd.f32 %v3985_v32, %v1502_v52  ;;  %v4478_v13 = vpop.eup %2641  ;;  %2659 = vrcp.f32 %v1283_v11  ;;  %v1199_v8 = vmul.f32 %v2640_v31, %v4385_v0  ;;  %v678_v12 = vpop.xlane.xlu0 %677 }
 0x220   : > { %vm992_vm3 = vcmp.eq.f32.partialorder %v4426_v24, 0.0  ;;  %v993_v25 = vand.u32 2147483648, %v4426_v24  ;;  %v2644_v61 = vpop.eup %2643  ;;  %v1284_v42 = vadd.f32 1e-06, %v980_v51  ;;  %2661 = vrsqrt.f32 %v4464_v29  ;;  %v5252_v51 = vld [vmem:[#allocation32_spill] sm:$0xff] }
 0x221   : > { %v1611_v9 = vpack.c.bf16 %v1570_v22, %v1569_v7  ;;  %v1403_v14 = vmul.f32 %v4295_v27, %v5249_v38  ;;  %v1197_v40 = vsel %vm1195_vm13, %v1196_v58, %v1194_v45  ;;  %v982_v56 = vmul.f32 %v2644_v61, %v4394_v16 }
 0x222   : > { %v1404_v63 = vmul.f32 %v4304_v57, %v5250_v44  ;;  %v4491_v62 = vmul.f32 0.007874016, %v676_v6  ;;  %v4493_v19 = vpop.eup %2645  ;;  %v1201_v10 = vsel %vm1200_vm14, %v4385_v0, %v1199_v8  ;;  %vm1207_vm4 = vcmp.eq.f32.partialorder %v4431_v59, inf  ;;  %v740_v0 = vpop.xlane.xlu1 %739 }
 0x223   : > { %2357 = vmatprep.mubr.bf16.mxu1 %v1611_v9  ;;  %v1471_v27 = vmul.f32 %v3957_v37, %v1403_v14  ;;  %v4500_v46 = vmul.f32 0.007874016, %v738_v23  ;;  %v2648_v4 = vpop.eup %2647  ;;  %vm1209_vm5 = vcmp.eq.f32.partialorder %v4431_v59, 0.0  ;;  %v1210_v57 = vand.u32 2147483648, %v4431_v59  ;;  %v5253_v23 = vld [vmem:[#allocation33_spill] sm:$0xff] }
 0x224   : > { %v1472_v17 = vmul.f32 %v4504_v47, %v1404_v63  ;;  %2663 = vrsqrt.f32 %v4491_v62  ;;  %v1315_v33 = vadd.f32 1e-06, %v1197_v40  ;;  %v984_v1 = vsel %vm983_vm0, %v4394_v16, %v982_v56  ;;  %v4561_v14 = vld [vmem:[#allocation5 + $0x1] ss:$0 sm:$0xff] }
 0x225   : > { %2665 = vrcp.f32 %v1284_v42  ;;  %v989_v37 = vmul.f32 %v2648_v4, %v4426_v24  ;;  %v2650_v60 = vpop.eup %2649  ;;  %v1204_v2 = vsel %vm1202_vm15, %v1203_v3, %v1201_v10  ;;  %v1539_v35 = vadd.f32 %v3985_v32, %v1471_v27  ;;  %v742_v10 = vpop.xlane.xlu0 %741  ;;  %v5254_v4 = vld [vmem:[#allocation34_spill] sm:$0xff] }
 0x226   : > { %v1540_v20 = vadd.f32 %v3985_v32, %v1472_v17  ;;  %v1435_v58 = vmul.f32 %v4309_v30, %v5251_v39  ;;  %v4518_v50 = vpop.eup %2651  ;;  %v1206_v34 = vmul.f32 %v2650_v60, %v4431_v59  ;;  %vm1214_vm6 = vcmp.eq.f32.partialorder %v4459_v55, inf }
 0x227   : > { %v991_v21 = vsel %vm990_vm2, %v4426_v24, %v989_v37  ;;  %2667 = vrsqrt.f32 %v4500_v46  ;;  %v987_v48 = vsel %vm985_vm1, %v986_v26, %v984_v1  ;;  %v1217_v30 = vand.u32 2147483648, %v4459_v55 }
 0x228   : > { %v994_v32 = vsel %vm992_vm3, %v993_v25, %v991_v21  ;;  %v1596_v15 = vpack.c.bf16 %v1540_v20, %v1539_v35  ;;  %v4531_v11 = vpop.eup %2653  ;;  %v1316_v53 = vadd.f32 1e-06, %v1204_v2  ;;  %v1208_v3 = vsel %vm1207_vm4, %v4431_v59, %v1206_v34 }
 0x229   : > { %vm1216_vm7 = vcmp.eq.f32.partialorder %v4459_v55, 0.0  ;;  %vm997_vm8 = vcmp.eq.f32.partialorder %v4464_v29, inf  ;;  %v1000_v16 = vand.u32 2147483648, %v4464_v29  ;;  %v4539_v52 = vpop.eup %2655  ;;  %v1211_v24 = vsel %vm1209_vm5, %v1210_v57, %v1208_v3 }
 0x22a   : > { %2326 = vmatmul.mubr.bf16.gmra.mxu0 %v1596_v15  ;;  %v1436_v26 = vmul.f32 %v4329_v36, %v5252_v51  ;;  %v1503_v31 = vmul.f32 %v4504_v47, %v1435_v58  ;;  %v4546_v45 = vmul.f32 0.007874016, %v740_v0  ;;  %2669 = vrcp.f32 %v1315_v33  ;;  %v5255_v58 = vld [vmem:[#allocation35_spill] sm:$0xff]  ;;  %v5256_v51 = vld [vmem:[#allocation36_spill] sm:$0xff] }
 0x22b   : > { %v2658_v7 = vpop.eup %2657  ;;  %v1285_v22 = vadd.f32 1e-06, %v987_v48  ;;  %v1286_v6 = vadd.f32 1e-06, %v994_v32  ;;  %vm999_vm9 = vcmp.eq.f32.partialorder %v4464_v29, 0.0  ;;  %v1405_v36 = vmul.f32 %v4339_v18, %v5253_v23  ;;  %v680_v18 = vpop.xlane.xlu1 %679 }
 0x22c   : > { %v4549_v8 = vmul.f32 0.007874016, %v678_v12  ;;  %v1213_v25 = vmul.f32 %v2658_v7, %v4459_v55  ;;  %v1504_v59 = vmul.f32 %v4504_v47, %v1436_v26  ;;  %2671 = vrsqrt.f32 %v4546_v45  ;;  %v4556_v61 = vpop.eup %2659 }
 0x22d   : > { %2673 = vrcp.f32 %v1316_v53  ;;  %v1317_v42 = vadd.f32 1e-06, %v1211_v24  ;;  %vm1004_vm10 = vcmp.eq.f32.partialorder %v4491_v62, inf  ;;  %vm1006_vm11 = vcmp.eq.f32.partialorder %v4491_v62, 0.0  ;;  %v2662_v9 = vpop.eup %2661  ;;  %v682_v53 = vpop.xlane.xlu0 %681 }
 0x22e   : > { %v1007_v38 = vand.u32 2147483648, %v4491_v62  ;;  %v1571_v40 = vadd.f32 %v4561_v14, %v1503_v31  ;;  %v1572_v56 = vadd.f32 %v4561_v14, %v1504_v59  ;;  %2675 = vrsqrt.f32 %v4549_v8 }
 0x22f   : > { %2677 = vrcp.f32 %v1285_v22  ;;  %v1215_v44 = vsel %vm1214_vm6, %v4459_v55, %v1213_v25  ;;  %v996_v63 = vmul.f32 %v2662_v9, %v4464_v29  ;;  %vm1221_vm12 = vcmp.eq.f32.partialorder %v4500_v46, inf }
 0x230   : > { %2679 = vrcp.f32 %v1286_v6  ;;  %v1612_v27 = vpack.c.bf16 %v1572_v56, %v1571_v40  ;;  %v1406_v57 = vmul.f32 %v4377_v43, %v5254_v4  ;;  %v1473_v17 = vmul.f32 %v4504_v47, %v1405_v36 }
 0x231   : > { %v2664_v33 = vpop.eup %2663  ;;  %2681 = vrcp.f32 %v1317_v42  ;;  %v998_v1 = vsel %vm997_vm8, %v4464_v29, %v996_v63  ;;  %vm1223_vm13 = vcmp.eq.f32.partialorder %v4500_v46, 0.0  ;;  %v4578_v37 = vmul.f32 0.007874016, %v680_v18  ;;  %v746_v4 = vpop.xlane.xlu0 %745 }
 0x232   : > { %v4580_v60 = vpop.eup %2665  ;;  %v1218_v2 = vsel %vm1216_vm7, %v1217_v30, %v1215_v44  ;;  %v1003_v35 = vmul.f32 %v2664_v33, %v4491_v62  ;;  %2358 = vmatmul.mubr.bf16.gmra.mxu1 %v1612_v27  ;;  %v1474_v43 = vmul.f32 %v4504_v47, %v1406_v57  ;;  %v4586_v20 = vmul.f32 0.007874016, %v742_v10 }
 0x233   : > { %v1224_v39 = vand.u32 2147483648, %v4500_v46  ;;  %vm1228_vm14 = vcmp.eq.f32.partialorder %v4546_v45, inf  ;;  %2683 = vrsqrt.f32 %v4578_v37  ;;  %v1437_v21 = vmul.f32 %v4387_v28, %v5255_v58  ;;  %v744_v28 = vpop.xlane.xlu1 %743 }
 0x234   : > { %v2668_v34 = vpop.eup %2667  ;;  %v1001_v55 = vsel %vm999_vm9, %v1000_v16, %v998_v1  ;;  %v1005_v0 = vsel %vm1004_vm10, %v4491_v62, %v1003_v35  ;;  %v1541_v48 = vadd.f32 %v4561_v14, %v1473_v17  ;;  %v1542_v32 = vadd.f32 %v4561_v14, %v1474_v43  ;;  %v5258_v1 = vld [vmem:[#allocation38_spill] sm:$0xff] }
 0x235   : > { %v1318_v30 = vadd.f32 1e-06, %v1218_v2  ;;  %v1220_v15 = vmul.f32 %v2668_v34, %v4500_v46  ;;  %vm1230_vm15 = vcmp.eq.f32.partialorder %v4546_v45, 0.0  ;;  %v1231_v12 = vand.u32 2147483648, %v4546_v45 }
 0x236   : > { %v1008_v29 = vsel %vm1006_vm11, %v1007_v38, %v1005_v0  ;;  %vm1011_vm0 = vcmp.eq.f32.partialorder %v4549_v8, inf  ;;  %v1597_v3 = vpack.c.bf16 %v1542_v32, %v1541_v48  ;;  %2685 = vrsqrt.f32 %v4586_v20  ;;  %v5259_v32 = vld [vmem:[#allocation39_spill] sm:$0xff] }
 0x237   : > { %v1287_v16 = vadd.f32 1e-06, %v1001_v55  ;;  %v1222_v24 = vsel %vm1221_vm12, %v4500_v46, %v1220_v15  ;;  %v1438_v26 = vmul.f32 %v4403_v54, %v5256_v51  ;;  %v1505_v31 = vmul.f32 %v4504_v47, %v1437_v21  ;;  %v4613_v7 = vpop.eup %2669  ;;  %v5257_v46 = vld [vmem:[#allocation37_spill] sm:$0xff]  ;;  %v684_v44 = vpop.xlane.xlu1 %683 }
 0x238   : > { %v1225_v62 = vsel %vm1223_vm13, %v1224_v39, %v1222_v24  ;;  %vm1013_vm1 = vcmp.eq.f32.partialorder %v4549_v8, 0.0  ;;  %2329 = vmatprep.mubr.bf16.mxu0 %v1597_v3  ;;  %v4618_v22 = vmul.f32 0.007874016, %v744_v28  ;;  %v4620_v6 = vmul.f32 0.007874016, %v682_v53 }
 0x239   : > { %v2672_v25 = vpop.eup %2671  ;;  %2687 = vrcp.f32 %v1318_v30  ;;  %v1288_v59 = vadd.f32 1e-06, %v1008_v29  ;;  %v1014_v23 = vand.u32 2147483648, %v4549_v8  ;;  %v1506_v54 = vmul.f32 %v4504_v47, %v1438_v26  ;;  %v5260_v26 = vld [vmem:[#allocation40_spill] sm:$0xff] }
 0x23a   : > { %v4624_v36 = vpop.eup %2673  ;;  %v1227_v42 = vmul.f32 %v2672_v25, %v4546_v45  ;;  %vm1018_vm2 = vcmp.eq.f32.partialorder %v4578_v37, inf  ;;  %2689 = vrsqrt.f32 %v4618_v22  ;;  %v1407_v9 = vmul.f32 %v4411_v5, %v5257_v46 }
 0x23b   : > { %v2676_v38 = vpop.eup %2675  ;;  %2691 = vrcp.f32 %v1287_v16  ;;  %v1319_v40 = vadd.f32 1e-06, %v1225_v62  ;;  %vm1020_vm3 = vcmp.eq.f32.partialorder %v4578_v37, 0.0  ;;  %v1573_v56 = vadd.f32 %v4561_v14, %v1505_v31  ;;  %v748_v53 = vpop.xlane.xlu1 %747 }
 0x23c   : > { %v1574_v18 = vadd.f32 %v4561_v14, %v1506_v54  ;;  %v4634_v63 = vpop.eup %2677  ;;  %v1229_v10 = vsel %vm1228_vm14, %v4546_v45, %v1227_v42  ;;  %v1010_v27 = vmul.f32 %v2676_v38, %v4549_v8  ;;  %v1021_v5 = vand.u32 2147483648, %v4578_v37  ;;  %v5262_v42 = vld [vmem:[#allocation42_spill] sm:$0xff] }
 0x23d   : > { %2693 = vrsqrt.f32 %v4620_v6  ;;  %v4642_v57 = vpop.eup %2679  ;;  %v1232_v17 = vsel %vm1230_vm15, %v1231_v12, %v1229_v10  ;;  %vm1235_vm4 = vcmp.eq.f32.partialorder %v4586_v20, inf  ;;  %v1408_v2 = vmul.f32 %v4445_v41, %v5258_v1  ;;  %v5264_v1 = vld [vmem:[#allocation44_spill] sm:$0xff] }
 0x23e   : > { %2695 = vrcp.f32 %v1288_v59  ;;  %v1613_v33 = vpack.c.bf16 %v1574_v18, %v1573_v56  ;;  %v4649_v35 = vpop.eup %2681  ;;  %v1320_v43 = vadd.f32 1e-06, %v1232_v17  ;;  %v1012_v39 = vsel %vm1011_vm0, %v4549_v8, %v1010_v27 }
 0x23f   : > { %vm1237_vm5 = vcmp.eq.f32.partialorder %v4586_v20, 0.0  ;;  %v1475_v58 = vmul.f32 %v4504_v47, %v1407_v9  ;;  %v4656_v21 = vmul.f32 0.007874016, %v684_v44  ;;  %2697 = vrcp.f32 %v1319_v40 }
 0x240   : > { %v1015_v45 = vsel %vm1013_vm1, %v1014_v23, %v1012_v39  ;;  %2361 = vmatprep.mubr.bf16.mxu1 %v1613_v33  ;;  %v1476_v41 = vmul.f32 %v4504_v47, %v1408_v2  ;;  %v4661_v34 = vmul.f32 0.007874016, %v746_v4  ;;  %v2684_v55 = vpop.eup %2683  ;;  %2699 = vrcp.f32 %v1320_v43  ;;  %v5261_v23 = vld [vmem:[#allocation41_spill] sm:$0xff] }
 0x241   : > { %v1289_v0 = vadd.f32 1e-06, %v1015_v45  ;;  %v1238_v48 = vand.u32 2147483648, %v4586_v20  ;;  %v1439_v30 = vmul.f32 %v4450_v49, %v5259_v32  ;;  %v1017_v15 = vmul.f32 %v2684_v55, %v4578_v37 }
 0x242   : > { %v1543_v12 = vadd.f32 %v4561_v14, %v1475_v58  ;;  %v1544_v8 = vadd.f32 %v4561_v14, %v1476_v41  ;;  %2701 = vrsqrt.f32 %v4656_v21  ;;  %vm1242_vm6 = vcmp.eq.f32.partialorder %v4618_v22, inf }
 0x243   : > { %2703 = vrcp.f32 %v1289_v0  ;;  %vm1244_vm7 = vcmp.eq.f32.partialorder %v4618_v22, 0.0  ;;  %v1245_v28 = vand.u32 2147483648, %v4618_v22  ;;  %v2686_v29 = vpop.eup %2685  ;;  %v1019_v49 = vsel %vm1018_vm2, %v4578_v37, %v1017_v15 }
 0x244   : > { %vm1025_vm8 = vcmp.eq.f32.partialorder %v4620_v6, inf  ;;  %v1028_v3 = vand.u32 2147483648, %v4620_v6  ;;  %v1598_v16 = vpack.c.bf16 %v1544_v8, %v1543_v12  ;;  %2705 = vrsqrt.f32 %v4661_v34 }
 0x245   : > { %v1022_v24 = vsel %vm1020_vm3, %v1021_v5, %v1019_v49  ;;  %v1234_v51 = vmul.f32 %v2686_v29, %v4586_v20  ;;  %vm1027_vm9 = vcmp.eq.f32.partialorder %v4620_v6, 0.0  ;;  %v1440_v31 = vmul.f32 %v4478_v13, %v5260_v26  ;;  %v5266_v49 = vld [vmem:[#allocation46_spill] sm:$0xff] }
 0x246   : > { %v1507_v62 = vmul.f32 %v4504_v47, %v1439_v30  ;;  %v1290_v25 = vadd.f32 1e-06, %v1022_v24  ;;  %2330 = vmatmul.mubr.bf16.gmra.mxu0 %v1598_v16  ;;  %v4686_v59 = vmul.f32 0.007874016, %v748_v53  ;;  %v1409_v54 = vmul.f32 %v4493_v19, %v5261_v23  ;;  %v4692_v46 = vpop.eup %2687 }
 0x247   : > { %v1410_v37 = vmul.f32 %v4518_v50, %v5262_v42  ;;  %v1236_v9 = vsel %vm1235_vm4, %v4586_v20, %v1234_v51  ;;  %v1035_v13 = vand.u32 2147483648, %v4656_v21  ;;  %v1252_v38 = vand.u32 2147483648, %v4661_v34  ;;  %v2690_v56 = vpop.eup %2689  ;;  %v5263_v50 = vld [vmem:[#allocation43_spill] sm:$0xff] }
 0x248   : > { %v1508_v40 = vmul.f32 %v4504_v47, %v1440_v31  ;;  %2707 = vrcp.f32 %v1290_v25  ;;  %v1239_v19 = vsel %vm1237_vm5, %v1238_v48, %v1236_v9  ;;  %v1575_v18 = vadd.f32 %v4561_v14, %v1507_v62  ;;  %v4705_v10 = vpop.eup %2691  ;;  %v5269_v9 = vld [vmem:[#allocation49_spill] sm:$0xff] }
 0x249   : > { %v1441_v44 = vmul.f32 %v4531_v11, %v5263_v50  ;;  %v1321_v27 = vadd.f32 1e-06, %v1239_v19  ;;  %v1241_v5 = vmul.f32 %v2690_v56, %v4618_v22  ;;  %vm1032_vm10 = vcmp.eq.f32.partialorder %v4656_v21, inf }
 0x24a   : > { %v1576_v4 = vadd.f32 %v4561_v14, %v1508_v40  ;;  %2709 = vrsqrt.f32 %v4686_v59  ;;  %v2694_v17 = vpop.eup %2693  ;;  %vm1034_vm11 = vcmp.eq.f32.partialorder %v4656_v21, 0.0  ;;  %v1259_v20 = vand.u32 2147483648, %v4686_v59 }
 0x24b   : > { %v1477_v33 = vmul.f32 %v4504_v47, %v1409_v54  ;;  %v1478_v11 = vmul.f32 %v4504_v47, %v1410_v37  ;;  %v1442_v2 = vmul.f32 %v4539_v52, %v5264_v1  ;;  %v4717_v43 = vpop.eup %2695  ;;  %2711 = vrcp.f32 %v1321_v27 }
 0x24c   : > { %v1243_v39 = vsel %vm1242_vm6, %v4618_v22, %v1241_v5  ;;  %v1024_v58 = vmul.f32 %v2694_v17, %v4620_v6  ;;  %vm1249_vm12 = vcmp.eq.f32.partialorder %v4661_v34, inf  ;;  %v1614_v45 = vpack.c.bf16 %v1576_v4, %v1575_v18  ;;  %v4730_v48 = vpop.eup %2697  ;;  %v5265_v22 = vld [vmem:[#allocation45_spill] sm:$0xff] }
 0x24d   : > { %v1246_v41 = vsel %vm1244_vm7, %v1245_v28, %v1243_v39  ;;  %vm1251_vm13 = vcmp.eq.f32.partialorder %v4661_v34, 0.0  ;;  %v1545_v55 = vadd.f32 %v4561_v14, %v1477_v33  ;;  %v1546_v52 = vadd.f32 %v4561_v14, %v1478_v11  ;;  %v4738_v8 = vpop.eup %2699 }
 0x24e   : > { %v1509_v0 = vmul.f32 %v4504_v47, %v1441_v44  ;;  %v1322_v32 = vadd.f32 1e-06, %v1246_v41  ;;  %v1026_v30 = vsel %vm1025_vm8, %v4620_v6, %v1024_v58  ;;  %2362 = vmatmul.mubr.bf16.gmra.mxu1 %v1614_v45  ;;  %v1510_v15 = vmul.f32 %v4504_v47, %v1442_v2  ;;  %v5270_v44 = vld [vmem:[#allocation50_spill] sm:$0xff]  ;;  %v5271_v58 = vld [vmem:[#allocation51_spill] sm:$0xff]  ;;  %v5272_v41 = vld [vmem:[#allocation12_spill] sm:$0xff] }
 0x24f   : > { %v1411_v12 = vmul.f32 %v4556_v61, %v5265_v22  ;;  %v1029_v28 = vsel %vm1027_vm9, %v1028_v3, %v1026_v30  ;;  %v1599_v53 = vpack.c.bf16 %v1546_v52, %v1545_v55  ;;  %v1412_v16 = vmul.f32 %v4580_v60, %v5266_v49  ;;  %v2702_v24 = vpop.eup %2701  ;;  %v5267_v3 = vld [vmem:[#allocation47_spill] sm:$0xff]  ;;  %v5268_v60 = vld [vmem:[#allocation48_spill] sm:$0xff] }
 0x250   : > { %v1577_v29 = vadd.f32 %v4561_v14, %v1509_v0  ;;  %2713 = vrcp.f32 %v1322_v32  ;;  %v1291_v51 = vadd.f32 1e-06, %v1029_v28  ;;  %v1578_v26 = vadd.f32 %v4561_v14, %v1510_v15  ;;  %v4747_v62 = vpop.eup %2703  ;;  %v5273_v0 = vld [vmem:[#allocation13_spill] sm:$0xff] }
 0x251   : > { %v1479_v31 = vmul.f32 %v4504_v47, %v1411_v12  ;;  %v1031_v61 = vmul.f32 %v2702_v24, %v4656_v21  ;;  %vm1256_vm14 = vcmp.eq.f32.partialorder %v4686_v59, inf  ;;  %2333 = vmatprep.mubr.bf16.mxu0 %v1599_v53  ;;  %v1480_v6 = vmul.f32 %v4504_v47, %v1412_v16  ;;  %v2706_v54 = vpop.eup %2705  ;;  %v5274_v12 = vld [vmem:[#allocation14_spill] sm:$0xff] }
 0x252   : > { %v1443_v25 = vmul.f32 %v4613_v7, %v5267_v3  ;;  %v1444_v23 = vmul.f32 %v4624_v36, %v5268_v60  ;;  %2715 = vrcp.f32 %v1291_v51  ;;  %vm1258_vm15 = vcmp.eq.f32.partialorder %v4686_v59, 0.0  ;;  %v5278_v60 = vld [vmem:[#allocation18_spill] sm:$0xff] }
 0x253   : > { %v1615_v42 = vpack.c.bf16 %v1578_v26, %v1577_v29  ;;  %v1547_v37 = vadd.f32 %v4561_v14, %v1479_v31  ;;  %v1413_v40 = vmul.f32 %v4634_v63, %v5269_v9  ;;  %v1033_v56 = vsel %vm1032_vm10, %v4656_v21, %v1031_v61  ;;  %v5275_v29 = vld [vmem:[#allocation15_spill] sm:$0xff]  ;;  %v5276_v31 = vld [vmem:[#allocation16_spill] sm:$0xff] }
 0x254   : > { %v1248_v19 = vmul.f32 %v2706_v54, %v4661_v34  ;;  %v1548_v7 = vadd.f32 %v4561_v14, %v1480_v6  ;;  %v1511_v36 = vmul.f32 %v4504_v47, %v1443_v25  ;;  %v1036_v18 = vsel %vm1034_vm11, %v1035_v13, %v1033_v56 }
 0x255   : > { %2365 = vmatprep.mubr.bf16.mxu1 %v1615_v42  ;;  %v1512_v50 = vmul.f32 %v4504_v47, %v1444_v23  ;;  %v1414_v63 = vmul.f32 %v4642_v57, %v5270_v44  ;;  %v1481_v27 = vmul.f32 %v4504_v47, %v1413_v40  ;;  %v1292_v5 = vadd.f32 1e-06, %v1036_v18  ;;  %v2708_v11 = vpop.eup %2707  ;;  %v5279_v42 = vld [vmem:[#allocation19_spill] sm:$0xff] }
 0x256   : > { %v1250_v4 = vsel %vm1249_vm12, %v4661_v34, %v1248_v19  ;;  %v1600_v17 = vpack.c.bf16 %v1548_v7, %v1547_v37  ;;  %v1579_v33 = vadd.f32 %v4561_v14, %v1511_v36  ;;  %v1445_v45 = vmul.f32 %v4649_v35, %v5271_v58  ;;  %v5280_v19 = vld [vmem:[#allocation20_spill] sm:$0xff] }
 0x257   : > { %v1253_v21 = vsel %vm1251_vm13, %v1252_v38, %v1250_v4  ;;  %v1580_v13 = vadd.f32 %v4561_v14, %v1512_v50  ;;  %v1482_v57 = vmul.f32 %v4504_v47, %v1414_v63  ;;  %v1549_v1 = vadd.f32 %v4561_v14, %v1481_v27  ;;  %v2710_v2 = vpop.eup %2709  ;;  %v5281_v27 = vld [vmem:[#allocation21_spill] sm:$0xff] }
 0x258   : > { %2717 = vrcp.f32 %v1292_v5  ;;  %v1323_v39 = vadd.f32 1e-06, %v1253_v21  ;;  %2334 = vmatmul.mubr.bf16.gmra.mxu0 %v1600_v17  ;;  %v1446_v55 = vmul.f32 %v4692_v46, %v5272_v41  ;;  %v1255_v52 = vmul.f32 %v2710_v2, %v4686_v59  ;;  %v2712_v30 = vpop.eup %2711 }
 0x259   : > { %v1616_v34 = vpack.c.bf16 %v1580_v13, %v1579_v33  ;;  %v1550_v38 = vadd.f32 %v4561_v14, %v1482_v57  ;;  %v1415_v32 = vmul.f32 %v4705_v10, %v5273_v0  ;;  %v1513_v15 = vmul.f32 %v4504_v47, %v1445_v45  ;;  %v5282_v57 = vld [vmem:[#allocation22_spill] sm:$0xff]  ;;  %v5283_v45 = vld [vmem:[#allocation52_spill] sm:$0xff]  ;;  %v5284_v0 = vld [vmem:[#allocation23_spill] sm:$0xff] }
 0x25a   : > { %2719 = vrcp.f32 %v1323_v39  ;;  %v1514_v22 = vmul.f32 %v4504_v47, %v1446_v55  ;;  %v1416_v35 = vmul.f32 %v4717_v43, %v5274_v12  ;;  %v1257_v46 = vsel %vm1256_vm14, %v4686_v59, %v1255_v52 }
 0x25b   : > { %2366 = vmatmul.mubr.bf16.gmra.mxu1 %v1616_v34  ;;  %v1601_v28 = vpack.c.bf16 %v1550_v38, %v1549_v1  ;;  %v1483_v53 = vmul.f32 %v4504_v47, %v1415_v32  ;;  %v1447_v10 = vmul.f32 %v4730_v48, %v5275_v29  ;;  %v1260_v49 = vsel %vm1258_vm15, %v1259_v20, %v1257_v46  ;;  %v5277_v20 = vld [vmem:[#allocation17_spill] sm:$0xff]  ;;  %v4843_v46 = vld [vmem:[#allocation5 + $0x2] ss:$0 sm:$0xff] }
 0x25c   : > { %v1581_v16 = vadd.f32 %v4561_v14, %v1513_v15  ;;  %v1582_v43 = vadd.f32 %v4561_v14, %v1514_v22  ;;  %v1484_v24 = vmul.f32 %v4504_v47, %v1416_v35  ;;  %v1324_v51 = vadd.f32 1e-06, %v1260_v49 }
 0x25d   : > { %2337 = vmatprep.mubr.bf16.mxu0 %v1601_v28  ;;  %v1551_v26 = vadd.f32 %v4561_v14, %v1483_v53  ;;  %v1448_v61 = vmul.f32 %v4738_v8, %v5276_v31  ;;  %v1515_v48 = vmul.f32 %v4504_v47, %v1447_v10  ;;  %v2714_v6 = vpop.eup %2713  ;;  %v1417_v25 = vmul.f32 %v4747_v62, %v5277_v20  ;;  %v2725_v10 = vld [vmem:[%s3112_s19 + $0x10] sm:$0xff] }
 0x25e   : > { %v1617_v3 = vpack.c.bf16 %v1582_v43, %v1581_v16  ;;  %v1552_v59 = vadd.f32 %v4561_v14, %v1484_v24  ;;  %v1418_v23 = vmul.f32 %v2708_v11, %v5278_v60  ;;  %2721 = vrcp.f32 %v1324_v51 }
 0x25f   : > { %v1516_v54 = vmul.f32 %v4504_v47, %v1448_v61  ;;  %v1449_v37 = vmul.f32 %v2712_v30, %v5279_v42  ;;  %v2716_v9 = vpop.eup %2715  ;;  %v1485_v8 = vmul.f32 %v4504_v47, %v1417_v25  ;;  %v1450_v7 = vmul.f32 %v2714_v6, %v5280_v19  ;;  %v2728_v6 = vld [vmem:[%s3112_s19 + $0x8] sm:$0xff]  ;;  %v2729_v25 = vld [vmem:[%s3112_s19 + $0x110] sm:$0xff]  ;;  %v2730_v42 = vld [vmem:[%s3112_s19 + $0x100] sm:$0xff] }
 0x260   : > { %2369 = vmatprep.mubr.bf16.mxu1 %v1617_v3  ;;  %v1602_v40 = vpack.c.bf16 %v1552_v59, %v1551_v26  ;;  %v1486_v56 = vmul.f32 %v4504_v47, %v1418_v23  ;;  %v1583_v36 = vadd.f32 %v4561_v14, %v1515_v48  ;;  %v1419_v5 = vmul.f32 %v2716_v9, %v5281_v27  ;;  %v2727_v26 = vld [vmem:[%s3112_s19 + $0x18] sm:$0xff] }
 0x261   : > { %v1584_v62 = vadd.f32 %v4561_v14, %v1516_v54  ;;  %v1517_v18 = vmul.f32 %v4504_v47, %v1449_v37  ;;  %v1553_v50 = vadd.f32 %v4561_v14, %v1485_v8  ;;  %v1518_v63 = vmul.f32 %v4504_v47, %v1450_v7  ;;  %v2731_v8 = vld [vmem:[%s3112_s19 + $0x118] sm:$0xff]  ;;  %v2732_v7 = vld [vmem:[%s3112_s19 + $0x108] sm:$0xff] }
 0x262   : > { %2338 = vmatmul.mubr.bf16.gmra.mxu0 %v1602_v40  ;;  %v1554_v44 = vadd.f32 %v4561_v14, %v1486_v56  ;;  %v1487_v2 = vmul.f32 %v4504_v47, %v1419_v5 }
 0x263   : > { %v1618_v4 = vpack.c.bf16 %v1584_v62, %v1583_v36  ;;  %v1585_v33 = vadd.f32 %v4561_v14, %v1517_v18  ;;  %v1586_v11 = vadd.f32 %v4561_v14, %v1518_v63 }
 0x264   : > { %v1603_v17 = vpack.c.bf16 %v1554_v44, %v1553_v50  ;;  %v1555_v55 = vadd.f32 %v4561_v14, %v1487_v2  ;;  %v2733_v44 = vld [vmem:[%s3112_s19 + $0x30] sm:$0xff] }
 0x265   : > { %v2718_v21 = vpop.eup %2717  ;;  %2370 = vmatmul.mubr.bf16.gmra.mxu1 %v1618_v4  ;;  %v1619_v13 = vpack.c.bf16 %v1586_v11, %v1585_v33  ;;  %v2734_v4 = vld [vmem:[%s3112_s19 + $0x20] sm:$0xff] }
 0x266   : > { %2341 = vmatprep.mubr.bf16.mxu0 %v1603_v17  ;;  %v1420_v1 = vmul.f32 %v2718_v21, %v5282_v57 }
 0x267   : > { %v2720_v39 = vpop.eup %2719  ;;  %2373 = vmatprep.mubr.bf16.mxu1 %v1619_v13  ;;  %v2735_v13 = vld [vmem:[%s3112_s19 + $0x38] sm:$0xff] }
 0x268   : > { %v1488_v58 = vmul.f32 %v4504_v47, %v1420_v1  ;;  %v1451_v41 = vmul.f32 %v2720_v39, %v5283_v45 }
 0x26a   : > { %v1556_v52 = vadd.f32 %v4561_v14, %v1488_v58  ;;  %v1519_v30 = vmul.f32 %v4504_v47, %v1451_v41  ;;  %v2736_v58 = vld [vmem:[%s3112_s19 + $0x130] sm:$0xff]  ;;  %v2737_v41 = vld [vmem:[%s3112_s19 + $0x28] sm:$0xff] }
 0x26b   : > { %v2722_v34 = vpop.eup %2721 }
 0x26c   : > { %v1604_v38 = vpack.c.bf16 %v1556_v52, %v1555_v55  ;;  %v1452_v32 = vmul.f32 %v2722_v34, %v5284_v0  ;;  %v1587_v22 = vadd.f32 %v4561_v14, %v1519_v30 }
 0x26e   : > { %2342 = vmatmul.mubr.bf16.gmra.mxu0 %v1604_v38  ;;  %v1520_v15 = vmul.f32 %v4504_v47, %v1452_v32  ;;  %v2726_v47 = vld [vmem:[%s3112_s19] sm:$0xff] }
 0x26f   : > { %v2738_v38 = vld [vmem:[%s3112_s19 + $0x120] sm:$0xff] }
 0x270   : > { %v1588_v12 = vadd.f32 %v4561_v14, %v1520_v15  ;;  %v2739_v15 = vld [vmem:[%s3112_s19 + $0x138] sm:$0xff] }
 0x272   : > { %v1620_v35 = vpack.c.bf16 %v1588_v12, %v1587_v22 }
 0x274   : > { %2374 = vmatmul.mubr.bf16.gmra.mxu1 %v1620_v35  ;;  %v2740_v35 = vld [vmem:[%s3112_s19 + $0x128] sm:$0xff] }
 0x298   : > { %v2315_v28 = vpop.f32.mrf.mxu0 }
 0x299   : > { %v1732_v53 = vadd.f32 %v2315_v28, %v4843_v46 }
 0x29a   : > { %v1723_v29 = vpop.f32.mrf.mxu0 }
 0x29b   : > { %v1980_v49 = vadd.f32 %v2725_v10, %v1732_v53  ;;  %v1724_v16 = vadd.f32 %v4843_v46, %v1723_v29 }
 0x29c   : > { %v2316_v43 = vpop.f32.mrf.mxu0 }
 0x29d   : > { %2044 = vst [vmem:[%s4850_s23 + $0x10] sm:$0xff] %v1980_v49  ;;  %v1978_v14 = vadd.f32 %v2726_v47, %v1724_v16  ;;  %v1735_v24 = vadd.f32 %v2316_v43, %v4843_v46  ;;  %v2741_v49 = vld [vmem:[%s3112_s19 + $0x50] sm:$0xff] }
 0x29e   : > { %v1726_v51 = vpop.f32.mrf.mxu0 }
 0x29f   : > { %2042 = vst [vmem:[%s4850_s23] sm:$0xff] %v1978_v14  ;;  %v1981_v31 = vadd.f32 %v2727_v26, %v1735_v24  ;;  %v1727_v61 = vadd.f32 %v4843_v46, %v1726_v51  ;;  %v2742_v14 = vld [vmem:[%s3112_s19 + $0x40] sm:$0xff] }
 0x2a1   : > { %2045 = vst [vmem:[%s4850_s23 + $0x18] sm:$0xff] %v1981_v31  ;;  %v2347_v48 = vpop.f32.mrf.mxu1  ;;  %v1979_v3 = vadd.f32 %v2728_v6, %v1727_v61  ;;  %v2743_v61 = vld [vmem:[%s3112_s19 + $0x58] sm:$0xff] }
 0x2a2   : > { %v1860_v59 = vadd.f32 %v2347_v48, %v4843_v46 }
 0x2a3   : > { %2043 = vst [vmem:[%s4850_s23 + $0x8] sm:$0xff] %v1979_v3  ;;  %v1851_v20 = vpop.f32.mrf.mxu1 }
 0x2a4   : > { %v2012_v60 = vadd.f32 %v2729_v25, %v1860_v59  ;;  %v1852_v23 = vadd.f32 %v4843_v46, %v1851_v20  ;;  %v2744_v20 = vld [vmem:[%s3112_s19 + $0x150] sm:$0xff] }
 0x2a5   : > { %v2348_v54 = vpop.f32.mrf.mxu1 }
 0x2a6   : > { %2076 = vst [vmem:[%s4850_s23 + $0x110] sm:$0xff] %v2012_v60  ;;  %v2010_v37 = vadd.f32 %v2730_v42, %v1852_v23  ;;  %v1863_v9 = vadd.f32 %v2348_v54, %v4843_v46  ;;  %v2745_v60 = vld [vmem:[%s3112_s19 + $0x48] sm:$0xff] }
 0x2a7   : > { %v1854_v40 = vpop.f32.mrf.mxu1 }
 0x2a8   : > { %2074 = vst [vmem:[%s4850_s23 + $0x100] sm:$0xff] %v2010_v37  ;;  %v2013_v56 = vadd.f32 %v2731_v8, %v1863_v9  ;;  %v1855_v19 = vadd.f32 %v4843_v46, %v1854_v40  ;;  %v2746_v37 = vld [vmem:[%s3112_s19 + $0x140] sm:$0xff] }
 0x2aa   : > { %2077 = vst [vmem:[%s4850_s23 + $0x118] sm:$0xff] %v2013_v56  ;;  %v2011_v36 = vadd.f32 %v2732_v7, %v1855_v19  ;;  %v2747_v56 = vld [vmem:[%s3112_s19 + $0x158] sm:$0xff] }
 0x2ac   : > { %2075 = vst [vmem:[%s4850_s23 + $0x108] sm:$0xff] %v2011_v36  ;;  %v2748_v36 = vld [vmem:[%s3112_s19 + $0x148] sm:$0xff] }
 0x2b3   : > { %v2319_v62 = vpop.f32.mrf.mxu0 }
 0x2b4   : > { %v1748_v18 = vadd.f32 %v2319_v62, %v4843_v46 }
 0x2b5   : > { %v1739_v50 = vpop.f32.mrf.mxu0 }
 0x2b6   : > { %v1984_v63 = vadd.f32 %v2733_v44, %v1748_v18  ;;  %v1740_v27 = vadd.f32 %v4843_v46, %v1739_v50 }
 0x2b7   : > { %v2320_v5 = vpop.f32.mrf.mxu0 }
 0x2b8   : > { %2048 = vst [vmem:[%s4850_s23 + $0x30] sm:$0xff] %v1984_v63  ;;  %v1982_v17 = vadd.f32 %v2734_v4, %v1740_v27  ;;  %v1751_v33 = vadd.f32 %v2320_v5, %v4843_v46  ;;  %v2749_v63 = vld [vmem:[%s3112_s19 + $0x70] sm:$0xff] }
 0x2b9   : > { %v2351_v11 = vpop.f32.mrf.mxu1  ;;  %v1742_v21 = vpop.f32.mrf.mxu0 }
 0x2ba   : > { %2046 = vst [vmem:[%s4850_s23 + $0x20] sm:$0xff] %v1982_v17  ;;  %v1985_v57 = vadd.f32 %v2735_v13, %v1751_v33  ;;  %v1876_v1 = vadd.f32 %v2351_v11, %v4843_v46  ;;  %v1743_v2 = vadd.f32 %v4843_v46, %v1742_v21  ;;  %v2750_v17 = vld [vmem:[%s3112_s19 + $0x60] sm:$0xff]  ;;  %v2751_v13 = vld [vmem:[%s3112_s19 + $0x78] sm:$0xff] }
 0x2bb   : > { %v1867_v39 = vpop.f32.mrf.mxu1 }
 0x2bc   : > { %2049 = vst [vmem:[%s4850_s23 + $0x38] sm:$0xff] %v1985_v57  ;;  %v2016_v45 = vadd.f32 %v2736_v58, %v1876_v1  ;;  %v1983_v55 = vadd.f32 %v2737_v41, %v1743_v2  ;;  %v1868_v52 = vadd.f32 %v4843_v46, %v1867_v39  ;;  %v2752_v58 = vld [vmem:[%s3112_s19 + $0x68] sm:$0xff] }
 0x2bd   : > { %v2352_v34 = vpop.f32.mrf.mxu1 }
 0x2be   : > { %2080 = vst [vmem:[%s4850_s23 + $0x130] sm:$0xff] %v2016_v45  ;;  %2047 = vst [vmem:[%s4850_s23 + $0x28] sm:$0xff] %v1983_v55  ;;  %v2014_v0 = vadd.f32 %v2738_v38, %v1868_v52  ;;  %v1879_v32 = vadd.f32 %v2352_v34, %v4843_v46  ;;  %v2753_v55 = vld [vmem:[%s3112_s19 + $0x170] sm:$0xff] }
 0x2bf   : > { %v1870_v30 = vpop.f32.mrf.mxu1 }
 0x2c0   : > { %2078 = vst [vmem:[%s4850_s23 + $0x120] sm:$0xff] %v2014_v0  ;;  %v2017_v22 = vadd.f32 %v2739_v15, %v1879_v32  ;;  %v1871_v12 = vadd.f32 %v4843_v46, %v1870_v30  ;;  %v2754_v0 = vld [vmem:[%s3112_s19 + $0x160] sm:$0xff] }
 0x2c2   : > { %2081 = vst [vmem:[%s4850_s23 + $0x138] sm:$0xff] %v2017_v22  ;;  %v2015_v28 = vadd.f32 %v2740_v35, %v1871_v12  ;;  %v2755_v22 = vld [vmem:[%s3112_s19 + $0x178] sm:$0xff] }
 0x2c4   : > { %2079 = vst [vmem:[%s4850_s23 + $0x128] sm:$0xff] %v2015_v28  ;;  %v2756_v28 = vld [vmem:[%s3112_s19 + $0x168] sm:$0xff] }
 0x2ce   : > { %v2323_v53 = vpop.f32.mrf.mxu0 }
 0x2cf   : > { %v1764_v29 = vadd.f32 %v2323_v53, %v4843_v46 }
 0x2d0   : > { %v1755_v10 = vpop.f32.mrf.mxu0 }
 0x2d1   : > { %v1988_v16 = vadd.f32 %v2741_v49, %v1764_v29  ;;  %v1756_v43 = vadd.f32 %v4843_v46, %v1755_v10 }
 0x2d2   : > { %v2324_v47 = vpop.f32.mrf.mxu0 }
 0x2d3   : > { %2052 = vst [vmem:[%s4850_s23 + $0x50] sm:$0xff] %v1988_v16  ;;  %v1986_v24 = vadd.f32 %v2742_v14, %v1756_v43  ;;  %v1767_v51 = vadd.f32 %v2324_v47, %v4843_v46  ;;  %v2757_v16 = vld [vmem:[%s3112_s19 + $0x90] sm:$0xff] }
 0x2d4   : > { %v2355_v26 = vpop.f32.mrf.mxu1  ;;  %v1758_v31 = vpop.f32.mrf.mxu0 }
 0x2d5   : > { %2050 = vst [vmem:[%s4850_s23 + $0x40] sm:$0xff] %v1986_v24  ;;  %v1989_v48 = vadd.f32 %v2743_v61, %v1767_v51  ;;  %v1892_v6 = vadd.f32 %v2355_v26, %v4843_v46  ;;  %v1759_v3 = vadd.f32 %v4843_v46, %v1758_v31  ;;  %v2758_v24 = vld [vmem:[%s3112_s19 + $0x80] sm:$0xff]  ;;  %v2759_v61 = vld [vmem:[%s3112_s19 + $0x98] sm:$0xff] }
 0x2d6   : > { %v1883_v59 = vpop.f32.mrf.mxu1 }
 0x2d7   : > { %2053 = vst [vmem:[%s4850_s23 + $0x58] sm:$0xff] %v1989_v48  ;;  %v2020_v25 = vadd.f32 %v2744_v20, %v1892_v6  ;;  %v1987_v23 = vadd.f32 %v2745_v60, %v1759_v3  ;;  %v1884_v54 = vadd.f32 %v4843_v46, %v1883_v59  ;;  %v2760_v20 = vld [vmem:[%s3112_s19 + $0x88] sm:$0xff] }
 0x2d8   : > { %v2356_v42 = vpop.f32.mrf.mxu1 }
 0x2d9   : > { %2084 = vst [vmem:[%s4850_s23 + $0x150] sm:$0xff] %v2020_v25  ;;  %2051 = vst [vmem:[%s4850_s23 + $0x48] sm:$0xff] %v1987_v23  ;;  %v2018_v9 = vadd.f32 %v2746_v37, %v1884_v54  ;;  %v1895_v40 = vadd.f32 %v2356_v42, %v4843_v46  ;;  %v2761_v23 = vld [vmem:[%s3112_s19 + $0x190] sm:$0xff] }
 0x2da   : > { %v1886_v8 = vpop.f32.mrf.mxu1 }
 0x2db   : > { %2082 = vst [vmem:[%s4850_s23 + $0x140] sm:$0xff] %v2018_v9  ;;  %v2021_v19 = vadd.f32 %v2747_v56, %v1895_v40  ;;  %v1887_v7 = vadd.f32 %v4843_v46, %v1886_v8  ;;  %v2762_v9 = vld [vmem:[%s3112_s19 + $0x180] sm:$0xff] }
 0x2dd   : > { %2085 = vst [vmem:[%s4850_s23 + $0x158] sm:$0xff] %v2021_v19  ;;  %v2019_v62 = vadd.f32 %v2748_v36, %v1887_v7  ;;  %v2763_v19 = vld [vmem:[%s3112_s19 + $0x198] sm:$0xff] }
 0x2df   : > { %2083 = vst [vmem:[%s4850_s23 + $0x148] sm:$0xff] %v2019_v62  ;;  %v2764_v62 = vld [vmem:[%s3112_s19 + $0x188] sm:$0xff] }
 0x2ea   : > { %v2327_v18 = vpop.f32.mrf.mxu0 }
 0x2eb   : > { %v1780_v50 = vadd.f32 %v2327_v18, %v4843_v46 }
 0x2ec   : > { %v1771_v44 = vpop.f32.mrf.mxu0 }
 0x2ed   : > { %v1992_v27 = vadd.f32 %v2749_v63, %v1780_v50  ;;  %v1772_v5 = vadd.f32 %v4843_v46, %v1771_v44 }
 0x2ee   : > { %v2328_v4 = vpop.f32.mrf.mxu0 }
 0x2ef   : > { %2056 = vst [vmem:[%s4850_s23 + $0x70] sm:$0xff] %v1992_v27  ;;  %v1990_v33 = vadd.f32 %v2750_v17, %v1772_v5  ;;  %v1783_v11 = vadd.f32 %v2328_v4, %v4843_v46  ;;  %v2765_v27 = vld [vmem:[%s3112_s19 + $0xb0] sm:$0xff] }
 0x2f0   : > { %v1774_v21 = vpop.f32.mrf.mxu0 }
 0x2f1   : > { %2054 = vst [vmem:[%s4850_s23 + $0x60] sm:$0xff] %v1990_v33  ;;  %v1993_v57 = vadd.f32 %v2751_v13, %v1783_v11  ;;  %v1775_v1 = vadd.f32 %v4843_v46, %v1774_v21  ;;  %v2766_v21 = vld [vmem:[%s3112_s19 + $0xa0] sm:$0xff] }
 0x2f2   : > { %v2359_v2 = vpop.f32.mrf.mxu1 }
 0x2f3   : > { %2057 = vst [vmem:[%s4850_s23 + $0x78] sm:$0xff] %v1993_v57  ;;  %v1908_v39 = vadd.f32 %v2359_v2, %v4843_v46  ;;  %v1991_v45 = vadd.f32 %v2752_v58, %v1775_v1  ;;  %v2767_v2 = vld [vmem:[%s3112_s19 + $0x1b0] sm:$0xff] }
 0x2f4   : > { %v1899_v41 = vpop.f32.mrf.mxu1 }
 0x2f5   : > { %v2024_v52 = vadd.f32 %v2753_v55, %v1908_v39  ;;  %2055 = vst [vmem:[%s4850_s23 + $0x68] sm:$0xff] %v1991_v45  ;;  %v1900_v34 = vadd.f32 %v4843_v46, %v1899_v41  ;;  %v2768_v41 = vld [vmem:[%s3112_s19 + $0xb8] sm:$0xff] }
 0x2f6   : > { %v2360_v38 = vpop.f32.mrf.mxu1 }
 0x2f7   : > { %2088 = vst [vmem:[%s4850_s23 + $0x170] sm:$0xff] %v2024_v52  ;;  %v2022_v32 = vadd.f32 %v2754_v0, %v1900_v34  ;;  %v1911_v30 = vadd.f32 %v2360_v38, %v4843_v46  ;;  %v2769_v38 = vld [vmem:[%s3112_s19 + $0x1a0] sm:$0xff] }
 0x2f8   : > { %v1902_v15 = vpop.f32.mrf.mxu1 }
 0x2f9   : > { %2086 = vst [vmem:[%s4850_s23 + $0x160] sm:$0xff] %v2022_v32  ;;  %v2025_v12 = vadd.f32 %v2755_v22, %v1911_v30  ;;  %v1903_v35 = vadd.f32 %v4843_v46, %v1902_v15  ;;  %v2770_v30 = vld [vmem:[%s3112_s19 + $0xa8] sm:$0xff] }
 0x2fb   : > { %2089 = vst [vmem:[%s4850_s23 + $0x178] sm:$0xff] %v2025_v12  ;;  %v2023_v53 = vadd.f32 %v2756_v28, %v1903_v35  ;;  %v2771_v12 = vld [vmem:[%s3112_s19 + $0x1b8] sm:$0xff] }
 0x2fd   : > { %2087 = vst [vmem:[%s4850_s23 + $0x168] sm:$0xff] %v2023_v53 }
 0x306   : > { %v2331_v29 = vpop.f32.mrf.mxu0 }
 0x307   : > { %v1796_v10 = vadd.f32 %v2331_v29, %v4843_v46 }
 0x308   : > { %v1787_v49 = vpop.f32.mrf.mxu0 }
 0x309   : > { %v1996_v43 = vadd.f32 %v2757_v16, %v1796_v10  ;;  %v1788_v47 = vadd.f32 %v4843_v46, %v1787_v49  ;;  %v2772_v10 = vld [vmem:[%s3112_s19 + $0x1a8] sm:$0xff] }
 0x30a   : > { %v2332_v14 = vpop.f32.mrf.mxu0 }
 0x30b   : > { %2060 = vst [vmem:[%s4850_s23 + $0x90] sm:$0xff] %v1996_v43  ;;  %v1994_v51 = vadd.f32 %v2758_v24, %v1788_v47  ;;  %v1799_v26 = vadd.f32 %v2332_v14, %v4843_v46  ;;  %v2773_v43 = vld [vmem:[%s3112_s19 + $0xd0] sm:$0xff] }
 0x30c   : > { %v1790_v31 = vpop.f32.mrf.mxu0 }
 0x30d   : > { %2058 = vst [vmem:[%s4850_s23 + $0x80] sm:$0xff] %v1994_v51  ;;  %v1997_v48 = vadd.f32 %v2759_v61, %v1799_v26  ;;  %v1791_v3 = vadd.f32 %v4843_v46, %v1790_v31  ;;  %v2774_v31 = vld [vmem:[%s3112_s19 + $0xc0] sm:$0xff] }
 0x30e   : > { %v2363_v6 = vpop.f32.mrf.mxu1 }
 0x30f   : > { %v1924_v59 = vadd.f32 %v2363_v6, %v4843_v46  ;;  %2061 = vst [vmem:[%s4850_s23 + $0x98] sm:$0xff] %v1997_v48  ;;  %v1995_v25 = vadd.f32 %v2760_v20, %v1791_v3  ;;  %v2775_v3 = vld [vmem:[%s3112_s19 + $0x1d0] sm:$0xff] }
 0x310   : > { %v1915_v60 = vpop.f32.mrf.mxu1 }
 0x311   : > { %v2028_v54 = vadd.f32 %v2761_v23, %v1924_v59  ;;  %v1916_v42 = vadd.f32 %v4843_v46, %v1915_v60  ;;  %2059 = vst [vmem:[%s4850_s23 + $0x88] sm:$0xff] %v1995_v25  ;;  %v2776_v60 = vld [vmem:[%s3112_s19 + $0xd8] sm:$0xff] }
 0x312   : > { %v2364_v37 = vpop.f32.mrf.mxu1 }
 0x313   : > { %2092 = vst [vmem:[%s4850_s23 + $0x190] sm:$0xff] %v2028_v54  ;;  %v2026_v40 = vadd.f32 %v2762_v9, %v1916_v42  ;;  %v1927_v8 = vadd.f32 %v2364_v37, %v4843_v46  ;;  %v2777_v37 = vld [vmem:[%s3112_s19 + $0x1c0] sm:$0xff] }
 0x314   : > { %v1918_v56 = vpop.f32.mrf.mxu1 }
 0x315   : > { %2090 = vst [vmem:[%s4850_s23 + $0x180] sm:$0xff] %v2026_v40  ;;  %v2029_v7 = vadd.f32 %v2763_v19, %v1927_v8  ;;  %v1919_v36 = vadd.f32 %v4843_v46, %v1918_v56  ;;  %v2778_v8 = vld [vmem:[%s3112_s19 + $0xc8] sm:$0xff] }
 0x317   : > { %2093 = vst [vmem:[%s4850_s23 + $0x198] sm:$0xff] %v2029_v7  ;;  %v2027_v18 = vadd.f32 %v2764_v62, %v1919_v36  ;;  %v2779_v7 = vld [vmem:[%s3112_s19 + $0x1d8] sm:$0xff] }
 0x318   : > { %v2335_v50 = vpop.f32.mrf.mxu0 }
 0x319   : > { %v1812_v44 = vadd.f32 %v2335_v50, %v4843_v46  ;;  %2091 = vst [vmem:[%s4850_s23 + $0x188] sm:$0xff] %v2027_v18  ;;  %v2780_v18 = vld [vmem:[%s3112_s19 + $0x1c8] sm:$0xff] }
 0x31a   : > { %v1803_v63 = vpop.f32.mrf.mxu0 }
 0x31b   : > { %v2000_v5 = vadd.f32 %v2765_v27, %v1812_v44  ;;  %v1804_v4 = vadd.f32 %v4843_v46, %v1803_v63  ;;  %v2367_v17 = vpop.f32.mrf.mxu1 }
 0x31c   : > { %v2336_v33 = vpop.f32.mrf.mxu0  ;;  %v1940_v11 = vadd.f32 %v2367_v17, %v4843_v46 }
 0x31d   : > { %2064 = vst [vmem:[%s4850_s23 + $0xb0] sm:$0xff] %v2000_v5  ;;  %v1998_v13 = vadd.f32 %v2766_v21, %v1804_v4  ;;  %v1815_v57 = vadd.f32 %v2336_v33, %v4843_v46  ;;  %v1931_v1 = vpop.f32.mrf.mxu1  ;;  %v2781_v5 = vld [vmem:[%s3112_s19 + $0xf0] sm:$0xff] }
 0x31e   : > { %v2032_v39 = vadd.f32 %v2767_v2, %v1940_v11  ;;  %v1806_v58 = vpop.f32.mrf.mxu0  ;;  %v1932_v45 = vadd.f32 %v4843_v46, %v1931_v1  ;;  %v2782_v11 = vld [vmem:[%s3112_s19 + $0xe0] sm:$0xff]  ;;  %v2783_v1 = vld [vmem:[%s3112_s19 + $0xf8] sm:$0xff] }
 0x31f   : > { %2062 = vst [vmem:[%s4850_s23 + $0xa0] sm:$0xff] %v1998_v13  ;;  %v2001_v55 = vadd.f32 %v2768_v41, %v1815_v57  ;;  %v1807_v52 = vadd.f32 %v4843_v46, %v1806_v58  ;;  %v2368_v34 = vpop.f32.mrf.mxu1  ;;  %v2784_v41 = vld [vmem:[%s3112_s19 + $0xe8] sm:$0xff] }
 0x320   : > { %2096 = vst [vmem:[%s4850_s23 + $0x1b0] sm:$0xff] %v2032_v39  ;;  %v2030_v0 = vadd.f32 %v2769_v38, %v1932_v45  ;;  %v1943_v32 = vadd.f32 %v2368_v34, %v4843_v46  ;;  %v2785_v34 = vld [vmem:[%s3112_s19 + $0x1f0] sm:$0xff] }
 0x321   : > { %2065 = vst [vmem:[%s4850_s23 + $0xb8] sm:$0xff] %v2001_v55  ;;  %v1999_v15 = vadd.f32 %v2770_v30, %v1807_v52  ;;  %v1934_v22 = vpop.f32.mrf.mxu1  ;;  %v2786_v30 = vld [vmem:[%s3112_s19 + $0x1e0] sm:$0xff] }
 0x322   : > { %2094 = vst [vmem:[%s4850_s23 + $0x1a0] sm:$0xff] %v2030_v0  ;;  %v2033_v35 = vadd.f32 %v2771_v12, %v1943_v32  ;;  %v1935_v28 = vadd.f32 %v4843_v46, %v1934_v22  ;;  %v2339_v53 = vpop.f32.mrf.mxu0 }
 0x323   : > { %2063 = vst [vmem:[%s4850_s23 + $0xa8] sm:$0xff] %v1999_v15  ;;  %v1828_v29 = vadd.f32 %v2339_v53, %v4843_v46 }
 0x324   : > { %2097 = vst [vmem:[%s4850_s23 + $0x1b8] sm:$0xff] %v2033_v35  ;;  %v2031_v49 = vadd.f32 %v2772_v10, %v1935_v28  ;;  %v1819_v16 = vpop.f32.mrf.mxu0  ;;  %v2787_v35 = vld [vmem:[%s3112_s19 + $0x1f8] sm:$0xff] }
 0x325   : > { %v2004_v47 = vadd.f32 %v2773_v43, %v1828_v29  ;;  %v1820_v14 = vadd.f32 %v4843_v46, %v1819_v16  ;;  %v2371_v24 = vpop.f32.mrf.mxu1  ;;  %v2788_v29 = vld [vmem:[%s3112_s19 + $0x1e8] sm:$0xff] }
 0x326   : > { %2095 = vst [vmem:[%s4850_s23 + $0x1a8] sm:$0xff] %v2031_v49  ;;  %v2340_v51 = vpop.f32.mrf.mxu0  ;;  %v1956_v26 = vadd.f32 %v2371_v24, %v4843_v46 }
 0x327   : > { %2068 = vst [vmem:[%s4850_s23 + $0xd0] sm:$0xff] %v2004_v47  ;;  %v2002_v61 = vadd.f32 %v2774_v31, %v1820_v14  ;;  %v1831_v48 = vadd.f32 %v2340_v51, %v4843_v46  ;;  %v1947_v6 = vpop.f32.mrf.mxu1 }
 0x328   : > { %v2036_v59 = vadd.f32 %v2775_v3, %v1956_v26  ;;  %v1822_v20 = vpop.f32.mrf.mxu0  ;;  %v1948_v25 = vadd.f32 %v4843_v46, %v1947_v6 }
 0x329   : > { %2066 = vst [vmem:[%s4850_s23 + $0xc0] sm:$0xff] %v2002_v61  ;;  %v2005_v23 = vadd.f32 %v2776_v60, %v1831_v48  ;;  %v1823_v54 = vadd.f32 %v4843_v46, %v1822_v20  ;;  %v2372_v42 = vpop.f32.mrf.mxu1 }
 0x32a   : > { %2100 = vst [vmem:[%s4850_s23 + $0x1d0] sm:$0xff] %v2036_v59  ;;  %v2034_v9 = vadd.f32 %v2777_v37, %v1948_v25  ;;  %v1959_v40 = vadd.f32 %v2372_v42, %v4843_v46 }
 0x32b   : > { %2069 = vst [vmem:[%s4850_s23 + $0xd8] sm:$0xff] %v2005_v23  ;;  %v2003_v56 = vadd.f32 %v2778_v8, %v1823_v54  ;;  %v1950_v19 = vpop.f32.mrf.mxu1 }
 0x32c   : > { %2098 = vst [vmem:[%s4850_s23 + $0x1c0] sm:$0xff] %v2034_v9  ;;  %v2037_v36 = vadd.f32 %v2779_v7, %v1959_v40  ;;  %v1951_v62 = vadd.f32 %v4843_v46, %v1950_v19 }
 0x32d   : > { %2067 = vst [vmem:[%s4850_s23 + $0xc8] sm:$0xff] %v2003_v56 }
 0x32e   : > { %2101 = vst [vmem:[%s4850_s23 + $0x1d8] sm:$0xff] %v2037_v36  ;;  %v2035_v50 = vadd.f32 %v2780_v18, %v1951_v62  ;;  %v2343_v44 = vpop.f32.mrf.mxu0 }
 0x32f   : > { %v1844_v63 = vadd.f32 %v2343_v44, %v4843_v46 }
 0x330   : > { %2099 = vst [vmem:[%s4850_s23 + $0x1c8] sm:$0xff] %v2035_v50  ;;  %v1835_v27 = vpop.f32.mrf.mxu0 }
 0x331   : > { %v2008_v4 = vadd.f32 %v2781_v5, %v1844_v63  ;;  %v1836_v17 = vadd.f32 %v4843_v46, %v1835_v27 }
 0x332   : > { %v2344_v33 = vpop.f32.mrf.mxu0 }
 0x333   : > { %2072 = vst [vmem:[%s4850_s23 + $0xf0] sm:$0xff] %v2008_v4  ;;  %v2006_v21 = vadd.f32 %v2782_v11, %v1836_v17  ;;  %v1847_v13 = vadd.f32 %v2344_v33, %v4843_v46 }
 0x334   : > { %v1838_v57 = vpop.f32.mrf.mxu0  ;;  %v2375_v39 = vpop.f32.mrf.mxu1 }
 0x335   : > { %2070 = vst [vmem:[%s4850_s23 + $0xe0] sm:$0xff] %v2006_v21  ;;  %v2009_v2 = vadd.f32 %v2783_v1, %v1847_v13  ;;  %v1839_v58 = vadd.f32 %v4843_v46, %v1838_v57  ;;  %v1972_v45 = vadd.f32 %v2375_v39, %v4843_v46 }
 0x336   : > { %v1963_v52 = vpop.f32.mrf.mxu1 }
 0x337   : > { %2073 = vst [vmem:[%s4850_s23 + $0xf8] sm:$0xff] %v2009_v2  ;;  %v2007_v55 = vadd.f32 %v2784_v41, %v1839_v58  ;;  %v2040_v38 = vadd.f32 %v2785_v34, %v1972_v45  ;;  %v1964_v0 = vadd.f32 %v4843_v46, %v1963_v52 }
 0x338   : > { %v2376_v32 = vpop.f32.mrf.mxu1 }
 0x339   : > { %2071 = vst [vmem:[%s4850_s23 + $0xe8] sm:$0xff] %v2007_v55  ;;  %2104 = vst [vmem:[%s4850_s23 + $0x1f0] sm:$0xff] %v2040_v38  ;;  %v2038_v15 = vadd.f32 %v2786_v30, %v1964_v0  ;;  %v1975_v22 = vadd.f32 %v2376_v32, %v4843_v46 }
 0x33a   : > { %v1966_v12 = vpop.f32.mrf.mxu1 }
 0x33b   : > { %2102 = vst [vmem:[%s4850_s23 + $0x1e0] sm:$0xff] %v2038_v15  ;;  %v2041_v28 = vadd.f32 %v2787_v35, %v1975_v22  ;;  %v1967_v53 = vadd.f32 %v4843_v46, %v1966_v12  ;;  %2113 = sbr.rel (!%p5285_p9) target bundleno = 859 (0x35b), region = 48 }
 0x33d   : > { %2105 = vst [vmem:[%s4850_s23 + $0x1f8] sm:$0xff] %v2041_v28  ;;  %v2039_v10 = vadd.f32 %v2788_v29, %v1967_v53 }
 0x33f   : > { %2103 = vst [vmem:[%s4850_s23 + $0x1e8] sm:$0xff] %v2039_v10 }
 0x340   : > { %s5294_s4 = smov (!%p2116_p10, %s2115_s4), 64 }
 0x341   : > { %s5045_s8 = sshll.u32 %s5294_s4, 7 }
 0x342   : > { %s2120_s9 = ssub.s32 8192, %s5045_s8 }
 0x343   : > { %2121 = vsyncadd %s2107_s26, %s2120_s9  ;;  %p2249_p1 = scmp.ne.s32.totalorder %s5045_s8, 0  ;;  %s2256_s24 = sshll.u32 %s2988_s16, 13 }
 0x344   : > { %s5055_s28 = scalar_lea.hbm %s5106_s3, %s2256_s24  ;;  %s2126_s30 = sshll.u32 %s4850_s23, 4  ;;  %s5058_s30 = int_to_ptr.vmem [resolvable:$true] %s2126_s30 }
 0x345   : > { %s2867_s5 = scalar_lea.vmem %s5058_s30, %s5045_s8  ;;  %s2944_s22 = smov [#allocation8]  }
 0x346   : > { %p2868_p3 = scmp.ne.s32.totalorder %s5058_s30, %s2867_s5  ;;  %s2871_s6 = sshll.u32 %s2944_s22, 4  ;;  %s2872_s6 = int_to_ptr.vmem [resolvable:$false] %s2871_s6 }
 0x347   : > { %s2873_s16 = scalar_lea.vmem %s2872_s6, 16384  ;;  %p2874_p5 = scmp.lt.s32.totalorder %s5058_s30, %s2872_s6 }
 0x348   : > { %p2869_p7 = pnand %p2868_p3, %p2249_p1  ;;  %p2875_p12 = scmp.lt.s32.totalorder %s2873_s16, %s2867_s5 }
 0x34a   : > { %p2870_p4 = pneg %p2869_p7  ;;  %p2876_p13 = por %p2875_p12, %p2874_p5 }
 0x34c   : > { %p2877_p0 = pnand %p2876_p13, %p2870_p4 }
 0x34e   : > { %2880 = shalt.err (!%p2877_p0)
}
 0x34f   : > { %s2881_s7 = scalar_lea.hbm %s5055_s28, %s5045_s8  ;;  %s2885_s19 = scalar_lea.hbm %s5106_s3, 10240 }
 0x350   : > { %p2882_p2 = scmp.ne.s32.totalorder %s5055_s28, %s2881_s7  ;;  %p2886_p9 = scmp.lt.s32.totalorder %s5055_s28, %s5106_s3 }
 0x351   : > { %p2887_p10 = scmp.lt.s32.totalorder %s2885_s19, %s2881_s7 }
 0x352   : > { %p2883_p6 = pnand %p2882_p2, %p2249_p1 }
 0x353   : > { %p2888_p3 = por %p2887_p10, %p2886_p9 }
 0x354   : > { %p2884_p8 = pneg %p2883_p6 }
 0x356   : > { %p2889_p7 = pnand %p2888_p3, %p2884_p8 }
 0x358   : > { %2892 = shalt.err (!%p2889_p7)
}
 0x359   : > { %s2945_s4 = smov 128   ;;  %s2946_s9 = smov 8  }
 0x35a   : > { %2132 = dma.vmem_to_hbm [thread:$0]  (%p2249_p1), %s5058_s30, %s5045_s8, %s5055_s28, %s2107_s26, %s2945_s4, %s2945_s4, %s2946_s9  }
 0x35b PF: > { %s2141_s24 = sand.u32 1, %s2923_s12   ;;  %p5286_p4 = scmp.ne.s32.totalorder %s5166_s25, 0 }
 0x35c   : > { %s2142_s20 = scalar_lea.sflag [#allocation4], %s2141_s24 }
 0x35d   : > { %p2411_p5 = pnand %p2222_p11, %p5286_p4 }
 0x35f   : > { %p2412_p12 = pneg %p2411_p5 }
 0x361   : > { %2918 = dma.done.wait (%p2412_p12), %s2142_s20, 8192  }
 0x362   : > { %2920 = vsyncadd (%p2412_p12), %s2142_s20, 4294959104  ;;  %p17_p13 = scmp.ge.s32.totalorder %s2992_s18, 4   ;;  %s5287_s12 = smov %s2927_s13 }
 0x363   : > { %s5288_s13 = smov %s2931_s14  ;;  %s5289_s14 = smov %s3004_s21 }
 0x364   : > { %s5290_s15 = smov %s2992_s18  ;;  %19 = sbr.rel (!%p17_p13) target bundleno = 6 (0x6), region = 85 }
 0x369   :  { %2147 = vsyncpa [#allocation3], 1 }
 0x36a   :  { %2149 = vsyncpa [#allocation3 + $0x1], 1 }
 0x36b   :  { %2150 = vsyncpa [#allocation6], 1 }
 0x36c   :  { %2151 = vsyncpa [#allocation4], 1 }
 0x36d   :  { %2153 = vsyncpa [#allocation4 + $0x1], 1 }

</bundles_post_ra>
